<compile_context>
chip_gen: v7x
topology: tpu7x:2x2x1
jax: 0.10.0
libtpu: 0.0.40
codegen_flags: <defaults>
</compile_context>

<pallas_src>
import jax
import jax.numpy as jnp
import numpy as np
from jax.experimental import pallas as pl
from jax.experimental.pallas import tpu as pltpu

BN_EPS = 1e-5  # nn.BatchNorm3d default eps


# --------------------------------------------------------------------------
# Helpers
# --------------------------------------------------------------------------
def _round_up(x, m):
    return (x + m - 1) // m * m


def _cdiv(a, b):
    return -(-a // b)


def _vmem_budget_bytes():
    """VMEM budget for tiling: 3/4 of the per-core capacity, capped at 48 MiB
    so v7x (64 MiB/TC) keeps headroom for Mosaic internal scratch."""
    cap = 64 * 1024 * 1024  # conservative fallback (v7x per-TC VMEM)
    try:
        cap = int(getattr(pltpu.get_tpu_info(), "vmem_capacity_bytes", cap))
    except Exception:
        pass
    return min(48 * 1024 * 1024, cap * 3 // 4)


def _pick_tiles(S, N, Kp0, Cp, in_item, y_item, budget):
    """Pick (T, Kt, Kp, Sp): spatial/M tile T (multiple of 128), K tile Kt,
    final padded K width Kp = Kt * n_k, per-batch padded spatial size Sp."""
    # K grid axis keeps the per-step working set bounded for large Cin.
    n_k = _cdiv(Kp0, 1024)
    Kt = _round_up(_cdiv(Kp0, n_k), 128)
    Kp = Kt * n_k

    # Pass-1 working set: double-buffered patch/weight/y blocks + f32 acc.
    fixed = 2 * Kt * Cp * in_item + 2 * 8 * Cp * 4
    per_row = 2 * Kt * in_item + 2 * Cp * y_item + Cp * 4
    t_cap = max(128, ((budget - fixed) // max(per_row, 1)) // 128 * 128)

    s128 = _round_up(S, 128)
    if s128 <= min(t_cap, 4096):
        T = s128                 # one tile per batch row: minimal padding
    else:
        T = min(t_cap, 1024)     # big tiles amortize the ~0.35 us/step overhead
    # Keep both v7x TensorCores fed: need >= 2 M tiles when possible.
    while T > 128 and N * _cdiv(S, T) < 2:
        T = max(128, _round_up(T // 2, 128))
    Sp = _round_up(S, T)
    return T, Kt, Kp, Sp


# --------------------------------------------------------------------------
# Kernels
# --------------------------------------------------------------------------
def conv_partial_stats_kernel(p_ref, w_ref, y_ref, stats_ref, acc_ref):
    """One (M-tile, K-tile) step of the convolution-as-matmul.

    p_ref    : (T, Kt)  im2col patch tile (bf16/f32)           (VMEM)
    w_ref    : (Kt, Cp) conv-weight tile                       (VMEM)
    y_ref    : (T, Cp)  conv output tile, written at last K step
    stats_ref: (8, Cp)  rows 0/1 = per-tile sum / sum-of-squares (f32)
    acc_ref  : (T, Cp)  f32 accumulator scratch
    """
    k = pl.program_id(1)

    @pl.when(k == 0)
    def _():
        acc_ref[...] = jnp.zeros_like(acc_ref)

    acc_ref[...] += jnp.dot(p_ref[...], w_ref[...],
                            preferred_element_type=jnp.float32)

    @pl.when(k == pl.num_programs(1) - 1)
    def _():
        y = acc_ref[...]
        y_ref[...] = y.astype(y_ref.dtype)
        # Only rows 0/1 are consumed downstream; rows 2..7 are never read.
        stats_ref[0:1, :] = jnp.sum(y, axis=0, keepdims=True)
        stats_ref[1:2, :] = jnp.sum(y * y, axis=0, keepdims=True)


# --------------------------------------------------------------------------
# Wrapper
# --------------------------------------------------------------------------
def conv3d_bn_relu(x, weight, gamma, beta, stride=1, eps=BN_EPS,
                   matmul_dtype=jnp.bfloat16):
    """x: (N, Cin, D, H, W) NCDHW; weight: (Cout, Cin, kD, kH, kW).
    Valid (padding=0) convolution, stride in {1, 2}, no conv bias (bn=True),
    training-mode BatchNorm (batch stats, biased variance) + ReLU.
    Returns (N, Cout, Do, Ho, Wo) float32."""
    assert stride in (1, 2)
    N, Cin, D, H, W = x.shape
    Cout, _, kD, kH, kW = weight.shape
    Do = (D - kD) // stride + 1
    Ho = (H - kH) // stride + 1
    Wo = (W - kW) // stride + 1
    S = Do * Ho * Wo                       # output positions per batch element
    K = Cin * kD * kH * kW

    in_item = int(jnp.dtype(matmul_dtype).itemsize)
    y_dtype = matmul_dtype                 # bf16 intermediate when bf16 matmul
    y_item = int(jnp.dtype(y_dtype).itemsize)

    Cp = _round_up(Cout, 256) if Cout > 128 else 128   # 256-wide MXU when big
    Kp0 = _round_up(K, 128)
    budget = _vmem_budget_bytes()
    T, Kt, Kp, Sp = _pick_tiles(S, N, Kp0, Cp, in_item, y_item, budget)
    n_k = Kp // Kt
    n_m = N * Sp // T
    Mp = N * Sp
    vmem_limit = int(budget)

    # ---- glue: NDHWC im2col, built row-major (no transpose of the expanded
    # tensor); K padding folded into the concat, S padded per batch row so the
    # tiled BN statistics stay exact. ----
    # TODO(synk): fuse im2col fully into pass 1 (haloed NDHWC input tiles) to
    # cut activation HBM traffic by ~kD*kH*kW.
    x_c = jnp.transpose(x, (0, 2, 3, 4, 1)).astype(matmul_dtype)   # NDHWC
    cols = []
    for kd in range(kD):
        for kh in range(kH):
            for kw in range(kW):
                cols.append(
                    x_c[:,
                        kd:kd + stride * (Do - 1) + 1:stride,
                        kh:kh + stride * (Ho - 1) + 1:stride,
                        kw:kw + stride * (Wo - 1) + 1:stride, :])
    if Kp > K:
        cols.append(jnp.zeros((N, Do, Ho, Wo, Kp - K), matmul_dtype))
    patches = jnp.concatenate(cols, axis=-1).reshape(N, S, Kp)
    if Sp > S:
        patches = jnp.pad(patches, ((0, 0), (0, Sp - S), (0, 0)))
    patches = patches.reshape(Mp, Kp)

    # Weights reshaped so the K axis is ordered (kd, kh, kw, cin), matching
    # the patch columns (the weight tensor is tiny, this is free).
    w_mat = jnp.transpose(weight, (2, 3, 4, 1, 0)).reshape(K, Cout)
    w_p = jnp.pad(w_mat.astype(matmul_dtype), ((0, Kp - K), (0, Cp - Cout)))
    gamma_p = jnp.pad(gamma.astype(jnp.float32), (0, Cp - Cout),
                      constant_values=1.0)
    beta_p = jnp.pad(beta.astype(jnp.float32), (0, Cp - Cout))

    # ---- pass 1: tiled MXU matmul (M parallel, K arbitrary) + BN partials ----
    cost1 = pl.CostEstimate(
        flops=int(2 * Mp * Kp * Cp + 4 * Mp * Cp), transcendentals=0,
        bytes_accessed=int(Mp * Kp * in_item + n_m * Kp * Cp * in_item
                           + Mp * Cp * y_item + n_m * 8 * Cp * 4))
    y_flat, stats = pl.pallas_call(
        conv_partial_stats_kernel,
        out_shape=(jax.ShapeDtypeStruct((Mp, Cp), y_dtype),
                   jax.ShapeDtypeStruct((n_m * 8, Cp), jnp.float32)),
        grid_spec=pltpu.PrefetchScalarGridSpec(
            num_scalar_prefetch=0,
            grid=(n_m, n_k),
            in_specs=[pl.BlockSpec((T, Kt), lambda i, k: (i, k)),
                      pl.BlockSpec((Kt, Cp), lambda i, k: (k, 0))],
            out_specs=[pl.BlockSpec((T, Cp), lambda i, k: (i, 0)),
                       pl.BlockSpec((8, Cp), lambda i, k: (i, 0))],
            scratch_shapes=[pltpu.VMEM((T, Cp), jnp.float32)]),
        compiler_params=pltpu.CompilerParams(
            dimension_semantics=("parallel", "arbitrary"),
            vmem_limit_bytes=vmem_limit),
        cost_estimate=cost1,
    )(patches, w_p)

    # ---- tiny reduction of the per-tile partials: exact BN over the real
    #      N*S output positions (zero-padded rows contribute 0 to both sums) ----
    st = stats.reshape(n_m, 8, Cp)
    m_true = float(N * S)
    mean = jnp.sum(st[:, 0, :], axis=0) / m_true
    var = jnp.maximum(jnp.sum(st[:, 1, :], axis=0) / m_true - mean * mean, 0.0)
    # TODO(synk): switch to Welford (count/mean/M2) partials if the f32
    # E[y^2]-mean^2 cancellation ever matters at tighter tolerances.
    scale = (gamma_p * jax.lax.rsqrt(var + eps)).reshape(1, Cp)
    shift = beta_p.reshape(1, Cp) - mean.reshape(1, Cp) * scale

    # ---- pass 2: normalize + affine + ReLU, written channel-major so the
    #      NCDHW permutation is folded into the kernel (XLU transpose rides a
    #      free slot in this store-bound epilogue). ----
    def bn_relu_nchw_kernel(y_ref, scale_ref, shift_ref, o_ref):
        yv = y_ref[...].astype(jnp.float32)                        # (T, Cp)
        z = jnp.maximum(yv * scale_ref[...] + shift_ref[...], 0.0)
        o_ref[...] = z.T[:Cout, :]                                 # (Cout, T)

    cost2 = pl.CostEstimate(
        flops=int(3 * Mp * Cp), transcendentals=0,
        bytes_accessed=int(Mp * Cp * y_item + N * Cout * Sp * 4 + 2 * Cp * 4))
    out_cs = pl.pallas_call(
        bn_relu_nchw_kernel,
        out_shape=jax.ShapeDtypeStruct((N, Cout, Sp), jnp.float32),
        grid_spec=pltpu.PrefetchScalarGridSpec(
            num_scalar_prefetch=0,
            grid=(N, Sp // T),
            in_specs=[pl.BlockSpec((None, T, Cp), lambda n, j: (n, j, 0)),
                      pl.BlockSpec((1, Cp), lambda n, j: (0, 0)),
                      pl.BlockSpec((1, Cp), lambda n, j: (0, 0))],
            out_specs=pl.BlockSpec((None, Cout, T), lambda n, j: (n, 0, j))),
        compiler_params=pltpu.CompilerParams(
            dimension_semantics=("parallel", "parallel"),
            vmem_limit_bytes=vmem_limit),
        cost_estimate=cost2,
    )(y_flat.reshape(N, Sp, Cp), scale, shift)

    if Sp > S:
        out_cs = out_cs[:, :, :S]   # only spatial padding is sliced off
    return out_cs.reshape(N, Cout, Do, Ho, Wo)


# --------------------------------------------------------------------------
# Self-test
# --------------------------------------------------------------------------
if __name__ == "__main__":
    key = jax.random.PRNGKey(0)
    k_x, k_w = jax.random.split(key)

    # Conv3d(4 -> 8, kernel_size=3), batch=2, spatial=16.
    N, Cin, Cout, D, H, W, ksz = 2, 4, 8, 16, 16, 16, 3

    x = jax.random.normal(k_x, (N, Cin, D, H, W), dtype=jnp.float32)

    # Deterministic xavier-uniform-style conv weight (init_method='xavier');
    # conv bias absent because bn=True (bias=not bn). BN init: gamma=1, beta=0.
    fan_in = Cin * ksz ** 3
    fan_out = Cout * ksz ** 3
    bound = (6.0 / (fan_in + fan_out)) ** 0.5
    weight = jax.random.uniform(k_w, (Cout, Cin, ksz, ksz, ksz),
                                dtype=jnp.float32, minval=-bound, maxval=bound)
    gamma = jnp.ones((Cout,), jnp.float32)
    beta = jnp.zeros((Cout,), jnp.float32)

    def reference(x, weight, gamma, beta, stride):
        ref = jax.lax.conv_general_dilated(
            x, weight, window_strides=(stride,) * 3, padding="VALID",
            dimension_numbers=("NCDHW", "OIDHW", "NCDHW"))
        mu = ref.mean(axis=(0, 2, 3, 4), keepdims=True)
        va = ref.var(axis=(0, 2, 3, 4), keepdims=True)
        ref = (ref - mu) / jnp.sqrt(va + BN_EPS)
        ref = ref * gamma.reshape(1, -1, 1, 1, 1) + beta.reshape(1, -1, 1, 1, 1)
        return jnp.maximum(ref, 0.0)

    # bf16 MXU path (default) for both strides, plus the exact f32 path.
    for stride, mm_dtype, tol in ((1, jnp.bfloat16, 2e-2),
                                  (2, jnp.bfloat16, 2e-2),
                                  (1, jnp.float32, 1e-3)):
        out = jax.block_until_ready(
            conv3d_bn_relu(x, weight, gamma, beta, stride=stride,
                           matmul_dtype=mm_dtype))
        ref_out = reference(x, weight, gamma, beta, stride)
        Do = (D - ksz) // stride + 1
        assert out.shape == (N, Cout, Do, Do, Do), out.shape
        np.testing.assert_allclose(np.asarray(out), np.asarray(ref_out),
                                   rtol=tol, atol=tol)

    print("KERNEL_OK")
</pallas_src>

<mosaic_0001>
module attributes {stable_mosaic.version = 11 : i64} {
  func.func @conv_partial_stats_kernel(%arg0: i32, %arg1: i32, %arg2: memref<2816x128xbf16, #tpu.memory_space<vmem>>, %arg3: memref<128x128xbf16, #tpu.memory_space<vmem>>, %arg4: memref<2816x128xbf16, #tpu.memory_space<vmem>>, %arg5: memref<8x128xf32, #tpu.memory_space<vmem>>, %arg6: memref<2816x128xf32, #tpu.memory_space<vmem>>) attributes {dimension_semantics = [#tpu.dimension_semantics<parallel>, #tpu.dimension_semantics<arbitrary>], iteration_bounds = array<i64: 2, 1>, scalar_prefetch = 0 : i64, scratch_operands = 1 : i64, tpu.core_type = #tpu.core_type<tc>, window_params = [{transform_indices = @transform_0, window_bounds = array<i64: 2816, 128>}, {transform_indices = @transform_1, window_bounds = array<i64: 128, 128>}, {transform_indices = @transform_2, window_bounds = array<i64: 2816, 128>}, {transform_indices = @transform_3, window_bounds = array<i64: 8, 128>}]} {
    %c0_i32 = arith.constant 0 : i32
    %0 = arith.cmpi eq, %arg1, %c0_i32 : i32
    %1 = arith.extui %0 : i1 to i32
    %c0_i32_0 = arith.constant 0 : i32
    %2 = arith.cmpi ne, %1, %c0_i32_0 : i32
    scf.if %2 {
      %cst_10 = arith.constant 0.000000e+00 : f32
      %12 = vector.broadcast %cst_10 : f32 to vector<2816x128xf32>
      %c0_11 = arith.constant 0 : index
      %c0_12 = arith.constant 0 : index
      %13 = vector.load %arg6[%c0_11, %c0_12] : memref<2816x128xf32, #tpu.memory_space<vmem>>, vector<2816x128xf32>
      tpu.vector_store %arg6[%c0_11, %c0_12], %12 {strides = array<i32>} : memref<2816x128xf32, #tpu.memory_space<vmem>>, vector<2816x128xf32>,
    } else {
    }
    %c0 = arith.constant 0 : index
    %c0_1 = arith.constant 0 : index
    %3 = vector.load %arg6[%c0, %c0_1] : memref<2816x128xf32, #tpu.memory_space<vmem>>, vector<2816x128xf32>
    %c0_2 = arith.constant 0 : index
    %c0_3 = arith.constant 0 : index
    %4 = vector.load %arg2[%c0_2, %c0_3] : memref<2816x128xbf16, #tpu.memory_space<vmem>>, vector<2816x128xbf16>
    %c0_4 = arith.constant 0 : index
    %c0_5 = arith.constant 0 : index
    %5 = vector.load %arg3[%c0_4, %c0_5] : memref<128x128xbf16, #tpu.memory_space<vmem>>, vector<128x128xbf16>
    %cst = arith.constant dense<0.000000e+00> : vector<2816x128xf32>
    %6 = tpu.matmul %4, %5, %cst {dimension_numbers = #tpu.dot_dimension_numbers<[1], [0], [0], [1], [0, 0, 1, 1], [], []>} : vector<2816x128xbf16>, vector<128x128xbf16>, vector<2816x128xf32> -> vector<2816x128xf32>
    %7 = arith.addf %3, %6 : vector<2816x128xf32>
    %c0_6 = arith.constant 0 : index
    %c0_7 = arith.constant 0 : index
    %8 = vector.load %arg6[%c0_6, %c0_7] : memref<2816x128xf32, #tpu.memory_space<vmem>>, vector<2816x128xf32>
    tpu.vector_store %arg6[%c0_6, %c0_7], %7 {strides = array<i32>} : memref<2816x128xf32, #tpu.memory_space<vmem>>, vector<2816x128xf32>,
    %c0_i32_8 = arith.constant 0 : i32
    %9 = arith.cmpi eq, %arg1, %c0_i32_8 : i32
    %10 = arith.extui %9 : i1 to i32
    %c0_i32_9 = arith.constant 0 : i32
    %11 = arith.cmpi ne, %10, %c0_i32_9 : i32
    scf.if %11 {
      %c0_10 = arith.constant 0 : index
      %c0_11 = arith.constant 0 : index
      %12 = vector.load %arg6[%c0_10, %c0_11] : memref<2816x128xf32, #tpu.memory_space<vmem>>, vector<2816x128xf32>
      %13 = arith.truncf %12 : vector<2816x128xf32> to vector<2816x128xbf16>
      %c0_12 = arith.constant 0 : index
      %c0_13 = arith.constant 0 : index
      %14 = vector.load %arg4[%c0_12, %c0_13] : memref<2816x128xbf16, #tpu.memory_space<vmem>>, vector<2816x128xbf16>
      tpu.vector_store %arg4[%c0_12, %c0_13], %13 {strides = array<i32>} : memref<2816x128xbf16, #tpu.memory_space<vmem>>, vector<2816x128xbf16>,
      %cst_14 = arith.constant dense<0.000000e+00> : vector<128xf32>
      %15 = vector.multi_reduction <add>, %12, %cst_14 [0] : vector<2816x128xf32> to vector<128xf32>
      %16 = vector.shape_cast %15 : vector<128xf32> to vector<1x128xf32>
      %c0_15 = arith.constant 0 : index
      %c0_16 = arith.constant 0 : index
      %17 = vector.load %arg5[%c0_15, %c0_16] : memref<8x128xf32, #tpu.memory_space<vmem>>, vector<1x128xf32>
      tpu.vector_store %arg5[%c0_15, %c0_16], %16 {strides = array<i32>} : memref<8x128xf32, #tpu.memory_space<vmem>>, vector<1x128xf32>,
      %18 = arith.mulf %12, %12 : vector<2816x128xf32>
      %cst_17 = arith.constant dense<0.000000e+00> : vector<128xf32>
      %19 = vector.multi_reduction <add>, %18, %cst_17 [0] : vector<2816x128xf32> to vector<128xf32>
      %20 = vector.shape_cast %19 : vector<128xf32> to vector<1x128xf32>
      %c1 = arith.constant 1 : index
      %c0_18 = arith.constant 0 : index
      %21 = vector.load %arg5[%c1, %c0_18] : memref<8x128xf32, #tpu.memory_space<vmem>>, vector<1x128xf32>
      tpu.vector_store %arg5[%c1, %c0_18], %20 {strides = array<i32>} : memref<8x128xf32, #tpu.memory_space<vmem>>, vector<1x128xf32>,
    } else {
    }
    return
  }
  func.func @transform_0(%arg0: i32, %arg1: i32) -> (i32, i32) {
    %c0_i32 = arith.constant 0 : i32
    return %arg0, %arg1 : i32, i32
  }
  func.func @transform_1(%arg0: i32, %arg1: i32) -> (i32, i32) {
    %c0_i32 = arith.constant 0 : i32
    %c0_i32_0 = arith.constant 0 : i32
    return %arg1, %c0_i32 : i32, i32
  }
  func.func @transform_2(%arg0: i32, %arg1: i32) -> (i32, i32) {
    %c0_i32 = arith.constant 0 : i32
    %c0_i32_0 = arith.constant 0 : i32
    return %arg0, %c0_i32 : i32, i32
  }
  func.func @transform_3(%arg0: i32, %arg1: i32) -> (i32, i32) {
    %c0_i32 = arith.constant 0 : i32
    %c0_i32_0 = arith.constant 0 : i32
    return %arg0, %c0_i32 : i32, i32
  }
}

</mosaic_0001>

<bundles_post_ra>
// kernel: tpu_custom_call.1
= control target key start
LH: loop header
LB: loop body
LE: loop exit
PB: predicated region body
PF: predicated region fallthrough
CT: control target
= control target key end

     0   :  { %9 = vsyncpa [#allocation4], 0  ;;  %s12577_s0 = inlined_call_operand.hbm [shape: bf16[5632,128], index: 0, kind: input, shape index: {}]   ;;  %s12578_s1 = inlined_call_operand.hbm [shape: bf16[128,128], index: 1, kind: input, shape index: {}]   ;;  %s12579_s2 = inlined_call_operand.hbm [shape: bf16[5632,128], index: 2, kind: output, shape index: {0}]   ;;  %s12580_s3 = inlined_call_operand.hbm [shape: f32[16,128], index: 3, kind: output, shape index: {1}]  }
   0x1   :  { %11 = vsyncpa [#allocation4 + $0x1], 0 }
   0x2   :  { %12 = vsyncpa [#allocation7], 0 }
   0x3   :  { %13 = vsyncpa [#allocation5], 0 }
   0x4   :  { %15 = vsyncpa [#allocation5 + $0x1], 0 }
   0x5   :  { %16 = vsyncpa [#allocation10], 0 }
   0x6   :  { %18 = vsyncpa [#allocation10 + $0x1], 0  ;;  %s10910_s12 = smov 0   ;;  %s10912_s13 = smov 0  }
   0x7   :  { %s10914_s14 = smov 0   ;;  %s10916_s15 = smov 0  }
   0x8   :  { %s10918_s16 = smov 0   ;;  %s10920_s17 = smov 0  }
   0x9 LB: > { %s7909_s18 = sadd.s32 4294967295, %s10880_s17   ;;  %s7910_s19 = sadd.s32 4294967294, %s10880_s17   ;;  %s10880_s17 = sphi %s10920_s17, %s24_s17   ;;  %s10876_s16 = sphi %s10918_s16, %s12787_s16   ;;  %s10872_s15 = sphi %s10916_s15, %s12786_s15   ;;  %s10868_s14 = sphi %s10914_s14, %s12785_s14   ;;  %s10864_s13 = sphi %s10912_s13, %s12784_s13   ;;  %s10860_s12 = sphi %s10910_s12, %s12783_s12  }
   0xa   : > { %p58_p0 = scmp.ne.s32.totalorder %s10864_s13, %s10860_s12  ;;  %p10944_p1 = scmp.eq.s32.totalorder %s7909_s18, 0 }
   0xb   : > { %p10948_p2 = scmp.eq.s32.totalorder %s7909_s18, 1  ;;  %p114_p3 = scmp.eq.s32.totalorder %s7910_s19, 1 }
   0xc   : > { %s12677_s20 = scalar_select %p10944_p1, 1, 0 }
   0xd   : > { %s12678_s21 = scalar_select %p10948_p2, 1, 0 }
   0xe   : > { %p10954_p4 = por %p10944_p1, %p58_p0  ;;  %p7911_p5 = scmp.ge.s32.totalorder %s10880_s17, 1 }
   0xf   : > { %p10959_p6 = por %p114_p3, %p58_p0  ;;  %p147_p7 = scmp.lt.s32.totalorder %s10880_s17, 3 }
  0x10   : > { %s12679_s22 = scalar_select %p10954_p4, 1, 0 }
  0x11   : > { %s12680_s23 = scalar_select %p10959_p6, 1, 0 }
  0x12   : > { %p10964_p8 = pnand %p7911_p5, %p147_p7  ;;  %s10882_s25 = smov [#allocation6]  }
  0x13   : > { %s162_s26 = sshll.u32 %s10882_s25, 4  ;;  %s36_s28 = sadd.s32 1, %s10876_s16  ;;  %s163_s26 = int_to_ptr.vmem [resolvable:$true] %s162_s26 }
  0x14   : > { %s12681_s24 = scalar_select %p10964_p8, 1, 0 }
  0x15   : > { %p10448_p9 = pneg %p10964_p8  ;;  %s10704_s4 = scalar_lea.hbm %s12578_s1, 1024 }
  0x16   : > { %p10705_p12 = scmp.ne.s32.totalorder %s12578_s1, %s10704_s4  ;;  %p10711_p5 = scmp.lt.u32.totalorder %s10704_s4, %s12578_s1 }
  0x17   : > { %p10973_p11 = pnand %p10448_p9, %p10944_p1 }
  0x19   : > { %p10706_p13 = pneg %p10973_p11 }
  0x1b   : > { %p10707_p0 = pnand %p10706_p13, %p10705_p12 }
  0x1d   : > { %p10708_p3 = pneg %p10707_p0 }
  0x1f   : > { %p10713_p7 = pnand %p10711_p5, %p10708_p3 }
  0x21   : > { %10716 = shalt.err (!%p10713_p7)
}
  0x22   : > { %s10717_s9 = scalar_lea.vmem %s163_s26, 1024  ;;  %p10725_p1 = scmp.lt.s32.totalorder %s163_s26, %s163_s26 }
  0x23   : > { %p10718_p9 = scmp.ne.s32.totalorder %s163_s26, %s10717_s9  ;;  %p10726_p4 = scmp.lt.s32.totalorder %s10717_s9, %s10717_s9 }
  0x25   : > { %p10720_p10 = pnand %p10718_p9, %p10706_p13  ;;  %p10727_p8 = por %p10726_p4, %p10725_p1 }
  0x27   : > { %p10721_p6 = pneg %p10720_p10 }
  0x29   : > { %p10728_p2 = pnand %p10727_p8, %p10721_p6 }
  0x2b   : > { %10731 = shalt.err (!%p10728_p2)
}
  0x2c   : > { %s10883_s10 = smov 64   ;;  %s10884_s11 = smov 4  }
  0x2d   : > { %10451 = dma.hbm_to_vmem [thread:$0]  (!%p10973_p11), %s12578_s1, 1024, %s163_s26, [#allocation7], %s10883_s10, %s10883_s10, %s10884_s11  }
  0x2e   : > { %p38_p1 = scmp.ge.s32.totalorder %s36_s28, 2  ;;  %s45_s25 = sadd.s32 1, %s10868_s14 }
  0x2f   : > { %p52_p2 = scmp.ne.s32.totalorder %s10868_s14, %s10864_s13  ;;  %p53_p4 = scmp.eq.s32.totalorder %s10880_s17, 0 }
  0x30   : > { %s12789_s28 = smov (%p38_p1, %s36_s28), 0  ;;  %p12683_p8 = scmp.ne.s32.totalorder %s12678_s21, 0 }
  0x31   : > { %p54_p6 = por %p53_p4, %p52_p2  ;;  %s40_s27 = ssub.s32 %s10876_s16, %s12789_s28 }
  0x32   : > { %p11005_p10 = por %p12683_p8, %p52_p2  ;;  %p10464_p12 = scmp.lt.s32.totalorder %s10880_s17, 2 }
  0x33   : > { %p43_p13 = scmp.eq.s32.totalorder %s40_s27, 0  ;;  %s176_s30 = sand.u32 1, %s10868_s14  }
  0x34   : > { %s10436_s4 = smul.u32 1408, %s176_s30  ;;  %p11017_p11 = pnand %p10464_p12, %p54_p6 }
  0x35   : > { %s11014_s5 = scalar_select %p43_p13, %s10868_s14, %s45_s25  }
  0x36   : > { %s8459_s26 = smul.u32 22528, %s10876_s16  ;;  %s180_s6 = scalar_lea.vmem [#allocation3], %s10436_s4 }
  0x37   : > { %s188_s7 = sshll.u32 %s180_s6, 4  ;;  %s11028_s19 = scalar_lea.sflag [#allocation4], %s176_s30  ;;  %s11026_s7 = int_to_ptr.vmem [resolvable:$true] %s188_s7 }
  0x38   : > { %s11024_s18 = scalar_lea.hbm %s12577_s0, %s8459_s26  ;;  %p10734_p3 = pneg %p11017_p11 }
  0x39   : > { %s10732_s25 = scalar_lea.hbm %s11024_s18, 22528  ;;  %s10737_s26 = scalar_lea.hbm %s12577_s0, 45056 }
  0x3a   : > { %p10733_p0 = scmp.ne.s32.totalorder %s11024_s18, %s10732_s25  ;;  %p10738_p9 = scmp.lt.u32.totalorder %s11024_s18, %s12577_s0 }
  0x3b   : > { %p10739_p1 = scmp.lt.u32.totalorder %s10737_s26, %s10732_s25  ;;  %p10741_p4 = scmp.lt.u32.totalorder %s10732_s25, %s11024_s18 }
  0x3c   : > { %p10735_p5 = pnand %p10734_p3, %p10733_p0 }
  0x3d   : > { %p10740_p2 = por %p10739_p1, %p10738_p9 }
  0x3e   : > { %p10736_p7 = pneg %p10735_p5 }
  0x3f   : > { %p10742_p6 = por %p10741_p4, %p10740_p2 }
  0x41   : > { %p10743_p8 = pnand %p10742_p6, %p10736_p7 }
  0x43   : > { %10746 = shalt.err (!%p10743_p8)
}
  0x44   : > { %s10747_s30 = scalar_lea.vmem %s11026_s7, 22528  ;;  %s10885_s21 = smov [#allocation3]  }
  0x45   : > { %p10748_p12 = scmp.ne.s32.totalorder %s11026_s7, %s10747_s30  ;;  %s10752_s27 = sshll.u32 %s10885_s21, 4  ;;  %s10753_s27 = int_to_ptr.vmem [resolvable:$false] %s10752_s27 }
  0x46   : > { %s10754_s4 = scalar_lea.vmem %s10753_s27, 45056  ;;  %p10755_p5 = scmp.lt.s32.totalorder %s11026_s7, %s10753_s27 }
  0x47   : > { %p10750_p13 = pnand %p10748_p12, %p10734_p3  ;;  %p10756_p9 = scmp.lt.s32.totalorder %s10754_s4, %s10747_s30 }
  0x49   : > { %p10751_p0 = pneg %p10750_p13  ;;  %p10757_p1 = por %p10756_p9, %p10755_p5 }
  0x4b   : > { %p10758_p2 = pnand %p10757_p1, %p10751_p0 }
  0x4d   : > { %10761 = shalt.err (!%p10758_p2)
}
  0x4e   : > { %10455 = dma.hbm_to_vmem [thread:$0]  (!%p11017_p11), %s11024_s18, 22528, %s11026_s7, %s11028_s19, %s10883_s10, %s10883_s10, %s10884_s11  }
  0x4f   : > { %p12686_p3 = scmp.ne.s32.totalorder %s12681_s24, 0 }
  0x51   : > { %200 = sbr.rel (%p12686_p3) target bundleno = 1085 (0x43d), region = 28 }
  0x58   : > { %s11062_s25 = sand.u32 1, %s10864_s13   ;;  %p12687_p7 = scmp.ne.s32.totalorder %s12679_s22, 0 }
  0x59   : > { %s10437_s26 = smul.u32 1408, %s11062_s25  ;;  %s203_s6 = scalar_lea.sflag [#allocation4], %s11062_s25 }
  0x5b   : > { %s11068_s8 = scalar_lea.vmem [#allocation3], %s10437_s26 }
  0x5c   : > { %10843 = dma.done.wait (%p12687_p7), %s203_s6, 22528  }
  0x5d   : > { %10845 = vsyncadd (%p12687_p7), %s203_s6, 4294944768  ;;  %p12688_p11 = scmp.ne.s32.totalorder %s12677_s20, 0 }
  0x5f   : > { %10847 = dma.done.wait (%p12688_p11), [#allocation7], 1024  }
  0x60   : > { %10849 = vsyncadd (%p12688_p11), [#allocation7], 4294966272  ;;  %v10520_v0 = vld [vmem:[#allocation6] sm:$0xff]   ;;  %v10521_v1 = vld [vmem:[#allocation6 + $0x8] sm:$0xff]   ;;  %s11137_s20 = scalar_lea.vmem [#allocation8], %s10437_s26  ;;  %s8812_s22 = smul.u32 22528, %s10872_s15 }
  0x61   : > { %10052 = vmatprep.subr.bf16.mxu0 %v10520_v0  ;;  %10420 = vmatprep.subr.bf16.mxu1 %v10520_v0  ;;  %v10522_v2 = vld [vmem:[#allocation6 + $0x10] sm:$0xff]   ;;  %v10523_v3 = vld [vmem:[#allocation6 + $0x18] sm:$0xff]   ;;  %v10528_v4 = vld [vmem:[%s11068_s8] sm:$0xff]   ;;  %s7769_s24 = sshll.u32 %s11137_s20, 4  ;;  %s7751_s18 = scalar_lea.sflag [#allocation5], %s11062_s25  ;;  %s12326_s24 = int_to_ptr.vmem [resolvable:$true] %s7769_s24 }
  0x62   : > { %10053 = vmatpush3.bf16.msra.mxu0 %v10520_v0  ;;  %10428 = vmatpush3.bf16.msra.mxu1 %v10520_v0  ;;  %v10524_v5 = vld [vmem:[#allocation6 + $0x20] sm:$0xff]   ;;  %v10525_v6 = vld [vmem:[#allocation6 + $0x28] sm:$0xff]   ;;  %v10526_v7 = vld [vmem:[#allocation6 + $0x30] sm:$0xff]   ;;  %s12324_s7 = scalar_lea.hbm %s12579_s2, %s8812_s22  ;;  %s10762_s19 = scalar_lea.vmem %s12326_s24, 22528 }
  0x63   : > { %10054 = vmatprep.subr.bf16.mxu0 %v10521_v1  ;;  %10421 = vmatprep.subr.bf16.mxu1 %v10521_v1  ;;  %v10527_v8 = vld [vmem:[#allocation6 + $0x38] sm:$0xff]   ;;  %v10529_v9 = vld [vmem:[%s11068_s8 + $0x8] sm:$0xff]   ;;  %v10530_v10 = vld [vmem:[%s11068_s8 + $0x10] sm:$0xff]   ;;  %p10763_p4 = scmp.ne.s32.totalorder %s12326_s24, %s10762_s19  ;;  %s10886_s9 = smov [#allocation8]  }
  0x64   : > { %10068 = vmatprep.mubr.bf16.mxu0 %v10528_v4  ;;  %v10531_v11 = vld [vmem:[%s11068_s8 + $0x18] sm:$0xff]   ;;  %v10532_v12 = vld [vmem:[%s11068_s8 + $0x20] sm:$0xff]   ;;  %v10533_v13 = vld [vmem:[%s11068_s8 + $0x28] sm:$0xff]   ;;  %s10766_s30 = sshll.u32 %s10886_s9, 4  ;;  %s10767_s30 = int_to_ptr.vmem [resolvable:$false] %s10766_s30 }
  0x65   : > { %v10534_v14 = vld [vmem:[%s11068_s8 + $0x30] sm:$0xff]   ;;  %v10535_v15 = vld [vmem:[%s11068_s8 + $0x38] sm:$0xff]   ;;  %v10536_v16 = vld [vmem:[%s11068_s8 + $0x40] sm:$0xff]   ;;  %p10764_p6 = pnand %p10763_p4, %p11005_p10  ;;  %s10768_s21 = scalar_lea.vmem %s10767_s30, 45056 }
  0x66   : > { %10055 = vmatpush3.bf16.msra.mxu0 %v10521_v1  ;;  %10429 = vmatpush3.bf16.msra.mxu1 %v10521_v1  ;;  %v10537_v17 = vld [vmem:[%s11068_s8 + $0x48] sm:$0xff]   ;;  %v10538_v18 = vld [vmem:[%s11068_s8 + $0x50] sm:$0xff]   ;;  %v10539_v19 = vld [vmem:[%s11068_s8 + $0x58] sm:$0xff]   ;;  %p10769_p12 = scmp.lt.s32.totalorder %s12326_s24, %s10767_s30  ;;  %p10770_p13 = scmp.lt.s32.totalorder %s10768_s21, %s10762_s19 }
  0x67   : > { %10056 = vmatprep.subr.bf16.mxu0 %v10522_v2  ;;  %10422 = vmatprep.subr.bf16.mxu1 %v10522_v2  ;;  %v10540_v20 = vld [vmem:[%s11068_s8 + $0x60] sm:$0xff]   ;;  %v10541_v21 = vld [vmem:[%s11068_s8 + $0x68] sm:$0xff]   ;;  %v10542_v22 = vld [vmem:[%s11068_s8 + $0x70] sm:$0xff]   ;;  %p10765_p8 = pneg %p10764_p6 }
  0x68   : > { %v10543_v23 = vld [vmem:[%s11068_s8 + $0x78] sm:$0xff]   ;;  %v10544_v24 = vld [vmem:[%s11068_s8 + $0x80] sm:$0xff]   ;;  %v10545_v25 = vld [vmem:[%s11068_s8 + $0x88] sm:$0xff]   ;;  %p10771_p0 = por %p10770_p13, %p10769_p12 }
  0x69   : > { %v10546_v26 = vld [vmem:[%s11068_s8 + $0x90] sm:$0xff]   ;;  %v10547_v27 = vld [vmem:[%s11068_s8 + $0x98] sm:$0xff]   ;;  %v10548_v28 = vld [vmem:[%s11068_s8 + $0xa0] sm:$0xff]  }
  0x6a   : > { %10057 = vmatpush3.bf16.msra.mxu0 %v10522_v2  ;;  %10430 = vmatpush3.bf16.msra.mxu1 %v10522_v2  ;;  %v10549_v29 = vld [vmem:[%s11068_s8 + $0xa8] sm:$0xff]   ;;  %v10550_v30 = vld [vmem:[%s11068_s8 + $0xb0] sm:$0xff]   ;;  %v10551_v31 = vld [vmem:[%s11068_s8 + $0xb8] sm:$0xff]   ;;  %p10772_p5 = pnand %p10771_p0, %p10765_p8 }
  0x6b   : > { %10058 = vmatprep.subr.bf16.mxu0 %v10523_v3  ;;  %10423 = vmatprep.subr.bf16.mxu1 %v10523_v3  ;;  %v10552_v32 = vld [vmem:[%s11068_s8 + $0xc0] sm:$0xff]   ;;  %v10553_v33 = vld [vmem:[%s11068_s8 + $0xc8] sm:$0xff]   ;;  %v10554_v34 = vld [vmem:[%s11068_s8 + $0xd0] sm:$0xff]  }
  0x6c   : > { %v10555_v35 = vld [vmem:[%s11068_s8 + $0xd8] sm:$0xff]   ;;  %v10556_v36 = vld [vmem:[%s11068_s8 + $0xe0] sm:$0xff]   ;;  %v10557_v37 = vld [vmem:[%s11068_s8 + $0xe8] sm:$0xff]  }
  0x6d   : > { %v10558_v38 = vld [vmem:[%s11068_s8 + $0xf0] sm:$0xff]   ;;  %v10559_v39 = vld [vmem:[%s11068_s8 + $0xf8] sm:$0xff]   ;;  %v10560_v40 = vld [vmem:[%s11068_s8 + $0x100] sm:$0xff]  }
  0x6e   : > { %10059 = vmatpush3.bf16.msra.mxu0 %v10523_v3  ;;  %10431 = vmatpush3.bf16.msra.mxu1 %v10523_v3  ;;  %v10561_v41 = vld [vmem:[%s11068_s8 + $0x108] sm:$0xff]   ;;  %v10562_v42 = vld [vmem:[%s11068_s8 + $0x110] sm:$0xff]   ;;  %v10563_v43 = vld [vmem:[%s11068_s8 + $0x118] sm:$0xff]  }
  0x6f   : > { %10060 = vmatprep.subr.bf16.mxu0 %v10524_v5  ;;  %10424 = vmatprep.subr.bf16.mxu1 %v10524_v5  ;;  %v10564_v44 = vld [vmem:[%s11068_s8 + $0x120] sm:$0xff]   ;;  %v10565_v45 = vld [vmem:[%s11068_s8 + $0x128] sm:$0xff]   ;;  %v10566_v46 = vld [vmem:[%s11068_s8 + $0x130] sm:$0xff]  }
  0x70   : > { %v10567_v47 = vld [vmem:[%s11068_s8 + $0x138] sm:$0xff]   ;;  %v10568_v48 = vld [vmem:[%s11068_s8 + $0x140] sm:$0xff]   ;;  %v10569_v49 = vld [vmem:[%s11068_s8 + $0x148] sm:$0xff]  }
  0x71   : > { %v10570_v50 = vld [vmem:[%s11068_s8 + $0x150] sm:$0xff]   ;;  %v10571_v51 = vld [vmem:[%s11068_s8 + $0x158] sm:$0xff]   ;;  %v10572_v52 = vld [vmem:[%s11068_s8 + $0x160] sm:$0xff]  }
  0x72   : > { %10061 = vmatpush3.bf16.msra.mxu0 %v10524_v5  ;;  %10432 = vmatpush3.bf16.msra.mxu1 %v10524_v5  ;;  %v10573_v53 = vld [vmem:[%s11068_s8 + $0x168] sm:$0xff]   ;;  %v10574_v54 = vld [vmem:[%s11068_s8 + $0x170] sm:$0xff]   ;;  %v10575_v55 = vld [vmem:[%s11068_s8 + $0x178] sm:$0xff]  }
  0x73   : > { %10062 = vmatprep.subr.bf16.mxu0 %v10525_v6  ;;  %10425 = vmatprep.subr.bf16.mxu1 %v10525_v6  ;;  %v10576_v56 = vld [vmem:[%s11068_s8 + $0x180] sm:$0xff]   ;;  %v10577_v57 = vld [vmem:[%s11068_s8 + $0x188] sm:$0xff]   ;;  %v10578_v58 = vld [vmem:[%s11068_s8 + $0x190] sm:$0xff]  }
  0x74   : > { %v10579_v59 = vld [vmem:[%s11068_s8 + $0x198] sm:$0xff]   ;;  %v10580_v60 = vld [vmem:[%s11068_s8 + $0x1a0] sm:$0xff]   ;;  %v10581_v61 = vld [vmem:[%s11068_s8 + $0x1a8] sm:$0xff]  }
  0x75   : > { %v10582_v62 = vld [vmem:[%s11068_s8 + $0x1b0] sm:$0xff]   ;;  %v10583_v1 = vld [vmem:[%s11068_s8 + $0x1b8] sm:$0xff]   ;;  %v10584_v3 = vld [vmem:[%s11068_s8 + $0x1c0] sm:$0xff]  }
  0x76   : > { %10063 = vmatpush3.bf16.msra.mxu0 %v10525_v6  ;;  %10433 = vmatpush3.bf16.msra.mxu1 %v10525_v6 }
  0x77   : > { %10064 = vmatprep.subr.bf16.mxu0 %v10526_v7  ;;  %10426 = vmatprep.subr.bf16.mxu1 %v10526_v7 }
  0x7a   : > { %10065 = vmatpush3.bf16.msra.mxu0 %v10526_v7  ;;  %10434 = vmatpush3.bf16.msra.mxu1 %v10526_v7 }
  0x7b   : > { %10066 = vmatprep.subr.bf16.mxu0 %v10527_v8  ;;  %10427 = vmatprep.subr.bf16.mxu1 %v10527_v8 }
  0x7e   : > { %10067 = vmatpush3.bf16.msra.mxu0 %v10527_v8  ;;  %10435 = vmatpush3.bf16.msra.mxu1 %v10527_v8 }
  0x81   : > { %10069 = vmatmul.mubr.bf16.vlgmr.msra.gmra.mrb[0].mxu0 %v10529_v9 }
  0x82   : > { %10072 = vmatprep.mubr.bf16.mxu0 %v10530_v10 }
  0x89   : > { %10073 = vmatmul.mubr.bf16.gmra.mrb[4].mxu0 %v10531_v11 }
  0x8a   : > { %10076 = vmatprep.mubr.bf16.mxu0 %v10532_v12 }
  0x91   : > { %10077 = vmatmul.mubr.bf16.gmra.mrb[8].mxu0 %v10533_v13  ;;  %v10616_v13 = vld [vmem:[%s11068_s8 + $0x2c0] sm:$0xff]  }
  0x92   : > { %10080 = vmatprep.mubr.bf16.mxu0 %v10534_v14  ;;  %10244 = vmatprep.mubr.bf16.mxu1 %v10616_v13 }
  0x99   : > { %10081 = vmatmul.mubr.bf16.gmra.mrb[12].mxu0 %v10535_v15 }
  0x9a   : > { %10084 = vmatprep.mubr.bf16.mxu0 %v10536_v16 }
  0xa1   : > { %10085 = vmatmul.mubr.bf16.gmra.mrb[16].mxu0 %v10537_v17 }
  0xa2   : > { %10088 = vmatprep.mubr.bf16.mxu0 %v10538_v18  ;;  %v10617_v18 = vld [vmem:[%s11068_s8 + $0x2c8] sm:$0xff]  }
  0xa3   : > { %10245 = vmatmul.mubr.bf16.vlgmr.msra.gmra.mrb[0].mxu1 %v10617_v18 }
  0xa9   : > { %10089 = vmatmul.mubr.bf16.gmra.mrb[20].mxu0 %v10539_v19 }
  0xaa   : > { %10092 = vmatprep.mubr.bf16.mxu0 %v10540_v20  ;;  %v10585_v20 = vld [vmem:[%s11068_s8 + $0x1c8] sm:$0xff]  }
  0xb1   : > { %10093 = vmatmul.mubr.bf16.gmra.mrb[24].mxu0 %v10541_v21 }
  0xb2   : > { %10096 = vmatprep.mubr.bf16.mxu0 %v10542_v22 }
  0xb9   : > { %10097 = vmatmul.mubr.bf16.gmra.mrb[28].mxu0 %v10543_v23 }
  0xba   : > { %10100 = vmatprep.mubr.bf16.mxu0 %v10544_v24 }
  0xc1   : > { %10101 = vmatmul.mubr.bf16.gmra.mrb[32].mxu0 %v10545_v25  ;;  %v10586_v25 = vld [vmem:[%s11068_s8 + $0x1d0] sm:$0xff]  }
  0xc2   : > { %10104 = vmatprep.mubr.bf16.mxu0 %v10546_v26 }
  0xc9   : > { %10105 = vmatmul.mubr.bf16.gmra.mrb[36].mxu0 %v10547_v27 }
  0xca   : > { %10108 = vmatprep.mubr.bf16.mxu0 %v10548_v28 }
  0xd1   : > { %10109 = vmatmul.mubr.bf16.gmra.mrb[40].mxu0 %v10549_v29 }
  0xd2   : > { %10112 = vmatprep.mubr.bf16.mxu0 %v10550_v30 }
  0xd9   : > { %10113 = vmatmul.mubr.bf16.gmra.mrb[44].mxu0 %v10551_v31 }
  0xda   : > { %10116 = vmatprep.mubr.bf16.mxu0 %v10552_v32 }
  0xe1   : > { %10117 = vmatmul.mubr.bf16.gmra.mrb[48].mxu0 %v10553_v33 }
  0xe2   : > { %10120 = vmatprep.mubr.bf16.mxu0 %v10554_v34 }
  0xe9   : > { %10121 = vmatmul.mubr.bf16.gmra.mrb[52].mxu0 %v10555_v35  ;;  %v10618_v35 = vld [vmem:[%s11068_s8 + $0x2d0] sm:$0xff]  }
  0xea   : > { %10124 = vmatprep.mubr.bf16.mxu0 %v10556_v36  ;;  %10248 = vmatprep.mubr.bf16.mxu1 %v10618_v35 }
  0xf1   : > { %10125 = vmatmul.mubr.bf16.gmra.mrb[56].mxu0 %v10557_v37 }
  0xf2   : > { %10128 = vmatprep.mubr.bf16.mxu0 %v10558_v38 }
  0xf9   : > { %10129 = vmatmul.mubr.bf16.gmra.mrb[60].mxu0 %v10559_v39 }
  0xfa   : > { %10132 = vmatprep.mubr.bf16.mxu0 %v10560_v40  ;;  %v10619_v40 = vld [vmem:[%s11068_s8 + $0x2d8] sm:$0xff]  }
  0xfb   : > { %10249 = vmatmul.mubr.bf16.gmra.mrb[4].mxu1 %v10619_v40 }
 0x101   : > { %10133 = vmatmul.mubr.bf16.gmra.mrb[64].mxu0 %v10561_v41 }
 0x102   : > { %10136 = vmatprep.mubr.bf16.mxu0 %v10562_v42  ;;  %v10587_v42 = vld [vmem:[%s11068_s8 + $0x1d8] sm:$0xff]  }
 0x109   : > { %10137 = vmatmul.mubr.bf16.gmra.mrb[68].mxu0 %v10563_v43 }
 0x10a   : > { %10140 = vmatprep.mubr.bf16.mxu0 %v10564_v44 }
 0x111   : > { %10141 = vmatmul.mubr.bf16.gmra.mrb[72].mxu0 %v10565_v45 }
 0x112   : > { %10144 = vmatprep.mubr.bf16.mxu0 %v10566_v46 }
 0x119   : > { %10145 = vmatmul.mubr.bf16.gmra.mrb[76].mxu0 %v10567_v47  ;;  %v10588_v47 = vld [vmem:[%s11068_s8 + $0x1e0] sm:$0xff]  }
 0x11a   : > { %10148 = vmatprep.mubr.bf16.mxu0 %v10568_v48 }
 0x121   : > { %10149 = vmatmul.mubr.bf16.gmra.mrb[80].mxu0 %v10569_v49 }
 0x122   : > { %10152 = vmatprep.mubr.bf16.mxu0 %v10570_v50 }
 0x129   : > { %10153 = vmatmul.mubr.bf16.gmra.mrb[84].mxu0 %v10571_v51 }
 0x12a   : > { %10156 = vmatprep.mubr.bf16.mxu0 %v10572_v52 }
 0x131   : > { %10157 = vmatmul.mubr.bf16.gmra.mrb[88].mxu0 %v10573_v53 }
 0x132   : > { %10160 = vmatprep.mubr.bf16.mxu0 %v10574_v54 }
 0x139   : > { %10161 = vmatmul.mubr.bf16.gmra.mrb[92].mxu0 %v10575_v55 }
 0x13a   : > { %10164 = vmatprep.mubr.bf16.mxu0 %v10576_v56 }
 0x141   : > { %10165 = vmatmul.mubr.bf16.gmra.mrb[96].mxu0 %v10577_v57  ;;  %v10620_v57 = vld [vmem:[%s11068_s8 + $0x2e0] sm:$0xff]  }
 0x142   : > { %10168 = vmatprep.mubr.bf16.mxu0 %v10578_v58  ;;  %10252 = vmatprep.mubr.bf16.mxu1 %v10620_v57 }
 0x149   : > { %10169 = vmatmul.mubr.bf16.gmra.mrb[100].mxu0 %v10579_v59 }
 0x14a   : > { %10172 = vmatprep.mubr.bf16.mxu0 %v10580_v60 }
 0x151   : > { %10173 = vmatmul.mubr.bf16.gmra.mrb[104].mxu0 %v10581_v61 }
 0x152   : > { %10176 = vmatprep.mubr.bf16.mxu0 %v10582_v62  ;;  %v10621_v62 = vld [vmem:[%s11068_s8 + $0x2e8] sm:$0xff]  }
 0x153   : > { %10253 = vmatmul.mubr.bf16.gmra.mrb[8].mxu1 %v10621_v62 }
 0x154   : > { %v10070_v63 = vpop.f32.mrb[0].mxu0 }
 0x155   : > { %v2456_v0 = vpop.f32.mrb[1].mxu0  ;;  %v7042_v10 = vmul.f32 %v10070_v63, %v10070_v63 }
 0x156   : > { %v10071_v2 = vpop.f32.mrb[2].mxu0  ;;  %v7040_v6 = vmul.f32 %v2456_v0, %v2456_v0 }
 0x157   : > { %v8821_v4 = vpack.c.bf16 %v10071_v2, %v10070_v63  ;;  %v2459_v5 = vpop.f32.mrb[3].mxu0  ;;  %v7043_v14 = vmul.f32 %v10071_v2, %v10071_v2 }
 0x158   : > { %v8816_v7 = vpack.c.bf16 %v2459_v5, %v2456_v0  ;;  %v6682_v8 = vadd.f32 %v2459_v5, %v2456_v0  ;;  %v7041_v9 = vmul.f32 %v2459_v5, %v2459_v5  ;;  %v10589_v0 = vld [vmem:[%s11068_s8 + $0x1e8] sm:$0xff]   ;;  %v10590_v5 = vld [vmem:[%s11068_s8 + $0x1f0] sm:$0xff]  }
 0x159   : > { %9693 = vst [vmem:[%s11137_s20 + $0x8] sm:$0xff] %v8821_v4   ;;  %10177 = vmatmul.mubr.bf16.gmra.mrb[108].mxu0 %v10583_v1 }
 0x15a   : > { %8817 = vst [vmem:[%s11137_s20] sm:$0xff] %v8816_v7   ;;  %v6683_v11 = vadd.f32 %v10070_v63, %v6682_v8  ;;  %v7392_v12 = vadd.f32 %v7041_v9, %v7040_v6  ;;  %10180 = vmatprep.mubr.bf16.mxu0 %v10584_v3 }
 0x15c   : > { %v6684_v15 = vadd.f32 %v10071_v2, %v6683_v11  ;;  %v7393_v16 = vadd.f32 %v7392_v12, %v7042_v10  ;;  %v10074_v17 = vpop.f32.mrb[4].mxu0 }
 0x15d   : > { %v2472_v19 = vpop.f32.mrb[5].mxu0  ;;  %v7046_v32 = vmul.f32 %v10074_v17, %v10074_v17 }
 0x15e   : > { %v7394_v21 = vadd.f32 %v7393_v16, %v7043_v14  ;;  %v6685_v22 = vadd.f32 %v6684_v15, %v2472_v19  ;;  %v7044_v23 = vmul.f32 %v2472_v19, %v2472_v19  ;;  %v10075_v24 = vpop.f32.mrb[6].mxu0  ;;  %v10622_v15 = vld [vmem:[%s11068_s8 + $0x2f0] sm:$0xff]  }
 0x15f   : > { %v8831_v26 = vpack.c.bf16 %v10075_v24, %v10074_v17  ;;  %v2475_v27 = vpop.f32.mrb[7].mxu0  ;;  %v7047_v36 = vmul.f32 %v10075_v24, %v10075_v24  ;;  %10256 = vmatprep.mubr.bf16.mxu1 %v10622_v15 }
 0x160   : > { %v7395_v28 = vadd.f32 %v7394_v21, %v7044_v23  ;;  %v8826_v29 = vpack.c.bf16 %v2475_v27, %v2472_v19  ;;  %v6686_v30 = vadd.f32 %v6685_v22, %v2475_v27  ;;  %v7045_v31 = vmul.f32 %v2475_v27, %v2475_v27  ;;  %v10591_v22 = vld [vmem:[%s11068_s8 + $0x1f8] sm:$0xff]   ;;  %v10592_v27 = vld [vmem:[%s11068_s8 + $0x200] sm:$0xff]  }
 0x161   : > { %9695 = vst [vmem:[%s11137_s20 + $0x18] sm:$0xff] %v8831_v26   ;;  %10181 = vmatmul.mubr.bf16.gmra.mrb[112].mxu0 %v10585_v20  ;;  %v10623_v20 = vld [vmem:[%s11068_s8 + $0x2f8] sm:$0xff]  }
 0x162   : > { %9694 = vst [vmem:[%s11137_s20 + $0x10] sm:$0xff] %v8826_v29   ;;  %v6687_v33 = vadd.f32 %v10074_v17, %v6686_v30  ;;  %v7396_v34 = vadd.f32 %v7395_v28, %v7045_v31  ;;  %10184 = vmatprep.mubr.bf16.mxu0 %v10586_v25  ;;  %10257 = vmatmul.mubr.bf16.gmra.mrb[12].mxu1 %v10623_v20 }
 0x164   : > { %v6688_v37 = vadd.f32 %v10075_v24, %v6687_v33  ;;  %v7397_v38 = vadd.f32 %v7396_v34, %v7046_v32  ;;  %v10078_v39 = vpop.f32.mrb[8].mxu0 }
 0x165   : > { %v2488_v41 = vpop.f32.mrb[9].mxu0  ;;  %v7050_v54 = vmul.f32 %v10078_v39, %v10078_v39 }
 0x166   : > { %v7398_v43 = vadd.f32 %v7397_v38, %v7047_v36  ;;  %v6689_v44 = vadd.f32 %v6688_v37, %v2488_v41  ;;  %v7048_v45 = vmul.f32 %v2488_v41, %v2488_v41  ;;  %v10079_v46 = vpop.f32.mrb[10].mxu0  ;;  %v10624_v37 = vld [vmem:[%s11068_s8 + $0x300] sm:$0xff]  }
 0x167   : > { %v8841_v48 = vpack.c.bf16 %v10079_v46, %v10078_v39  ;;  %v2491_v49 = vpop.f32.mrb[11].mxu0  ;;  %v7051_v58 = vmul.f32 %v10079_v46, %v10079_v46  ;;  %10260 = vmatprep.mubr.bf16.mxu1 %v10624_v37 }
 0x168   : > { %v7399_v50 = vadd.f32 %v7398_v43, %v7048_v45  ;;  %v8836_v51 = vpack.c.bf16 %v2491_v49, %v2488_v41  ;;  %v6690_v52 = vadd.f32 %v6689_v44, %v2491_v49  ;;  %v7049_v53 = vmul.f32 %v2491_v49, %v2491_v49  ;;  %v10593_v44 = vld [vmem:[%s11068_s8 + $0x208] sm:$0xff]   ;;  %v10594_v49 = vld [vmem:[%s11068_s8 + $0x210] sm:$0xff]  }
 0x169   : > { %9697 = vst [vmem:[%s11137_s20 + $0x28] sm:$0xff] %v8841_v48   ;;  %10185 = vmatmul.mubr.bf16.gmra.mrb[116].mxu0 %v10587_v42  ;;  %v10625_v42 = vld [vmem:[%s11068_s8 + $0x308] sm:$0xff]  }
 0x16a   : > { %9696 = vst [vmem:[%s11137_s20 + $0x20] sm:$0xff] %v8836_v51   ;;  %v6691_v55 = vadd.f32 %v10078_v39, %v6690_v52  ;;  %v7400_v56 = vadd.f32 %v7399_v50, %v7049_v53  ;;  %10188 = vmatprep.mubr.bf16.mxu0 %v10588_v47  ;;  %10261 = vmatmul.mubr.bf16.gmra.mrb[16].mxu1 %v10625_v42 }
 0x16c   : > { %v6692_v59 = vadd.f32 %v10079_v46, %v6691_v55  ;;  %v7401_v60 = vadd.f32 %v7400_v56, %v7050_v54  ;;  %v10082_v61 = vpop.f32.mrb[12].mxu0 }
 0x16d   : > { %v2504_v63 = vpop.f32.mrb[13].mxu0  ;;  %v7054_v12 = vmul.f32 %v10082_v61, %v10082_v61 }
 0x16e   : > { %v7402_v1 = vadd.f32 %v7401_v60, %v7051_v58  ;;  %v6693_v2 = vadd.f32 %v6692_v59, %v2504_v63  ;;  %v7052_v3 = vmul.f32 %v2504_v63, %v2504_v63  ;;  %v10083_v4 = vpop.f32.mrb[14].mxu0  ;;  %v10626_v59 = vld [vmem:[%s11068_s8 + $0x310] sm:$0xff]  }
 0x16f   : > { %v8851_v6 = vpack.c.bf16 %v10083_v4, %v10082_v61  ;;  %v2507_v7 = vpop.f32.mrb[15].mxu0  ;;  %v7055_v16 = vmul.f32 %v10083_v4, %v10083_v4  ;;  %10264 = vmatprep.mubr.bf16.mxu1 %v10626_v59 }
 0x170   : > { %v7403_v8 = vadd.f32 %v7402_v1, %v7052_v3  ;;  %v8846_v9 = vpack.c.bf16 %v2507_v7, %v2504_v63  ;;  %v6694_v10 = vadd.f32 %v6693_v2, %v2507_v7  ;;  %v7053_v11 = vmul.f32 %v2507_v7, %v2507_v7  ;;  %v10595_v2 = vld [vmem:[%s11068_s8 + $0x218] sm:$0xff]   ;;  %v10596_v7 = vld [vmem:[%s11068_s8 + $0x220] sm:$0xff]  }
 0x171   : > { %9699 = vst [vmem:[%s11137_s20 + $0x38] sm:$0xff] %v8851_v6   ;;  %10189 = vmatmul.mubr.bf16.gmra.mrb[120].mxu0 %v10589_v0  ;;  %v10627_v0 = vld [vmem:[%s11068_s8 + $0x318] sm:$0xff]  }
 0x172   : > { %9698 = vst [vmem:[%s11137_s20 + $0x30] sm:$0xff] %v8846_v9   ;;  %v6695_v13 = vadd.f32 %v10082_v61, %v6694_v10  ;;  %v7404_v14 = vadd.f32 %v7403_v8, %v7053_v11  ;;  %10192 = vmatprep.mubr.bf16.mxu0 %v10590_v5  ;;  %10265 = vmatmul.mubr.bf16.gmra.mrb[20].mxu1 %v10627_v0 }
 0x174   : > { %v6696_v17 = vadd.f32 %v10083_v4, %v6695_v13  ;;  %v7405_v18 = vadd.f32 %v7404_v14, %v7054_v12  ;;  %v10086_v19 = vpop.f32.mrb[16].mxu0 }
 0x175   : > { %v2520_v21 = vpop.f32.mrb[17].mxu0  ;;  %v7058_v34 = vmul.f32 %v10086_v19, %v10086_v19 }
 0x176   : > { %v7406_v23 = vadd.f32 %v7405_v18, %v7055_v16  ;;  %v6697_v24 = vadd.f32 %v6696_v17, %v2520_v21  ;;  %v7056_v25 = vmul.f32 %v2520_v21, %v2520_v21  ;;  %v10087_v26 = vpop.f32.mrb[18].mxu0  ;;  %v10628_v17 = vld [vmem:[%s11068_s8 + $0x320] sm:$0xff]  }
 0x177   : > { %v8861_v28 = vpack.c.bf16 %v10087_v26, %v10086_v19  ;;  %v2523_v29 = vpop.f32.mrb[19].mxu0  ;;  %v7059_v38 = vmul.f32 %v10087_v26, %v10087_v26  ;;  %10268 = vmatprep.mubr.bf16.mxu1 %v10628_v17 }
 0x178   : > { %v7407_v30 = vadd.f32 %v7406_v23, %v7056_v25  ;;  %v8856_v31 = vpack.c.bf16 %v2523_v29, %v2520_v21  ;;  %v6698_v32 = vadd.f32 %v6697_v24, %v2523_v29  ;;  %v7057_v33 = vmul.f32 %v2523_v29, %v2523_v29  ;;  %v10597_v24 = vld [vmem:[%s11068_s8 + $0x228] sm:$0xff]   ;;  %v10598_v29 = vld [vmem:[%s11068_s8 + $0x230] sm:$0xff]  }
 0x179   : > { %9701 = vst [vmem:[%s11137_s20 + $0x48] sm:$0xff] %v8861_v28   ;;  %10193 = vmatmul.mubr.bf16.gmra.mrb[124].mxu0 %v10591_v22  ;;  %v10629_v22 = vld [vmem:[%s11068_s8 + $0x328] sm:$0xff]  }
 0x17a   : > { %9700 = vst [vmem:[%s11137_s20 + $0x40] sm:$0xff] %v8856_v31   ;;  %v6699_v35 = vadd.f32 %v10086_v19, %v6698_v32  ;;  %v7408_v36 = vadd.f32 %v7407_v30, %v7057_v33  ;;  %10196 = vmatprep.mubr.bf16.mxu0 %v10592_v27  ;;  %10269 = vmatmul.mubr.bf16.gmra.mrb[24].mxu1 %v10629_v22 }
 0x17c   : > { %v6700_v39 = vadd.f32 %v10087_v26, %v6699_v35  ;;  %v7409_v40 = vadd.f32 %v7408_v36, %v7058_v34  ;;  %v10090_v41 = vpop.f32.mrb[20].mxu0 }
 0x17d   : > { %v2536_v43 = vpop.f32.mrb[21].mxu0  ;;  %v7062_v56 = vmul.f32 %v10090_v41, %v10090_v41 }
 0x17e   : > { %v7410_v45 = vadd.f32 %v7409_v40, %v7059_v38  ;;  %v6701_v46 = vadd.f32 %v6700_v39, %v2536_v43  ;;  %v7060_v47 = vmul.f32 %v2536_v43, %v2536_v43  ;;  %v10091_v48 = vpop.f32.mrb[22].mxu0  ;;  %v10630_v39 = vld [vmem:[%s11068_s8 + $0x330] sm:$0xff]  }
 0x17f   : > { %v8871_v50 = vpack.c.bf16 %v10091_v48, %v10090_v41  ;;  %v2539_v51 = vpop.f32.mrb[23].mxu0  ;;  %v7063_v60 = vmul.f32 %v10091_v48, %v10091_v48  ;;  %10272 = vmatprep.mubr.bf16.mxu1 %v10630_v39 }
 0x180   : > { %v7411_v52 = vadd.f32 %v7410_v45, %v7060_v47  ;;  %v8866_v53 = vpack.c.bf16 %v2539_v51, %v2536_v43  ;;  %v6702_v54 = vadd.f32 %v6701_v46, %v2539_v51  ;;  %v7061_v55 = vmul.f32 %v2539_v51, %v2539_v51  ;;  %v10599_v46 = vld [vmem:[%s11068_s8 + $0x238] sm:$0xff]   ;;  %v10600_v51 = vld [vmem:[%s11068_s8 + $0x240] sm:$0xff]  }
 0x181   : > { %9703 = vst [vmem:[%s11137_s20 + $0x58] sm:$0xff] %v8871_v50   ;;  %10197 = vmatmul.mubr.bf16.gmra.mrb[128].mxu0 %v10593_v44  ;;  %v10631_v44 = vld [vmem:[%s11068_s8 + $0x338] sm:$0xff]  }
 0x182   : > { %9702 = vst [vmem:[%s11137_s20 + $0x50] sm:$0xff] %v8866_v53   ;;  %v6703_v57 = vadd.f32 %v10090_v41, %v6702_v54  ;;  %v7412_v58 = vadd.f32 %v7411_v52, %v7061_v55  ;;  %10200 = vmatprep.mubr.bf16.mxu0 %v10594_v49  ;;  %10273 = vmatmul.mubr.bf16.gmra.mrb[28].mxu1 %v10631_v44 }
 0x184   : > { %v6704_v61 = vadd.f32 %v10091_v48, %v6703_v57  ;;  %v7413_v62 = vadd.f32 %v7412_v58, %v7062_v56  ;;  %v10094_v63 = vpop.f32.mrb[24].mxu0 }
 0x185   : > { %v2552_v1 = vpop.f32.mrb[25].mxu0  ;;  %v7066_v14 = vmul.f32 %v10094_v63, %v10094_v63 }
 0x186   : > { %v7414_v3 = vadd.f32 %v7413_v62, %v7063_v60  ;;  %v6705_v4 = vadd.f32 %v6704_v61, %v2552_v1  ;;  %v7064_v5 = vmul.f32 %v2552_v1, %v2552_v1  ;;  %v10095_v6 = vpop.f32.mrb[26].mxu0  ;;  %v10632_v61 = vld [vmem:[%s11068_s8 + $0x340] sm:$0xff]  }
 0x187   : > { %v8881_v8 = vpack.c.bf16 %v10095_v6, %v10094_v63  ;;  %v2555_v9 = vpop.f32.mrb[27].mxu0  ;;  %v7067_v18 = vmul.f32 %v10095_v6, %v10095_v6  ;;  %10276 = vmatprep.mubr.bf16.mxu1 %v10632_v61 }
 0x188   : > { %v7415_v10 = vadd.f32 %v7414_v3, %v7064_v5  ;;  %v8876_v11 = vpack.c.bf16 %v2555_v9, %v2552_v1  ;;  %v6706_v12 = vadd.f32 %v6705_v4, %v2555_v9  ;;  %v7065_v13 = vmul.f32 %v2555_v9, %v2555_v9  ;;  %v10601_v4 = vld [vmem:[%s11068_s8 + $0x248] sm:$0xff]   ;;  %v10602_v9 = vld [vmem:[%s11068_s8 + $0x250] sm:$0xff]  }
 0x189   : > { %9705 = vst [vmem:[%s11137_s20 + $0x68] sm:$0xff] %v8881_v8   ;;  %10201 = vmatmul.mubr.bf16.gmra.mrb[132].mxu0 %v10595_v2  ;;  %v10633_v2 = vld [vmem:[%s11068_s8 + $0x348] sm:$0xff]  }
 0x18a   : > { %9704 = vst [vmem:[%s11137_s20 + $0x60] sm:$0xff] %v8876_v11   ;;  %v6707_v15 = vadd.f32 %v10094_v63, %v6706_v12  ;;  %v7416_v16 = vadd.f32 %v7415_v10, %v7065_v13  ;;  %10204 = vmatprep.mubr.bf16.mxu0 %v10596_v7  ;;  %10277 = vmatmul.mubr.bf16.gmra.mrb[32].mxu1 %v10633_v2 }
 0x18c   : > { %v6708_v19 = vadd.f32 %v10095_v6, %v6707_v15  ;;  %v7417_v20 = vadd.f32 %v7416_v16, %v7066_v14  ;;  %v10098_v21 = vpop.f32.mrb[28].mxu0 }
 0x18d   : > { %v2568_v23 = vpop.f32.mrb[29].mxu0  ;;  %v7070_v36 = vmul.f32 %v10098_v21, %v10098_v21 }
 0x18e   : > { %v7418_v25 = vadd.f32 %v7417_v20, %v7067_v18  ;;  %v6709_v26 = vadd.f32 %v6708_v19, %v2568_v23  ;;  %v7068_v27 = vmul.f32 %v2568_v23, %v2568_v23  ;;  %v10099_v28 = vpop.f32.mrb[30].mxu0  ;;  %v10634_v19 = vld [vmem:[%s11068_s8 + $0x350] sm:$0xff]  }
 0x18f   : > { %v8891_v30 = vpack.c.bf16 %v10099_v28, %v10098_v21  ;;  %v2571_v31 = vpop.f32.mrb[31].mxu0  ;;  %v7071_v40 = vmul.f32 %v10099_v28, %v10099_v28  ;;  %10280 = vmatprep.mubr.bf16.mxu1 %v10634_v19 }
 0x190   : > { %v7419_v32 = vadd.f32 %v7418_v25, %v7068_v27  ;;  %v8886_v33 = vpack.c.bf16 %v2571_v31, %v2568_v23  ;;  %v6710_v34 = vadd.f32 %v6709_v26, %v2571_v31  ;;  %v7069_v35 = vmul.f32 %v2571_v31, %v2571_v31  ;;  %v10603_v26 = vld [vmem:[%s11068_s8 + $0x258] sm:$0xff]   ;;  %v10604_v31 = vld [vmem:[%s11068_s8 + $0x260] sm:$0xff]  }
 0x191   : > { %9707 = vst [vmem:[%s11137_s20 + $0x78] sm:$0xff] %v8891_v30   ;;  %10205 = vmatmul.mubr.bf16.gmra.mrb[136].mxu0 %v10597_v24  ;;  %v10635_v24 = vld [vmem:[%s11068_s8 + $0x358] sm:$0xff]  }
 0x192   : > { %9706 = vst [vmem:[%s11137_s20 + $0x70] sm:$0xff] %v8886_v33   ;;  %v6711_v37 = vadd.f32 %v10098_v21, %v6710_v34  ;;  %v7420_v38 = vadd.f32 %v7419_v32, %v7069_v35  ;;  %10208 = vmatprep.mubr.bf16.mxu0 %v10598_v29  ;;  %10281 = vmatmul.mubr.bf16.gmra.mrb[36].mxu1 %v10635_v24 }
 0x194   : > { %v6712_v41 = vadd.f32 %v10099_v28, %v6711_v37  ;;  %v7421_v42 = vadd.f32 %v7420_v38, %v7070_v36  ;;  %v10102_v43 = vpop.f32.mrb[32].mxu0 }
 0x195   : > { %v2584_v45 = vpop.f32.mrb[33].mxu0  ;;  %v7074_v58 = vmul.f32 %v10102_v43, %v10102_v43 }
 0x196   : > { %v7422_v47 = vadd.f32 %v7421_v42, %v7071_v40  ;;  %v6713_v48 = vadd.f32 %v6712_v41, %v2584_v45  ;;  %v7072_v49 = vmul.f32 %v2584_v45, %v2584_v45  ;;  %v10103_v50 = vpop.f32.mrb[34].mxu0  ;;  %v10636_v41 = vld [vmem:[%s11068_s8 + $0x360] sm:$0xff]  }
 0x197   : > { %v8901_v52 = vpack.c.bf16 %v10103_v50, %v10102_v43  ;;  %v2587_v53 = vpop.f32.mrb[35].mxu0  ;;  %v7075_v62 = vmul.f32 %v10103_v50, %v10103_v50  ;;  %10284 = vmatprep.mubr.bf16.mxu1 %v10636_v41 }
 0x198   : > { %v7423_v54 = vadd.f32 %v7422_v47, %v7072_v49  ;;  %v8896_v55 = vpack.c.bf16 %v2587_v53, %v2584_v45  ;;  %v6714_v56 = vadd.f32 %v6713_v48, %v2587_v53  ;;  %v7073_v57 = vmul.f32 %v2587_v53, %v2587_v53  ;;  %v10605_v48 = vld [vmem:[%s11068_s8 + $0x268] sm:$0xff]   ;;  %v10606_v53 = vld [vmem:[%s11068_s8 + $0x270] sm:$0xff]  }
 0x199   : > { %9709 = vst [vmem:[%s11137_s20 + $0x88] sm:$0xff] %v8901_v52   ;;  %10209 = vmatmul.mubr.bf16.gmra.mrb[140].mxu0 %v10599_v46  ;;  %v10637_v46 = vld [vmem:[%s11068_s8 + $0x368] sm:$0xff]  }
 0x19a   : > { %9708 = vst [vmem:[%s11137_s20 + $0x80] sm:$0xff] %v8896_v55   ;;  %v6715_v59 = vadd.f32 %v10102_v43, %v6714_v56  ;;  %v7424_v60 = vadd.f32 %v7423_v54, %v7073_v57  ;;  %10212 = vmatprep.mubr.bf16.mxu0 %v10600_v51  ;;  %10285 = vmatmul.mubr.bf16.gmra.mrb[40].mxu1 %v10637_v46 }
 0x19c   : > { %v6716_v63 = vadd.f32 %v10103_v50, %v6715_v59  ;;  %v7425_v0 = vadd.f32 %v7424_v60, %v7074_v58  ;;  %v10106_v1 = vpop.f32.mrb[36].mxu0 }
 0x19d   : > { %v2600_v3 = vpop.f32.mrb[37].mxu0  ;;  %v7078_v16 = vmul.f32 %v10106_v1, %v10106_v1 }
 0x19e   : > { %v7426_v5 = vadd.f32 %v7425_v0, %v7075_v62  ;;  %v6717_v6 = vadd.f32 %v6716_v63, %v2600_v3  ;;  %v7076_v7 = vmul.f32 %v2600_v3, %v2600_v3  ;;  %v10107_v8 = vpop.f32.mrb[38].mxu0  ;;  %v10638_v63 = vld [vmem:[%s11068_s8 + $0x370] sm:$0xff]  }
 0x19f   : > { %v8911_v10 = vpack.c.bf16 %v10107_v8, %v10106_v1  ;;  %v2603_v11 = vpop.f32.mrb[39].mxu0  ;;  %v7079_v20 = vmul.f32 %v10107_v8, %v10107_v8  ;;  %10288 = vmatprep.mubr.bf16.mxu1 %v10638_v63 }
 0x1a0   : > { %v7427_v12 = vadd.f32 %v7426_v5, %v7076_v7  ;;  %v8906_v13 = vpack.c.bf16 %v2603_v11, %v2600_v3  ;;  %v6718_v14 = vadd.f32 %v6717_v6, %v2603_v11  ;;  %v7077_v15 = vmul.f32 %v2603_v11, %v2603_v11  ;;  %v10607_v6 = vld [vmem:[%s11068_s8 + $0x278] sm:$0xff]   ;;  %v10608_v11 = vld [vmem:[%s11068_s8 + $0x280] sm:$0xff]  }
 0x1a1   : > { %9711 = vst [vmem:[%s11137_s20 + $0x98] sm:$0xff] %v8911_v10   ;;  %10213 = vmatmul.mubr.bf16.gmra.mrb[144].mxu0 %v10601_v4  ;;  %v10639_v4 = vld [vmem:[%s11068_s8 + $0x378] sm:$0xff]  }
 0x1a2   : > { %9710 = vst [vmem:[%s11137_s20 + $0x90] sm:$0xff] %v8906_v13   ;;  %v6719_v17 = vadd.f32 %v10106_v1, %v6718_v14  ;;  %v7428_v18 = vadd.f32 %v7427_v12, %v7077_v15  ;;  %10216 = vmatprep.mubr.bf16.mxu0 %v10602_v9  ;;  %10289 = vmatmul.mubr.bf16.gmra.mrb[44].mxu1 %v10639_v4 }
 0x1a4   : > { %v6720_v21 = vadd.f32 %v10107_v8, %v6719_v17  ;;  %v7429_v22 = vadd.f32 %v7428_v18, %v7078_v16  ;;  %v10110_v23 = vpop.f32.mrb[40].mxu0 }
 0x1a5   : > { %v2616_v25 = vpop.f32.mrb[41].mxu0  ;;  %v7082_v38 = vmul.f32 %v10110_v23, %v10110_v23 }
 0x1a6   : > { %v7430_v27 = vadd.f32 %v7429_v22, %v7079_v20  ;;  %v6721_v28 = vadd.f32 %v6720_v21, %v2616_v25  ;;  %v7080_v29 = vmul.f32 %v2616_v25, %v2616_v25  ;;  %v10111_v30 = vpop.f32.mrb[42].mxu0  ;;  %v10640_v21 = vld [vmem:[%s11068_s8 + $0x380] sm:$0xff]  }
 0x1a7   : > { %v8921_v32 = vpack.c.bf16 %v10111_v30, %v10110_v23  ;;  %v2619_v33 = vpop.f32.mrb[43].mxu0  ;;  %v7083_v42 = vmul.f32 %v10111_v30, %v10111_v30  ;;  %10292 = vmatprep.mubr.bf16.mxu1 %v10640_v21 }
 0x1a8   : > { %v7431_v34 = vadd.f32 %v7430_v27, %v7080_v29  ;;  %v8916_v35 = vpack.c.bf16 %v2619_v33, %v2616_v25  ;;  %v6722_v36 = vadd.f32 %v6721_v28, %v2619_v33  ;;  %v7081_v37 = vmul.f32 %v2619_v33, %v2619_v33  ;;  %v10609_v28 = vld [vmem:[%s11068_s8 + $0x288] sm:$0xff]   ;;  %v10610_v33 = vld [vmem:[%s11068_s8 + $0x290] sm:$0xff]  }
 0x1a9   : > { %9713 = vst [vmem:[%s11137_s20 + $0xa8] sm:$0xff] %v8921_v32   ;;  %10217 = vmatmul.mubr.bf16.gmra.mrb[148].mxu0 %v10603_v26  ;;  %v10641_v26 = vld [vmem:[%s11068_s8 + $0x388] sm:$0xff]  }
 0x1aa   : > { %9712 = vst [vmem:[%s11137_s20 + $0xa0] sm:$0xff] %v8916_v35   ;;  %v6723_v39 = vadd.f32 %v10110_v23, %v6722_v36  ;;  %v7432_v40 = vadd.f32 %v7431_v34, %v7081_v37  ;;  %10220 = vmatprep.mubr.bf16.mxu0 %v10604_v31  ;;  %10293 = vmatmul.mubr.bf16.gmra.mrb[48].mxu1 %v10641_v26 }
 0x1ac   : > { %v6724_v43 = vadd.f32 %v10111_v30, %v6723_v39  ;;  %v7433_v44 = vadd.f32 %v7432_v40, %v7082_v38  ;;  %v10114_v45 = vpop.f32.mrb[44].mxu0 }
 0x1ad   : > { %v2632_v47 = vpop.f32.mrb[45].mxu0  ;;  %v7086_v60 = vmul.f32 %v10114_v45, %v10114_v45 }
 0x1ae   : > { %v7434_v49 = vadd.f32 %v7433_v44, %v7083_v42  ;;  %v6725_v50 = vadd.f32 %v6724_v43, %v2632_v47  ;;  %v7084_v51 = vmul.f32 %v2632_v47, %v2632_v47  ;;  %v10115_v52 = vpop.f32.mrb[46].mxu0  ;;  %v10642_v43 = vld [vmem:[%s11068_s8 + $0x390] sm:$0xff]  }
 0x1af   : > { %v8931_v54 = vpack.c.bf16 %v10115_v52, %v10114_v45  ;;  %v2635_v55 = vpop.f32.mrb[47].mxu0  ;;  %v7087_v0 = vmul.f32 %v10115_v52, %v10115_v52  ;;  %10296 = vmatprep.mubr.bf16.mxu1 %v10642_v43 }
 0x1b0   : > { %v7435_v56 = vadd.f32 %v7434_v49, %v7084_v51  ;;  %v8926_v57 = vpack.c.bf16 %v2635_v55, %v2632_v47  ;;  %v6726_v58 = vadd.f32 %v6725_v50, %v2635_v55  ;;  %v7085_v59 = vmul.f32 %v2635_v55, %v2635_v55  ;;  %v10611_v50 = vld [vmem:[%s11068_s8 + $0x298] sm:$0xff]   ;;  %v10612_v55 = vld [vmem:[%s11068_s8 + $0x2a0] sm:$0xff]  }
 0x1b1   : > { %9715 = vst [vmem:[%s11137_s20 + $0xb8] sm:$0xff] %v8931_v54   ;;  %10221 = vmatmul.mubr.bf16.gmra.mrb[152].mxu0 %v10605_v48  ;;  %v10643_v48 = vld [vmem:[%s11068_s8 + $0x398] sm:$0xff]  }
 0x1b2   : > { %9714 = vst [vmem:[%s11137_s20 + $0xb0] sm:$0xff] %v8926_v57   ;;  %v6727_v61 = vadd.f32 %v10114_v45, %v6726_v58  ;;  %v7436_v62 = vadd.f32 %v7435_v56, %v7085_v59  ;;  %10224 = vmatprep.mubr.bf16.mxu0 %v10606_v53  ;;  %10297 = vmatmul.mubr.bf16.gmra.mrb[52].mxu1 %v10643_v48 }
 0x1b4   : > { %v6728_v1 = vadd.f32 %v10115_v52, %v6727_v61  ;;  %v7437_v2 = vadd.f32 %v7436_v62, %v7086_v60  ;;  %v10118_v3 = vpop.f32.mrb[48].mxu0 }
 0x1b5   : > { %v2648_v5 = vpop.f32.mrb[49].mxu0  ;;  %v7090_v18 = vmul.f32 %v10118_v3, %v10118_v3 }
 0x1b6   : > { %v7438_v7 = vadd.f32 %v7437_v2, %v7087_v0  ;;  %v6729_v8 = vadd.f32 %v6728_v1, %v2648_v5  ;;  %v7088_v9 = vmul.f32 %v2648_v5, %v2648_v5  ;;  %v10119_v10 = vpop.f32.mrb[50].mxu0  ;;  %v10644_v1 = vld [vmem:[%s11068_s8 + $0x3a0] sm:$0xff]  }
 0x1b7   : > { %v8941_v12 = vpack.c.bf16 %v10119_v10, %v10118_v3  ;;  %v2651_v13 = vpop.f32.mrb[51].mxu0  ;;  %v7091_v22 = vmul.f32 %v10119_v10, %v10119_v10  ;;  %10300 = vmatprep.mubr.bf16.mxu1 %v10644_v1 }
 0x1b8   : > { %v7439_v14 = vadd.f32 %v7438_v7, %v7088_v9  ;;  %v8936_v15 = vpack.c.bf16 %v2651_v13, %v2648_v5  ;;  %v6730_v16 = vadd.f32 %v6729_v8, %v2651_v13  ;;  %v7089_v17 = vmul.f32 %v2651_v13, %v2651_v13  ;;  %v10613_v8 = vld [vmem:[%s11068_s8 + $0x2a8] sm:$0xff]   ;;  %v10614_v13 = vld [vmem:[%s11068_s8 + $0x2b0] sm:$0xff]  }
 0x1b9   : > { %9717 = vst [vmem:[%s11137_s20 + $0xc8] sm:$0xff] %v8941_v12   ;;  %10225 = vmatmul.mubr.bf16.gmra.mrb[156].mxu0 %v10607_v6  ;;  %v10645_v6 = vld [vmem:[%s11068_s8 + $0x3a8] sm:$0xff]  }
 0x1ba   : > { %9716 = vst [vmem:[%s11137_s20 + $0xc0] sm:$0xff] %v8936_v15   ;;  %v6731_v19 = vadd.f32 %v10118_v3, %v6730_v16  ;;  %v7440_v20 = vadd.f32 %v7439_v14, %v7089_v17  ;;  %10228 = vmatprep.mubr.bf16.mxu0 %v10608_v11  ;;  %10301 = vmatmul.mubr.bf16.gmra.mrb[56].mxu1 %v10645_v6 }
 0x1bc   : > { %v6732_v23 = vadd.f32 %v10119_v10, %v6731_v19  ;;  %v7441_v24 = vadd.f32 %v7440_v20, %v7090_v18  ;;  %v10122_v25 = vpop.f32.mrb[52].mxu0 }
 0x1bd   : > { %v2664_v27 = vpop.f32.mrb[53].mxu0  ;;  %v7094_v40 = vmul.f32 %v10122_v25, %v10122_v25 }
 0x1be   : > { %v7442_v29 = vadd.f32 %v7441_v24, %v7091_v22  ;;  %v6733_v30 = vadd.f32 %v6732_v23, %v2664_v27  ;;  %v7092_v31 = vmul.f32 %v2664_v27, %v2664_v27  ;;  %v10123_v32 = vpop.f32.mrb[54].mxu0  ;;  %v10646_v23 = vld [vmem:[%s11068_s8 + $0x3b0] sm:$0xff]  }
 0x1bf   : > { %v8951_v34 = vpack.c.bf16 %v10123_v32, %v10122_v25  ;;  %v2667_v35 = vpop.f32.mrb[55].mxu0  ;;  %v7095_v44 = vmul.f32 %v10123_v32, %v10123_v32  ;;  %10304 = vmatprep.mubr.bf16.mxu1 %v10646_v23 }
 0x1c0   : > { %v7443_v36 = vadd.f32 %v7442_v29, %v7092_v31  ;;  %v8946_v37 = vpack.c.bf16 %v2667_v35, %v2664_v27  ;;  %v6734_v38 = vadd.f32 %v6733_v30, %v2667_v35  ;;  %v7093_v39 = vmul.f32 %v2667_v35, %v2667_v35  ;;  %v10615_v30 = vld [vmem:[%s11068_s8 + $0x2b8] sm:$0xff]  }
 0x1c1   : > { %9719 = vst [vmem:[%s11137_s20 + $0xd8] sm:$0xff] %v8951_v34   ;;  %10229 = vmatmul.mubr.bf16.gmra.mrb[160].mxu0 %v10609_v28  ;;  %v10647_v28 = vld [vmem:[%s11068_s8 + $0x3b8] sm:$0xff]  }
 0x1c2   : > { %9718 = vst [vmem:[%s11137_s20 + $0xd0] sm:$0xff] %v8946_v37   ;;  %v6735_v41 = vadd.f32 %v10122_v25, %v6734_v38  ;;  %v7444_v42 = vadd.f32 %v7443_v36, %v7093_v39  ;;  %10232 = vmatprep.mubr.bf16.mxu0 %v10610_v33  ;;  %10305 = vmatmul.mubr.bf16.gmra.mrb[60].mxu1 %v10647_v28 }
 0x1c4   : > { %v6736_v45 = vadd.f32 %v10123_v32, %v6735_v41  ;;  %v7445_v46 = vadd.f32 %v7444_v42, %v7094_v40  ;;  %v10126_v47 = vpop.f32.mrb[56].mxu0 }
 0x1c5   : > { %v2680_v49 = vpop.f32.mrb[57].mxu0  ;;  %v7098_v62 = vmul.f32 %v10126_v47, %v10126_v47 }
 0x1c6   : > { %v7446_v51 = vadd.f32 %v7445_v46, %v7095_v44  ;;  %v6737_v52 = vadd.f32 %v6736_v45, %v2680_v49  ;;  %v7096_v53 = vmul.f32 %v2680_v49, %v2680_v49  ;;  %v10127_v54 = vpop.f32.mrb[58].mxu0  ;;  %v10648_v44 = vld [vmem:[%s11068_s8 + $0x3c0] sm:$0xff]  }
 0x1c7   : > { %v8961_v56 = vpack.c.bf16 %v10127_v54, %v10126_v47  ;;  %v2683_v57 = vpop.f32.mrb[59].mxu0  ;;  %v7099_v2 = vmul.f32 %v10127_v54, %v10127_v54  ;;  %10308 = vmatprep.mubr.bf16.mxu1 %v10648_v44 }
 0x1c8   : > { %v7447_v58 = vadd.f32 %v7446_v51, %v7096_v53  ;;  %v8956_v59 = vpack.c.bf16 %v2683_v57, %v2680_v49  ;;  %v6738_v60 = vadd.f32 %v6737_v52, %v2683_v57  ;;  %v7097_v61 = vmul.f32 %v2683_v57, %v2683_v57  ;;  %v10649_v49 = vld [vmem:[%s11068_s8 + $0x3c8] sm:$0xff]  }
 0x1c9   : > { %9721 = vst [vmem:[%s11137_s20 + $0xe8] sm:$0xff] %v8961_v56   ;;  %10233 = vmatmul.mubr.bf16.gmra.mrb[164].mxu0 %v10611_v50 }
 0x1ca   : > { %9720 = vst [vmem:[%s11137_s20 + $0xe0] sm:$0xff] %v8956_v59   ;;  %v6739_v63 = vadd.f32 %v10126_v47, %v6738_v60  ;;  %v7448_v0 = vadd.f32 %v7447_v58, %v7097_v61  ;;  %10236 = vmatprep.mubr.bf16.mxu0 %v10612_v55  ;;  %10309 = vmatmul.mubr.bf16.gmra.mrb[64].mxu1 %v10649_v49 }
 0x1cc   : > { %v6740_v3 = vadd.f32 %v10127_v54, %v6739_v63  ;;  %v7449_v4 = vadd.f32 %v7448_v0, %v7098_v62  ;;  %v10130_v5 = vpop.f32.mrb[60].mxu0  ;;  %v10650_v0 = vld [vmem:[%s11068_s8 + $0x3d0] sm:$0xff]  }
 0x1cd   : > { %v2696_v7 = vpop.f32.mrb[61].mxu0  ;;  %v7102_v20 = vmul.f32 %v10130_v5, %v10130_v5  ;;  %10312 = vmatprep.mubr.bf16.mxu1 %v10650_v0 }
 0x1ce   : > { %v7450_v9 = vadd.f32 %v7449_v4, %v7099_v2  ;;  %v6741_v10 = vadd.f32 %v6740_v3, %v2696_v7  ;;  %v7100_v11 = vmul.f32 %v2696_v7, %v2696_v7  ;;  %v10131_v12 = vpop.f32.mrb[62].mxu0 }
 0x1cf   : > { %v8971_v14 = vpack.c.bf16 %v10131_v12, %v10130_v5  ;;  %v2699_v15 = vpop.f32.mrb[63].mxu0  ;;  %v7103_v24 = vmul.f32 %v10131_v12, %v10131_v12 }
 0x1d0   : > { %v7451_v16 = vadd.f32 %v7450_v9, %v7100_v11  ;;  %v8966_v17 = vpack.c.bf16 %v2699_v15, %v2696_v7  ;;  %v6742_v18 = vadd.f32 %v6741_v10, %v2699_v15  ;;  %v7101_v19 = vmul.f32 %v2699_v15, %v2699_v15 }
 0x1d1   : > { %9723 = vst [vmem:[%s11137_s20 + $0xf8] sm:$0xff] %v8971_v14   ;;  %10237 = vmatmul.mubr.bf16.gmra.mrb[168].mxu0 %v10613_v8 }
 0x1d2   : > { %9722 = vst [vmem:[%s11137_s20 + $0xf0] sm:$0xff] %v8966_v17   ;;  %v6743_v21 = vadd.f32 %v10130_v5, %v6742_v18  ;;  %v7452_v22 = vadd.f32 %v7451_v16, %v7101_v19  ;;  %10240 = vmatprep.mubr.bf16.mxu0 %v10614_v13  ;;  %v10651_v5 = vld [vmem:[%s11068_s8 + $0x3d8] sm:$0xff]  }
 0x1d3   : > { %10313 = vmatmul.mubr.bf16.gmra.mrb[68].mxu1 %v10651_v5 }
 0x1d4   : > { %v6744_v25 = vadd.f32 %v10131_v12, %v6743_v21  ;;  %v7453_v26 = vadd.f32 %v7452_v22, %v7102_v20  ;;  %v10134_v27 = vpop.f32.mrb[64].mxu0  ;;  %v10652_v20 = vld [vmem:[%s11068_s8 + $0x3e0] sm:$0xff]  }
 0x1d5   : > { %v2712_v29 = vpop.f32.mrb[65].mxu0  ;;  %v7106_v41 = vmul.f32 %v10134_v27, %v10134_v27  ;;  %10316 = vmatprep.mubr.bf16.mxu1 %v10652_v20 }
 0x1d6   : > { %v7454_v31 = vadd.f32 %v7453_v26, %v7103_v24  ;;  %v6745_v32 = vadd.f32 %v6744_v25, %v2712_v29  ;;  %v7104_v33 = vmul.f32 %v2712_v29, %v2712_v29  ;;  %v10135_v34 = vpop.f32.mrb[66].mxu0  ;;  %v10653_v25 = vld [vmem:[%s11068_s8 + $0x3e8] sm:$0xff]  }
 0x1d7   : > { %v8981_v35 = vpack.c.bf16 %v10135_v34, %v10134_v27  ;;  %v2715_v36 = vpop.f32.mrb[67].mxu0  ;;  %v7107_v45 = vmul.f32 %v10135_v34, %v10135_v34 }
 0x1d8   : > { %v7455_v37 = vadd.f32 %v7454_v31, %v7104_v33  ;;  %v8976_v38 = vpack.c.bf16 %v2715_v36, %v2712_v29  ;;  %v6746_v39 = vadd.f32 %v6745_v32, %v2715_v36  ;;  %v7105_v40 = vmul.f32 %v2715_v36, %v2715_v36 }
 0x1d9   : > { %9725 = vst [vmem:[%s11137_s20 + $0x108] sm:$0xff] %v8981_v35   ;;  %10241 = vmatmul.mubr.bf16.gmra.mrb[172].mxu0 %v10615_v30 }
 0x1da   : > { %9724 = vst [vmem:[%s11137_s20 + $0x100] sm:$0xff] %v8976_v38   ;;  %v6747_v42 = vadd.f32 %v10134_v27, %v6746_v39  ;;  %v7456_v43 = vadd.f32 %v7455_v37, %v7105_v40  ;;  %v10654_v40 = vld [vmem:[%s11068_s8 + $0x3f0] sm:$0xff]  }
 0x1db   : > { %10317 = vmatmul.mubr.bf16.gmra.mrb[72].mxu1 %v10653_v25 }
 0x1dc   : > { %v6748_v46 = vadd.f32 %v10135_v34, %v6747_v42  ;;  %v7457_v47 = vadd.f32 %v7456_v43, %v7106_v41  ;;  %v10138_v48 = vpop.f32.mrb[68].mxu0  ;;  %10320 = vmatprep.mubr.bf16.mxu1 %v10654_v40 }
 0x1dd   : > { %v2728_v50 = vpop.f32.mrb[69].mxu0  ;;  %v7110_v61 = vmul.f32 %v10138_v48, %v10138_v48 }
 0x1de   : > { %v7458_v51 = vadd.f32 %v7457_v47, %v7107_v45  ;;  %v6749_v52 = vadd.f32 %v6748_v46, %v2728_v50  ;;  %v7108_v53 = vmul.f32 %v2728_v50, %v2728_v50  ;;  %v10139_v54 = vpop.f32.mrb[70].mxu0  ;;  %v10655_v45 = vld [vmem:[%s11068_s8 + $0x3f8] sm:$0xff]  }
 0x1df   : > { %v8991_v55 = vpack.c.bf16 %v10139_v54, %v10138_v48  ;;  %v2731_v56 = vpop.f32.mrb[71].mxu0  ;;  %v7111_v1 = vmul.f32 %v10139_v54, %v10139_v54 }
 0x1e0   : > { %v7459_v57 = vadd.f32 %v7458_v51, %v7108_v53  ;;  %v8986_v58 = vpack.c.bf16 %v2731_v56, %v2728_v50  ;;  %v6750_v59 = vadd.f32 %v6749_v52, %v2731_v56  ;;  %v7109_v60 = vmul.f32 %v2731_v56, %v2731_v56 }
 0x1e1   : > { %9727 = vst [vmem:[%s11137_s20 + $0x118] sm:$0xff] %v8991_v55  }
 0x1e2   : > { %9726 = vst [vmem:[%s11137_s20 + $0x110] sm:$0xff] %v8986_v58   ;;  %v6751_v62 = vadd.f32 %v10138_v48, %v6750_v59  ;;  %v7460_v63 = vadd.f32 %v7459_v57, %v7109_v60  ;;  %v10656_v60 = vld [vmem:[%s11068_s8 + $0x400] sm:$0xff]  }
 0x1e3   : > { %10321 = vmatmul.mubr.bf16.gmra.mrb[76].mxu1 %v10655_v45 }
 0x1e4   : > { %v6752_v2 = vadd.f32 %v10139_v54, %v6751_v62  ;;  %v7461_v3 = vadd.f32 %v7460_v63, %v7110_v61  ;;  %v10142_v4 = vpop.f32.mrb[72].mxu0  ;;  %10324 = vmatprep.mubr.bf16.mxu1 %v10656_v60 }
 0x1e5   : > { %v2744_v6 = vpop.f32.mrb[73].mxu0  ;;  %v7114_v17 = vmul.f32 %v10142_v4, %v10142_v4 }
 0x1e6   : > { %v7462_v7 = vadd.f32 %v7461_v3, %v7111_v1  ;;  %v6753_v8 = vadd.f32 %v6752_v2, %v2744_v6  ;;  %v7112_v9 = vmul.f32 %v2744_v6, %v2744_v6  ;;  %v10143_v10 = vpop.f32.mrb[74].mxu0  ;;  %v10657_v1 = vld [vmem:[%s11068_s8 + $0x408] sm:$0xff]  }
 0x1e7   : > { %v9001_v11 = vpack.c.bf16 %v10143_v10, %v10142_v4  ;;  %v2747_v12 = vpop.f32.mrb[75].mxu0  ;;  %v7115_v21 = vmul.f32 %v10143_v10, %v10143_v10 }
 0x1e8   : > { %v7463_v13 = vadd.f32 %v7462_v7, %v7112_v9  ;;  %v8996_v14 = vpack.c.bf16 %v2747_v12, %v2744_v6  ;;  %v6754_v15 = vadd.f32 %v6753_v8, %v2747_v12  ;;  %v7113_v16 = vmul.f32 %v2747_v12, %v2747_v12 }
 0x1e9   : > { %9729 = vst [vmem:[%s11137_s20 + $0x128] sm:$0xff] %v9001_v11  }
 0x1ea   : > { %9728 = vst [vmem:[%s11137_s20 + $0x120] sm:$0xff] %v8996_v14   ;;  %v6755_v18 = vadd.f32 %v10142_v4, %v6754_v15  ;;  %v7464_v19 = vadd.f32 %v7463_v13, %v7113_v16  ;;  %v10658_v16 = vld [vmem:[%s11068_s8 + $0x410] sm:$0xff]  }
 0x1eb   : > { %10325 = vmatmul.mubr.bf16.gmra.mrb[80].mxu1 %v10657_v1 }
 0x1ec   : > { %v6756_v22 = vadd.f32 %v10143_v10, %v6755_v18  ;;  %v7465_v23 = vadd.f32 %v7464_v19, %v7114_v17  ;;  %v10146_v24 = vpop.f32.mrb[76].mxu0  ;;  %10328 = vmatprep.mubr.bf16.mxu1 %v10658_v16 }
 0x1ed   : > { %v2760_v26 = vpop.f32.mrb[77].mxu0  ;;  %v7118_v37 = vmul.f32 %v10146_v24, %v10146_v24 }
 0x1ee   : > { %v7466_v27 = vadd.f32 %v7465_v23, %v7115_v21  ;;  %v6757_v28 = vadd.f32 %v6756_v22, %v2760_v26  ;;  %v7116_v29 = vmul.f32 %v2760_v26, %v2760_v26  ;;  %v10147_v30 = vpop.f32.mrb[78].mxu0  ;;  %v10659_v21 = vld [vmem:[%s11068_s8 + $0x418] sm:$0xff]  }
 0x1ef   : > { %v9011_v31 = vpack.c.bf16 %v10147_v30, %v10146_v24  ;;  %v2763_v32 = vpop.f32.mrb[79].mxu0  ;;  %v7119_v41 = vmul.f32 %v10147_v30, %v10147_v30 }
 0x1f0   : > { %v7467_v33 = vadd.f32 %v7466_v27, %v7116_v29  ;;  %v9006_v34 = vpack.c.bf16 %v2763_v32, %v2760_v26  ;;  %v6758_v35 = vadd.f32 %v6757_v28, %v2763_v32  ;;  %v7117_v36 = vmul.f32 %v2763_v32, %v2763_v32 }
 0x1f1   : > { %9731 = vst [vmem:[%s11137_s20 + $0x138] sm:$0xff] %v9011_v31  }
 0x1f2   : > { %9730 = vst [vmem:[%s11137_s20 + $0x130] sm:$0xff] %v9006_v34   ;;  %v6759_v38 = vadd.f32 %v10146_v24, %v6758_v35  ;;  %v7468_v39 = vadd.f32 %v7467_v33, %v7117_v36  ;;  %v10660_v36 = vld [vmem:[%s11068_s8 + $0x420] sm:$0xff]  }
 0x1f3   : > { %10329 = vmatmul.mubr.bf16.gmra.mrb[84].mxu1 %v10659_v21 }
 0x1f4   : > { %v6760_v42 = vadd.f32 %v10147_v30, %v6759_v38  ;;  %v7469_v43 = vadd.f32 %v7468_v39, %v7118_v37  ;;  %v10150_v44 = vpop.f32.mrb[80].mxu0  ;;  %10332 = vmatprep.mubr.bf16.mxu1 %v10660_v36 }
 0x1f5   : > { %v2776_v46 = vpop.f32.mrb[81].mxu0  ;;  %v7122_v57 = vmul.f32 %v10150_v44, %v10150_v44 }
 0x1f6   : > { %v7470_v47 = vadd.f32 %v7469_v43, %v7119_v41  ;;  %v6761_v48 = vadd.f32 %v6760_v42, %v2776_v46  ;;  %v7120_v49 = vmul.f32 %v2776_v46, %v2776_v46  ;;  %v10151_v50 = vpop.f32.mrb[82].mxu0  ;;  %v10661_v41 = vld [vmem:[%s11068_s8 + $0x428] sm:$0xff]  }
 0x1f7   : > { %v9021_v51 = vpack.c.bf16 %v10151_v50, %v10150_v44  ;;  %v2779_v52 = vpop.f32.mrb[83].mxu0  ;;  %v7123_v61 = vmul.f32 %v10151_v50, %v10151_v50 }
 0x1f8   : > { %v7471_v53 = vadd.f32 %v7470_v47, %v7120_v49  ;;  %v9016_v54 = vpack.c.bf16 %v2779_v52, %v2776_v46  ;;  %v6762_v55 = vadd.f32 %v6761_v48, %v2779_v52  ;;  %v7121_v56 = vmul.f32 %v2779_v52, %v2779_v52 }
 0x1f9   : > { %9733 = vst [vmem:[%s11137_s20 + $0x148] sm:$0xff] %v9021_v51  }
 0x1fa   : > { %9732 = vst [vmem:[%s11137_s20 + $0x140] sm:$0xff] %v9016_v54   ;;  %v6763_v58 = vadd.f32 %v10150_v44, %v6762_v55  ;;  %v7472_v59 = vadd.f32 %v7471_v53, %v7121_v56  ;;  %v10662_v56 = vld [vmem:[%s11068_s8 + $0x430] sm:$0xff]  }
 0x1fb   : > { %10333 = vmatmul.mubr.bf16.gmra.mrb[88].mxu1 %v10661_v41 }
 0x1fc   : > { %v6764_v62 = vadd.f32 %v10151_v50, %v6763_v58  ;;  %v7473_v63 = vadd.f32 %v7472_v59, %v7122_v57  ;;  %v10154_v0 = vpop.f32.mrb[84].mxu0  ;;  %10336 = vmatprep.mubr.bf16.mxu1 %v10662_v56 }
 0x1fd   : > { %v2792_v2 = vpop.f32.mrb[85].mxu0  ;;  %v7126_v13 = vmul.f32 %v10154_v0, %v10154_v0 }
 0x1fe   : > { %v7474_v3 = vadd.f32 %v7473_v63, %v7123_v61  ;;  %v6765_v4 = vadd.f32 %v6764_v62, %v2792_v2  ;;  %v7124_v5 = vmul.f32 %v2792_v2, %v2792_v2  ;;  %v10155_v6 = vpop.f32.mrb[86].mxu0  ;;  %v10663_v61 = vld [vmem:[%s11068_s8 + $0x438] sm:$0xff]  }
 0x1ff   : > { %v9031_v7 = vpack.c.bf16 %v10155_v6, %v10154_v0  ;;  %v2795_v8 = vpop.f32.mrb[87].mxu0  ;;  %v7127_v17 = vmul.f32 %v10155_v6, %v10155_v6 }
 0x200   : > { %v7475_v9 = vadd.f32 %v7474_v3, %v7124_v5  ;;  %v9026_v10 = vpack.c.bf16 %v2795_v8, %v2792_v2  ;;  %v6766_v11 = vadd.f32 %v6765_v4, %v2795_v8  ;;  %v7125_v12 = vmul.f32 %v2795_v8, %v2795_v8 }
 0x201   : > { %9735 = vst [vmem:[%s11137_s20 + $0x158] sm:$0xff] %v9031_v7  }
 0x202   : > { %9734 = vst [vmem:[%s11137_s20 + $0x150] sm:$0xff] %v9026_v10   ;;  %v6767_v14 = vadd.f32 %v10154_v0, %v6766_v11  ;;  %v7476_v15 = vadd.f32 %v7475_v9, %v7125_v12  ;;  %v10664_v12 = vld [vmem:[%s11068_s8 + $0x440] sm:$0xff]  }
 0x203   : > { %10337 = vmatmul.mubr.bf16.gmra.mrb[92].mxu1 %v10663_v61 }
 0x204   : > { %v6768_v18 = vadd.f32 %v10155_v6, %v6767_v14  ;;  %v7477_v19 = vadd.f32 %v7476_v15, %v7126_v13  ;;  %v10158_v20 = vpop.f32.mrb[88].mxu0  ;;  %10340 = vmatprep.mubr.bf16.mxu1 %v10664_v12 }
 0x205   : > { %v2808_v22 = vpop.f32.mrb[89].mxu0  ;;  %v7130_v33 = vmul.f32 %v10158_v20, %v10158_v20 }
 0x206   : > { %v7478_v23 = vadd.f32 %v7477_v19, %v7127_v17  ;;  %v6769_v24 = vadd.f32 %v6768_v18, %v2808_v22  ;;  %v7128_v25 = vmul.f32 %v2808_v22, %v2808_v22  ;;  %v10159_v26 = vpop.f32.mrb[90].mxu0  ;;  %v10665_v17 = vld [vmem:[%s11068_s8 + $0x448] sm:$0xff]  }
 0x207   : > { %v9041_v27 = vpack.c.bf16 %v10159_v26, %v10158_v20  ;;  %v2811_v28 = vpop.f32.mrb[91].mxu0  ;;  %v7131_v37 = vmul.f32 %v10159_v26, %v10159_v26 }
 0x208   : > { %v7479_v29 = vadd.f32 %v7478_v23, %v7128_v25  ;;  %v9036_v30 = vpack.c.bf16 %v2811_v28, %v2808_v22  ;;  %v6770_v31 = vadd.f32 %v6769_v24, %v2811_v28  ;;  %v7129_v32 = vmul.f32 %v2811_v28, %v2811_v28 }
 0x209   : > { %9737 = vst [vmem:[%s11137_s20 + $0x168] sm:$0xff] %v9041_v27  }
 0x20a   : > { %9736 = vst [vmem:[%s11137_s20 + $0x160] sm:$0xff] %v9036_v30   ;;  %v6771_v34 = vadd.f32 %v10158_v20, %v6770_v31  ;;  %v7480_v35 = vadd.f32 %v7479_v29, %v7129_v32  ;;  %v10666_v32 = vld [vmem:[%s11068_s8 + $0x450] sm:$0xff]  }
 0x20b   : > { %10341 = vmatmul.mubr.bf16.gmra.mrb[96].mxu1 %v10665_v17  ;;  %v10671_v17 = vld [vmem:[%s11068_s8 + $0x478] sm:$0xff]  }
 0x20c   : > { %v6772_v38 = vadd.f32 %v10159_v26, %v6771_v34  ;;  %v7481_v39 = vadd.f32 %v7480_v35, %v7130_v33  ;;  %v10162_v40 = vpop.f32.mrb[92].mxu0  ;;  %10344 = vmatprep.mubr.bf16.mxu1 %v10666_v32 }
 0x20d   : > { %v2824_v42 = vpop.f32.mrb[93].mxu0  ;;  %v7134_v53 = vmul.f32 %v10162_v40, %v10162_v40 }
 0x20e   : > { %v7482_v43 = vadd.f32 %v7481_v39, %v7131_v37  ;;  %v6773_v44 = vadd.f32 %v6772_v38, %v2824_v42  ;;  %v7132_v45 = vmul.f32 %v2824_v42, %v2824_v42  ;;  %v10163_v46 = vpop.f32.mrb[94].mxu0  ;;  %v10667_v37 = vld [vmem:[%s11068_s8 + $0x458] sm:$0xff]  }
 0x20f   : > { %v9051_v47 = vpack.c.bf16 %v10163_v46, %v10162_v40  ;;  %v2827_v48 = vpop.f32.mrb[95].mxu0  ;;  %v7135_v57 = vmul.f32 %v10163_v46, %v10163_v46 }
 0x210   : > { %v7483_v49 = vadd.f32 %v7482_v43, %v7132_v45  ;;  %v9046_v50 = vpack.c.bf16 %v2827_v48, %v2824_v42  ;;  %v6774_v51 = vadd.f32 %v6773_v44, %v2827_v48  ;;  %v7133_v52 = vmul.f32 %v2827_v48, %v2827_v48 }
 0x211   : > { %9739 = vst [vmem:[%s11137_s20 + $0x178] sm:$0xff] %v9051_v47  }
 0x212   : > { %9738 = vst [vmem:[%s11137_s20 + $0x170] sm:$0xff] %v9046_v50   ;;  %v6775_v54 = vadd.f32 %v10162_v40, %v6774_v51  ;;  %v7484_v55 = vadd.f32 %v7483_v49, %v7133_v52  ;;  %v10668_v52 = vld [vmem:[%s11068_s8 + $0x460] sm:$0xff]  }
 0x213   : > { %10345 = vmatmul.mubr.bf16.gmra.mrb[100].mxu1 %v10667_v37  ;;  %v10672_v37 = vld [vmem:[%s11068_s8 + $0x480] sm:$0xff]  }
 0x214   : > { %v6776_v58 = vadd.f32 %v10163_v46, %v6775_v54  ;;  %v7485_v59 = vadd.f32 %v7484_v55, %v7134_v53  ;;  %v10166_v60 = vpop.f32.mrb[96].mxu0  ;;  %10348 = vmatprep.mubr.bf16.mxu1 %v10668_v52 }
 0x215   : > { %v2840_v62 = vpop.f32.mrb[97].mxu0  ;;  %v7138_v9 = vmul.f32 %v10166_v60, %v10166_v60 }
 0x216   : > { %v7486_v63 = vadd.f32 %v7485_v59, %v7135_v57  ;;  %v6777_v0 = vadd.f32 %v6776_v58, %v2840_v62  ;;  %v7136_v1 = vmul.f32 %v2840_v62, %v2840_v62  ;;  %v10167_v2 = vpop.f32.mrb[98].mxu0  ;;  %v10669_v57 = vld [vmem:[%s11068_s8 + $0x468] sm:$0xff]  }
 0x217   : > { %v9061_v3 = vpack.c.bf16 %v10167_v2, %v10166_v60  ;;  %v2843_v4 = vpop.f32.mrb[99].mxu0  ;;  %v7139_v13 = vmul.f32 %v10167_v2, %v10167_v2 }
 0x218   : > { %v7487_v5 = vadd.f32 %v7486_v63, %v7136_v1  ;;  %v9056_v6 = vpack.c.bf16 %v2843_v4, %v2840_v62  ;;  %v6778_v7 = vadd.f32 %v6777_v0, %v2843_v4  ;;  %v7137_v8 = vmul.f32 %v2843_v4, %v2843_v4 }
 0x219   : > { %9741 = vst [vmem:[%s11137_s20 + $0x188] sm:$0xff] %v9061_v3  }
 0x21a   : > { %9740 = vst [vmem:[%s11137_s20 + $0x180] sm:$0xff] %v9056_v6   ;;  %v6779_v10 = vadd.f32 %v10166_v60, %v6778_v7  ;;  %v7488_v11 = vadd.f32 %v7487_v5, %v7137_v8  ;;  %v11279_v5 = vpop.f32.mrb[0].mxu1 }
 0x21b   : > { %10349 = vmatmul.mubr.bf16.gmra.mrb[104].mxu1 %v10669_v57 }
 0x21c   : > { %v6780_v14 = vadd.f32 %v10167_v2, %v6779_v10  ;;  %v7489_v15 = vadd.f32 %v7488_v11, %v7138_v9  ;;  %v10170_v16 = vpop.f32.mrb[100].mxu0  ;;  %v11282_v9 = vpop.f32.mrb[1].mxu1  ;;  %v10670_v11 = vld [vmem:[%s11068_s8 + $0x470] sm:$0xff]  }
 0x21d   : > { %v2856_v18 = vpop.f32.mrb[101].mxu0  ;;  %v7142_v29 = vmul.f32 %v10170_v16, %v10170_v16  ;;  %v11284_v10 = vpop.f32.mrb[2].mxu1  ;;  %10352 = vmatprep.mubr.bf16.mxu1 %v10670_v11 }
 0x21e   : > { %v7490_v19 = vadd.f32 %v7489_v15, %v7139_v13  ;;  %v6781_v20 = vadd.f32 %v6780_v14, %v2856_v18  ;;  %v7140_v21 = vmul.f32 %v2856_v18, %v2856_v18  ;;  %v10171_v22 = vpop.f32.mrb[102].mxu0 }
 0x21f   : > { %v9071_v23 = vpack.c.bf16 %v10171_v22, %v10170_v16  ;;  %v2859_v24 = vpop.f32.mrb[103].mxu0  ;;  %v7143_v33 = vmul.f32 %v10171_v22, %v10171_v22 }
 0x220   : > { %v7491_v25 = vadd.f32 %v7490_v19, %v7140_v21  ;;  %v9066_v26 = vpack.c.bf16 %v2859_v24, %v2856_v18  ;;  %v6782_v27 = vadd.f32 %v6781_v20, %v2859_v24  ;;  %v7141_v28 = vmul.f32 %v2859_v24, %v2859_v24 }
 0x221   : > { %9743 = vst [vmem:[%s11137_s20 + $0x198] sm:$0xff] %v9071_v23   ;;  %v9261_v19 = vpack.c.bf16 %v11284_v10, %v11279_v5 }
 0x222   : > { %9742 = vst [vmem:[%s11137_s20 + $0x190] sm:$0xff] %v9066_v26   ;;  %v6783_v30 = vadd.f32 %v10170_v16, %v6782_v27  ;;  %v7492_v31 = vadd.f32 %v7491_v25, %v7141_v28  ;;  %v11287_v16 = vpop.f32.mrb[3].mxu1 }
 0x223   : > { %10353 = vmatmul.mubr.bf16.gmra.mrb[108].mxu1 %v10671_v17  ;;  %9781 = vst [vmem:[%s11137_s20 + $0x2c8] sm:$0xff] %v9261_v19   ;;  %v9256_v26 = vpack.c.bf16 %v11287_v16, %v11282_v9 }
 0x224   : > { %v6784_v34 = vadd.f32 %v10171_v22, %v6783_v30  ;;  %v7493_v35 = vadd.f32 %v7492_v31, %v7142_v29  ;;  %v10174_v36 = vpop.f32.mrb[104].mxu0  ;;  %v11297_v31 = vpop.f32.mrb[4].mxu1  ;;  %10356 = vmatprep.mubr.bf16.mxu1 %v10672_v37 }
 0x225   : > { %v2872_v38 = vpop.f32.mrb[105].mxu0  ;;  %v7146_v49 = vmul.f32 %v10174_v36, %v10174_v36  ;;  %9780 = vst [vmem:[%s11137_s20 + $0x2c0] sm:$0xff] %v9256_v26  }
 0x226   : > { %v7494_v39 = vadd.f32 %v7493_v35, %v7143_v33  ;;  %v6785_v40 = vadd.f32 %v6784_v34, %v2872_v38  ;;  %v7144_v41 = vmul.f32 %v2872_v38, %v2872_v38  ;;  %v10175_v42 = vpop.f32.mrb[106].mxu0  ;;  %v11300_v35 = vpop.f32.mrb[5].mxu1 }
 0x227   : > { %v9081_v43 = vpack.c.bf16 %v10175_v42, %v10174_v36  ;;  %v2875_v44 = vpop.f32.mrb[107].mxu0  ;;  %v7147_v53 = vmul.f32 %v10175_v42, %v10175_v42 }
 0x228   : > { %v7495_v45 = vadd.f32 %v7494_v39, %v7144_v41  ;;  %v9076_v46 = vpack.c.bf16 %v2875_v44, %v2872_v38  ;;  %v6786_v47 = vadd.f32 %v6785_v40, %v2875_v44  ;;  %v7145_v48 = vmul.f32 %v2875_v44, %v2875_v44 }
 0x229   : > { %9745 = vst [vmem:[%s11137_s20 + $0x1a8] sm:$0xff] %v9081_v43   ;;  %v10673_v43 = vld [vmem:[%s11068_s8 + $0x488] sm:$0xff]  }
 0x22a   : > { %9744 = vst [vmem:[%s11137_s20 + $0x1a0] sm:$0xff] %v9076_v46   ;;  %v6787_v50 = vadd.f32 %v10174_v36, %v6786_v47  ;;  %v7496_v51 = vadd.f32 %v7495_v45, %v7145_v48  ;;  %v11302_v36 = vpop.f32.mrb[6].mxu1 }
 0x22b   : > { %v9271_v45 = vpack.c.bf16 %v11302_v36, %v11297_v31  ;;  %10357 = vmatmul.mubr.bf16.gmra.mrb[112].mxu1 %v10673_v43 }
 0x22c   : > { %v6788_v54 = vadd.f32 %v10175_v42, %v6787_v50  ;;  %v7497_v55 = vadd.f32 %v7496_v51, %v7146_v49  ;;  %v10178_v56 = vpop.f32.mrb[108].mxu0  ;;  %v11305_v42 = vpop.f32.mrb[7].mxu1 }
 0x22d   : > { %v2888_v58 = vpop.f32.mrb[109].mxu0  ;;  %v7150_v6 = vmul.f32 %v10178_v56, %v10178_v56  ;;  %9783 = vst [vmem:[%s11137_s20 + $0x2d8] sm:$0xff] %v9271_v45   ;;  %v9266_v52 = vpack.c.bf16 %v11305_v42, %v11300_v35  ;;  %v11315_v57 = vpop.f32.mrb[8].mxu1 }
 0x22e   : > { %v7498_v59 = vadd.f32 %v7497_v55, %v7147_v53  ;;  %v6789_v60 = vadd.f32 %v6788_v54, %v2888_v58  ;;  %v7148_v61 = vmul.f32 %v2888_v58, %v2888_v58  ;;  %v10179_v62 = vpop.f32.mrb[110].mxu0 }
 0x22f   : > { %v9091_v63 = vpack.c.bf16 %v10179_v62, %v10178_v56  ;;  %v2891_v0 = vpop.f32.mrb[111].mxu0  ;;  %v7151_v12 = vmul.f32 %v10179_v62, %v10179_v62  ;;  %9782 = vst [vmem:[%s11137_s20 + $0x2d0] sm:$0xff] %v9266_v52  }
 0x230   : > { %v7499_v1 = vadd.f32 %v7498_v59, %v7148_v61  ;;  %v9086_v2 = vpack.c.bf16 %v2891_v0, %v2888_v58  ;;  %v6790_v3 = vadd.f32 %v6789_v60, %v2891_v0  ;;  %v7149_v4 = vmul.f32 %v2891_v0, %v2891_v0  ;;  %v11318_v61 = vpop.f32.mrb[9].mxu1 }
 0x231   : > { %9747 = vst [vmem:[%s11137_s20 + $0x1b8] sm:$0xff] %v9091_v63   ;;  %v10674_v63 = vld [vmem:[%s11068_s8 + $0x490] sm:$0xff]  }
 0x232   : > { %9746 = vst [vmem:[%s11137_s20 + $0x1b0] sm:$0xff] %v9086_v2   ;;  %v6791_v7 = vadd.f32 %v10178_v56, %v6790_v3  ;;  %v7500_v8 = vadd.f32 %v7499_v1, %v7149_v4  ;;  %10360 = vmatprep.mubr.bf16.mxu1 %v10674_v63 }
 0x234   : > { %v6792_v13 = vadd.f32 %v10179_v62, %v6791_v7  ;;  %v7501_v14 = vadd.f32 %v7500_v8, %v7150_v6  ;;  %v10182_v15 = vpop.f32.mrb[112].mxu0  ;;  %v11320_v62 = vpop.f32.mrb[10].mxu1  ;;  %v10675_v6 = vld [vmem:[%s11068_s8 + $0x498] sm:$0xff]  }
 0x235   : > { %v2904_v18 = vpop.f32.mrb[113].mxu0  ;;  %v7154_v32 = vmul.f32 %v10182_v15, %v10182_v15  ;;  %v11323_v4 = vpop.f32.mrb[11].mxu1  ;;  %v9281_v8 = vpack.c.bf16 %v11320_v62, %v11315_v57  ;;  %10361 = vmatmul.mubr.bf16.gmra.mrb[116].mxu1 %v10675_v6  ;;  %v10679_v6 = vld [vmem:[%s11068_s8 + $0x4b8] sm:$0xff]  }
 0x236   : > { %v7502_v20 = vadd.f32 %v7501_v14, %v7151_v12  ;;  %v6793_v21 = vadd.f32 %v6792_v13, %v2904_v18  ;;  %v7152_v22 = vmul.f32 %v2904_v18, %v2904_v18  ;;  %v10183_v23 = vpop.f32.mrb[114].mxu0 }
 0x237   : > { %v9101_v24 = vpack.c.bf16 %v10183_v23, %v10182_v15  ;;  %v2907_v25 = vpop.f32.mrb[115].mxu0  ;;  %v7155_v38 = vmul.f32 %v10183_v23, %v10183_v23  ;;  %9785 = vst [vmem:[%s11137_s20 + $0x2e8] sm:$0xff] %v9281_v8  }
 0x238   : > { %v7503_v27 = vadd.f32 %v7502_v20, %v7152_v22  ;;  %v9096_v28 = vpack.c.bf16 %v2907_v25, %v2904_v18  ;;  %v6794_v29 = vadd.f32 %v6793_v21, %v2907_v25  ;;  %v7153_v30 = vmul.f32 %v2907_v25, %v2907_v25 }
 0x239   : > { %9749 = vst [vmem:[%s11137_s20 + $0x1c8] sm:$0xff] %v9101_v24   ;;  %v9276_v18 = vpack.c.bf16 %v11323_v4, %v11318_v61 }
 0x23a   : > { %9748 = vst [vmem:[%s11137_s20 + $0x1c0] sm:$0xff] %v9096_v28   ;;  %v6795_v33 = vadd.f32 %v10182_v15, %v6794_v29  ;;  %v7504_v34 = vadd.f32 %v7503_v27, %v7153_v30  ;;  %v10676_v29 = vld [vmem:[%s11068_s8 + $0x4a0] sm:$0xff]  }
 0x23b   : > { %9784 = vst [vmem:[%s11137_s20 + $0x2e0] sm:$0xff] %v9276_v18   ;;  %10364 = vmatprep.mubr.bf16.mxu1 %v10676_v29 }
 0x23c   : > { %v6796_v39 = vadd.f32 %v10183_v23, %v6795_v33  ;;  %v7505_v40 = vadd.f32 %v7504_v34, %v7154_v32  ;;  %v10186_v41 = vpop.f32.mrb[116].mxu0  ;;  %v11333_v23 = vpop.f32.mrb[12].mxu1 }
 0x23d   : > { %v2920_v44 = vpop.f32.mrb[117].mxu0  ;;  %v7158_v58 = vmul.f32 %v10186_v41, %v10186_v41  ;;  %v11336_v27 = vpop.f32.mrb[13].mxu1 }
 0x23e   : > { %v7506_v46 = vadd.f32 %v7505_v40, %v7155_v38  ;;  %v6797_v47 = vadd.f32 %v6796_v39, %v2920_v44  ;;  %v7156_v48 = vmul.f32 %v2920_v44, %v2920_v44  ;;  %v10187_v49 = vpop.f32.mrb[118].mxu0  ;;  %v11338_v28 = vpop.f32.mrb[14].mxu1  ;;  %v10677_v38 = vld [vmem:[%s11068_s8 + $0x4a8] sm:$0xff]  }
 0x23f   : > { %v9111_v50 = vpack.c.bf16 %v10187_v49, %v10186_v41  ;;  %v2923_v51 = vpop.f32.mrb[119].mxu0  ;;  %v7159_v0 = vmul.f32 %v10187_v49, %v10187_v49  ;;  %v11341_v37 = vpop.f32.mrb[15].mxu1  ;;  %v9291_v40 = vpack.c.bf16 %v11338_v28, %v11333_v23  ;;  %10365 = vmatmul.mubr.bf16.gmra.mrb[120].mxu1 %v10677_v38 }
 0x240   : > { %v7507_v53 = vadd.f32 %v7506_v46, %v7156_v48  ;;  %v9106_v54 = vpack.c.bf16 %v2923_v51, %v2920_v44  ;;  %v6798_v55 = vadd.f32 %v6797_v47, %v2923_v51  ;;  %v7157_v56 = vmul.f32 %v2923_v51, %v2923_v51 }
 0x241   : > { %9751 = vst [vmem:[%s11137_s20 + $0x1d8] sm:$0xff] %v9111_v50   ;;  %9787 = vst [vmem:[%s11137_s20 + $0x2f8] sm:$0xff] %v9291_v40   ;;  %v9286_v48 = vpack.c.bf16 %v11341_v37, %v11336_v27 }
 0x242   : > { %9750 = vst [vmem:[%s11137_s20 + $0x1d0] sm:$0xff] %v9106_v54   ;;  %v6799_v59 = vadd.f32 %v10186_v41, %v6798_v55  ;;  %v7508_v60 = vadd.f32 %v7507_v53, %v7157_v56  ;;  %v11351_v53 = vpop.f32.mrb[16].mxu1 }
 0x243   : > { %9786 = vst [vmem:[%s11137_s20 + $0x2f0] sm:$0xff] %v9286_v48  }
 0x244   : > { %v7509_v1 = vadd.f32 %v7508_v60, %v7158_v58  ;;  %v10190_v2 = vpop.f32.mrb[120].mxu0  ;;  %v6800_v3 = vadd.f32 %v10187_v49, %v6799_v59  ;;  %v11354_v58 = vpop.f32.mrb[17].mxu1  ;;  %v10678_v60 = vld [vmem:[%s11068_s8 + $0x4b0] sm:$0xff]  }
 0x245   : > { %v2936_v7 = vpop.f32.mrb[121].mxu0  ;;  %v7162_v24 = vmul.f32 %v10190_v2, %v10190_v2  ;;  %v11356_v59 = vpop.f32.mrb[18].mxu1  ;;  %10368 = vmatprep.mubr.bf16.mxu1 %v10678_v60 }
 0x246   : > { %v6801_v11 = vadd.f32 %v6800_v3, %v2936_v7  ;;  %v7160_v12 = vmul.f32 %v2936_v7, %v2936_v7  ;;  %v7510_v13 = vadd.f32 %v7509_v1, %v7159_v0  ;;  %v10191_v14 = vpop.f32.mrb[122].mxu0  ;;  %v11359_v3 = vpop.f32.mrb[19].mxu1  ;;  %v9301_v8 = vpack.c.bf16 %v11356_v59, %v11351_v53 }
 0x247   : > { %v9121_v15 = vpack.c.bf16 %v10191_v14, %v10190_v2  ;;  %v2939_v17 = vpop.f32.mrb[123].mxu0  ;;  %v7163_v30 = vmul.f32 %v10191_v14, %v10191_v14  ;;  %10369 = vmatmul.mubr.bf16.gmra.mrb[124].mxu1 %v10679_v6  ;;  %v9296_v18 = vpack.c.bf16 %v11359_v3, %v11354_v58 }
 0x248   : > { %v7511_v19 = vadd.f32 %v7510_v13, %v7160_v12  ;;  %v9116_v20 = vpack.c.bf16 %v2939_v17, %v2936_v7  ;;  %v6802_v21 = vadd.f32 %v6801_v11, %v2939_v17  ;;  %v7161_v22 = vmul.f32 %v2939_v17, %v2939_v17  ;;  %9789 = vst [vmem:[%s11137_s20 + $0x308] sm:$0xff] %v9301_v8   ;;  %v10682_v8 = vld [vmem:[%s11068_s8 + $0x4d0] sm:$0xff]  }
 0x249   : > { %9753 = vst [vmem:[%s11137_s20 + $0x1e8] sm:$0xff] %v9121_v15   ;;  %9788 = vst [vmem:[%s11137_s20 + $0x300] sm:$0xff] %v9296_v18  }
 0x24a   : > { %9752 = vst [vmem:[%s11137_s20 + $0x1e0] sm:$0xff] %v9116_v20   ;;  %v6803_v25 = vadd.f32 %v10190_v2, %v6802_v21  ;;  %v7512_v26 = vadd.f32 %v7511_v19, %v7161_v22 }
 0x24c   : > { %v7513_v32 = vadd.f32 %v7512_v26, %v7162_v24  ;;  %v10194_v33 = vpop.f32.mrb[124].mxu0  ;;  %v6804_v34 = vadd.f32 %v10191_v14, %v6803_v25  ;;  %v11369_v24 = vpop.f32.mrb[20].mxu1 }
 0x24d   : > { %v2952_v39 = vpop.f32.mrb[125].mxu0  ;;  %v7166_v54 = vmul.f32 %v10194_v33, %v10194_v33 }
 0x24e   : > { %v6805_v41 = vadd.f32 %v6804_v34, %v2952_v39  ;;  %v7164_v43 = vmul.f32 %v2952_v39, %v2952_v39  ;;  %v7514_v44 = vadd.f32 %v7513_v32, %v7163_v30  ;;  %v10195_v45 = vpop.f32.mrb[126].mxu0  ;;  %v11372_v30 = vpop.f32.mrb[21].mxu1 }
 0x24f   : > { %v9131_v46 = vpack.c.bf16 %v10195_v45, %v10194_v33  ;;  %v2955_v47 = vpop.f32.mrb[127].mxu0  ;;  %v7167_v63 = vmul.f32 %v10195_v45, %v10195_v45  ;;  %v11374_v32 = vpop.f32.mrb[22].mxu1 }
 0x250   : > { %v7515_v49 = vadd.f32 %v7514_v44, %v7164_v43  ;;  %v9126_v50 = vpack.c.bf16 %v2955_v47, %v2952_v39  ;;  %v6806_v51 = vadd.f32 %v6805_v41, %v2955_v47  ;;  %v7165_v52 = vmul.f32 %v2955_v47, %v2955_v47  ;;  %v11377_v41 = vpop.f32.mrb[23].mxu1  ;;  %v10681_v43 = vld [vmem:[%s11068_s8 + $0x4c8] sm:$0xff]  }
 0x251   : > { %9755 = vst [vmem:[%s11137_s20 + $0x1f8] sm:$0xff] %v9131_v46  }
 0x252   : > { %9754 = vst [vmem:[%s11137_s20 + $0x1f0] sm:$0xff] %v9126_v50   ;;  %v6807_v55 = vadd.f32 %v10194_v33, %v6806_v51  ;;  %v7516_v56 = vadd.f32 %v7515_v49, %v7165_v52  ;;  %v10680_v33 = vld [vmem:[%s11068_s8 + $0x4c0] sm:$0xff]   ;;  %v9306_v52 = vpack.c.bf16 %v11377_v41, %v11372_v30 }
 0x253   : > { %10372 = vmatprep.mubr.bf16.mxu1 %v10680_v33 }
 0x254   : > { %v7517_v0 = vadd.f32 %v7516_v56, %v7166_v54  ;;  %v10198_v1 = vpop.f32.mrb[128].mxu0  ;;  %v6808_v2 = vadd.f32 %v10195_v45, %v6807_v55  ;;  %v9311_v45 = vpack.c.bf16 %v11374_v32, %v11369_v24  ;;  %10373 = vmatmul.mubr.bf16.gmra.mrb[128].mxu1 %v10681_v43  ;;  %9790 = vst [vmem:[%s11137_s20 + $0x310] sm:$0xff] %v9306_v52  }
 0x255   : > { %v2968_v7 = vpop.f32.mrb[129].mxu0  ;;  %v7170_v25 = vmul.f32 %v10198_v1, %v10198_v1  ;;  %10376 = vmatprep.mubr.bf16.mxu1 %v10682_v8 }
 0x256   : > { %v6809_v11 = vadd.f32 %v6808_v2, %v2968_v7  ;;  %v7168_v12 = vmul.f32 %v2968_v7, %v2968_v7  ;;  %v7518_v13 = vadd.f32 %v7517_v0, %v7167_v63  ;;  %v10199_v14 = vpop.f32.mrb[130].mxu0  ;;  %9791 = vst [vmem:[%s11137_s20 + $0x318] sm:$0xff] %v9311_v45   ;;  %v11387_v63 = vpop.f32.mrb[24].mxu1 }
 0x257   : > { %v9141_v15 = vpack.c.bf16 %v10199_v14, %v10198_v1  ;;  %v2971_v17 = vpop.f32.mrb[131].mxu0  ;;  %v7171_v34 = vmul.f32 %v10199_v14, %v10199_v14  ;;  %v11390_v6 = vpop.f32.mrb[25].mxu1 }
 0x258   : > { %v7519_v19 = vadd.f32 %v7518_v13, %v7168_v12  ;;  %v9136_v20 = vpack.c.bf16 %v2971_v17, %v2968_v7  ;;  %v6810_v21 = vadd.f32 %v6809_v11, %v2971_v17  ;;  %v7169_v22 = vmul.f32 %v2971_v17, %v2971_v17  ;;  %v11392_v7 = vpop.f32.mrb[26].mxu1  ;;  %v10683_v17 = vld [vmem:[%s11068_s8 + $0x4d8] sm:$0xff]  }
 0x259   : > { %9757 = vst [vmem:[%s11137_s20 + $0x208] sm:$0xff] %v9141_v15   ;;  %v11395_v15 = vpop.f32.mrb[27].mxu1 }
 0x25a   : > { %9756 = vst [vmem:[%s11137_s20 + $0x200] sm:$0xff] %v9136_v20   ;;  %v6811_v26 = vadd.f32 %v10198_v1, %v6810_v21  ;;  %v7520_v29 = vadd.f32 %v7519_v19, %v7169_v22  ;;  %v9321_v19 = vpack.c.bf16 %v11392_v7, %v11387_v63  ;;  %v9316_v33 = vpack.c.bf16 %v11395_v15, %v11390_v6  ;;  %v11405_v43 = vpop.f32.mrb[28].mxu1 }
 0x25c   : > { %v7521_v38 = vadd.f32 %v7520_v29, %v7170_v25  ;;  %v10202_v39 = vpop.f32.mrb[132].mxu0  ;;  %v6812_v40 = vadd.f32 %v10199_v14, %v6811_v26  ;;  %10377 = vmatmul.mubr.bf16.gmra.mrb[132].mxu1 %v10683_v17  ;;  %9793 = vst [vmem:[%s11137_s20 + $0x328] sm:$0xff] %v9321_v19   ;;  %9792 = vst [vmem:[%s11137_s20 + $0x320] sm:$0xff] %v9316_v33  }
 0x25d   : > { %v2984_v44 = vpop.f32.mrb[133].mxu0  ;;  %v7174_v0 = vmul.f32 %v10202_v39, %v10202_v39 }
 0x25e   : > { %v6813_v46 = vadd.f32 %v6812_v40, %v2984_v44  ;;  %v7172_v47 = vmul.f32 %v2984_v44, %v2984_v44  ;;  %v7522_v48 = vadd.f32 %v7521_v38, %v7171_v34  ;;  %v10203_v49 = vpop.f32.mrb[134].mxu0 }
 0x25f   : > { %v9151_v50 = vpack.c.bf16 %v10203_v49, %v10202_v39  ;;  %v2987_v51 = vpop.f32.mrb[135].mxu0  ;;  %v7175_v11 = vmul.f32 %v10203_v49, %v10203_v49 }
 0x260   : > { %v7523_v54 = vadd.f32 %v7522_v48, %v7172_v47  ;;  %v9146_v55 = vpack.c.bf16 %v2987_v51, %v2984_v44  ;;  %v6814_v56 = vadd.f32 %v6813_v46, %v2987_v51  ;;  %v7173_v60 = vmul.f32 %v2987_v51, %v2987_v51  ;;  %v11408_v47 = vpop.f32.mrb[29].mxu1 }
 0x261   : > { %9759 = vst [vmem:[%s11137_s20 + $0x218] sm:$0xff] %v9151_v50   ;;  %v11410_v48 = vpop.f32.mrb[30].mxu1 }
 0x262   : > { %9758 = vst [vmem:[%s11137_s20 + $0x210] sm:$0xff] %v9146_v55   ;;  %v6815_v1 = vadd.f32 %v10202_v39, %v6814_v56  ;;  %v7524_v2 = vadd.f32 %v7523_v54, %v7173_v60  ;;  %v11413_v55 = vpop.f32.mrb[31].mxu1  ;;  %v10685_v56 = vld [vmem:[%s11068_s8 + $0x4e8] sm:$0xff]  }
 0x264   : > { %v7525_v12 = vadd.f32 %v7524_v2, %v7174_v0  ;;  %v10206_v13 = vpop.f32.mrb[136].mxu0  ;;  %v6816_v14 = vadd.f32 %v10203_v49, %v6815_v1  ;;  %v10684_v49 = vld [vmem:[%s11068_s8 + $0x4e0] sm:$0xff]   ;;  %v9331_v0 = vpack.c.bf16 %v11410_v48, %v11405_v43 }
 0x265   : > { %v3000_v18 = vpop.f32.mrb[137].mxu0  ;;  %v7178_v44 = vmul.f32 %v10206_v13, %v10206_v13  ;;  %10380 = vmatprep.mubr.bf16.mxu1 %v10684_v49 }
 0x266   : > { %v6817_v20 = vadd.f32 %v6816_v14, %v3000_v18  ;;  %v7176_v21 = vmul.f32 %v3000_v18, %v3000_v18  ;;  %v7526_v22 = vadd.f32 %v7525_v12, %v7175_v11  ;;  %v10207_v25 = vpop.f32.mrb[138].mxu0  ;;  %10381 = vmatmul.mubr.bf16.gmra.mrb[136].mxu1 %v10685_v56  ;;  %9795 = vst [vmem:[%s11137_s20 + $0x338] sm:$0xff] %v9331_v0  }
 0x267   : > { %v9161_v26 = vpack.c.bf16 %v10207_v25, %v10206_v13  ;;  %v3003_v29 = vpop.f32.mrb[139].mxu0  ;;  %v7179_v50 = vmul.f32 %v10207_v25, %v10207_v25  ;;  %v9326_v14 = vpack.c.bf16 %v11413_v55, %v11408_v47 }
 0x268   : > { %v7527_v34 = vadd.f32 %v7526_v22, %v7176_v21  ;;  %v9156_v38 = vpack.c.bf16 %v3003_v29, %v3000_v18  ;;  %v6818_v39 = vadd.f32 %v6817_v20, %v3003_v29  ;;  %v7177_v40 = vmul.f32 %v3003_v29, %v3003_v29  ;;  %v11423_v21 = vpop.f32.mrb[32].mxu1 }
 0x269   : > { %9761 = vst [vmem:[%s11137_s20 + $0x228] sm:$0xff] %v9161_v26   ;;  %9794 = vst [vmem:[%s11137_s20 + $0x330] sm:$0xff] %v9326_v14   ;;  %v11426_v29 = vpop.f32.mrb[33].mxu1 }
 0x26a   : > { %9760 = vst [vmem:[%s11137_s20 + $0x220] sm:$0xff] %v9156_v38   ;;  %v6819_v45 = vadd.f32 %v10206_v13, %v6818_v39  ;;  %v7528_v46 = vadd.f32 %v7527_v34, %v7177_v40  ;;  %v11428_v33 = vpop.f32.mrb[34].mxu1  ;;  %v10686_v34 = vld [vmem:[%s11068_s8 + $0x4f0] sm:$0xff]  }
 0x26b   : > { %10384 = vmatprep.mubr.bf16.mxu1 %v10686_v34 }
 0x26c   : > { %v7529_v51 = vadd.f32 %v7528_v46, %v7178_v44  ;;  %v10210_v52 = vpop.f32.mrb[140].mxu0  ;;  %v6820_v54 = vadd.f32 %v10207_v25, %v6819_v45  ;;  %v11431_v45 = vpop.f32.mrb[35].mxu1  ;;  %v10687_v46 = vld [vmem:[%s11068_s8 + $0x4f8] sm:$0xff]  }
 0x26d   : > { %v3016_v60 = vpop.f32.mrb[141].mxu0  ;;  %v7182_v22 = vmul.f32 %v10210_v52, %v10210_v52 }
 0x26e   : > { %v6821_v1 = vadd.f32 %v6820_v54, %v3016_v60  ;;  %v7180_v2 = vmul.f32 %v3016_v60, %v3016_v60  ;;  %v7530_v8 = vadd.f32 %v7529_v51, %v7179_v50  ;;  %v10211_v11 = vpop.f32.mrb[142].mxu0  ;;  %v9341_v50 = vpack.c.bf16 %v11428_v33, %v11423_v21  ;;  %10385 = vmatmul.mubr.bf16.gmra.mrb[140].mxu1 %v10687_v46 }
 0x26f   : > { %v9171_v12 = vpack.c.bf16 %v10211_v11, %v10210_v52  ;;  %v3019_v13 = vpop.f32.mrb[143].mxu0  ;;  %v7183_v38 = vmul.f32 %v10211_v11, %v10211_v11 }
 0x270   : > { %v7531_v17 = vadd.f32 %v7530_v8, %v7180_v2  ;;  %v9166_v18 = vpack.c.bf16 %v3019_v13, %v3016_v60  ;;  %v6822_v19 = vadd.f32 %v6821_v1, %v3019_v13  ;;  %v7181_v20 = vmul.f32 %v3019_v13, %v3019_v13  ;;  %9797 = vst [vmem:[%s11137_s20 + $0x348] sm:$0xff] %v9341_v50   ;;  %v11441_v13 = vpop.f32.mrb[36].mxu1 }
 0x271   : > { %9763 = vst [vmem:[%s11137_s20 + $0x238] sm:$0xff] %v9171_v12   ;;  %v9336_v1 = vpack.c.bf16 %v11431_v45, %v11426_v29 }
 0x272   : > { %9762 = vst [vmem:[%s11137_s20 + $0x230] sm:$0xff] %v9166_v18   ;;  %v6823_v25 = vadd.f32 %v10210_v52, %v6822_v19  ;;  %v7532_v26 = vadd.f32 %v7531_v17, %v7181_v20  ;;  %v11444_v19 = vpop.f32.mrb[37].mxu1 }
 0x273   : > { %9796 = vst [vmem:[%s11137_s20 + $0x340] sm:$0xff] %v9336_v1   ;;  %v11446_v20 = vpop.f32.mrb[38].mxu1 }
 0x274   : > { %v7533_v39 = vadd.f32 %v7532_v26, %v7182_v22  ;;  %v10214_v40 = vpop.f32.mrb[144].mxu0  ;;  %v6824_v44 = vadd.f32 %v10211_v11, %v6823_v25  ;;  %v10688_v22 = vld [vmem:[%s11068_s8 + $0x500] sm:$0xff]  }
 0x275   : > { %v3032_v49 = vpop.f32.mrb[145].mxu0  ;;  %v7186_v14 = vmul.f32 %v10214_v40, %v10214_v40  ;;  %10388 = vmatprep.mubr.bf16.mxu1 %v10688_v22 }
 0x276   : > { %v6825_v51 = vadd.f32 %v6824_v44, %v3032_v49  ;;  %v7184_v52 = vmul.f32 %v3032_v49, %v3032_v49  ;;  %v7534_v54 = vadd.f32 %v7533_v39, %v7183_v38  ;;  %v10215_v56 = vpop.f32.mrb[146].mxu0  ;;  %v11449_v39 = vpop.f32.mrb[39].mxu1  ;;  %v10689_v44 = vld [vmem:[%s11068_s8 + $0x508] sm:$0xff]  }
 0x277   : > { %v9181_v60 = vpack.c.bf16 %v10215_v56, %v10214_v40  ;;  %v3035_v0 = vpop.f32.mrb[147].mxu0  ;;  %v7187_v25 = vmul.f32 %v10215_v56, %v10215_v56  ;;  %10389 = vmatmul.mubr.bf16.gmra.mrb[144].mxu1 %v10689_v44 }
 0x278   : > { %v7535_v2 = vadd.f32 %v7534_v54, %v7184_v52  ;;  %v9176_v8 = vpack.c.bf16 %v3035_v0, %v3032_v49  ;;  %v6826_v11 = vadd.f32 %v6825_v51, %v3035_v0  ;;  %v7185_v12 = vmul.f32 %v3035_v0, %v3035_v0 }
 0x279   : > { %9765 = vst [vmem:[%s11137_s20 + $0x248] sm:$0xff] %v9181_v60   ;;  %v9351_v49 = vpack.c.bf16 %v11446_v20, %v11441_v13 }
 0x27a   : > { %9764 = vst [vmem:[%s11137_s20 + $0x240] sm:$0xff] %v9176_v8   ;;  %v6827_v17 = vadd.f32 %v10214_v40, %v6826_v11  ;;  %v7536_v18 = vadd.f32 %v7535_v2, %v7185_v12  ;;  %v11459_v11 = vpop.f32.mrb[40].mxu1 }
 0x27b   : > { %9799 = vst [vmem:[%s11137_s20 + $0x358] sm:$0xff] %v9351_v49   ;;  %12689 = vst [vmem:[#allocation15_spill] sm:$0xff] %v11459_v11 }
 0x27c   : > { %v7537_v26 = vadd.f32 %v7536_v18, %v7186_v14  ;;  %v10218_v34 = vpop.f32.mrb[148].mxu0  ;;  %v6828_v38 = vadd.f32 %v10215_v56, %v6827_v17  ;;  %v9346_v56 = vpack.c.bf16 %v11449_v39, %v11444_v19  ;;  %v11462_v18 = vpop.f32.mrb[41].mxu1 }
 0x27d   : > { %v3048_v46 = vpop.f32.mrb[149].mxu0  ;;  %v7190_v12 = vmul.f32 %v10218_v34, %v10218_v34  ;;  %v11464_v22 = vpop.f32.mrb[42].mxu1 }
 0x27e   : > { %v6829_v40 = vadd.f32 %v6828_v38, %v3048_v46  ;;  %v7188_v50 = vmul.f32 %v3048_v46, %v3048_v46  ;;  %v7538_v51 = vadd.f32 %v7537_v26, %v7187_v25  ;;  %v10219_v52 = vpop.f32.mrb[150].mxu0  ;;  %9798 = vst [vmem:[%s11137_s20 + $0x350] sm:$0xff] %v9346_v56   ;;  %12690 = vst [vmem:[#allocation16_spill] sm:$0xff] %v11464_v22  ;;  %v10690_v25 = vld [vmem:[%s11068_s8 + $0x510] sm:$0xff]   ;;  %v11467_v49 = vpop.f32.mrb[43].mxu1 }
 0x27f   : > { %v9191_v54 = vpack.c.bf16 %v10219_v52, %v10218_v34  ;;  %v3051_v60 = vpop.f32.mrb[151].mxu0  ;;  %v7191_v26 = vmul.f32 %v10219_v52, %v10219_v52  ;;  %12691 = vst [vmem:[#allocation17_spill] sm:$0xff] %v11467_v49  ;;  %10392 = vmatprep.mubr.bf16.mxu1 %v10690_v25 }
 0x280   : > { %v7539_v0 = vadd.f32 %v7538_v51, %v7188_v50  ;;  %v9186_v1 = vpack.c.bf16 %v3051_v60, %v3048_v46  ;;  %v6830_v2 = vadd.f32 %v6829_v40, %v3051_v60  ;;  %v7189_v8 = vmul.f32 %v3051_v60, %v3051_v60  ;;  %v10691_v40 = vld [vmem:[%s11068_s8 + $0x518] sm:$0xff]  }
 0x281   : > { %9767 = vst [vmem:[%s11137_s20 + $0x258] sm:$0xff] %v9191_v54   ;;  %v9361_v51 = vpack.c.bf16 %v11464_v22, %v11459_v11  ;;  %10393 = vmatmul.mubr.bf16.gmra.mrb[148].mxu1 %v10691_v40 }
 0x282   : > { %9766 = vst [vmem:[%s11137_s20 + $0x250] sm:$0xff] %v9186_v1   ;;  %v6831_v14 = vadd.f32 %v10218_v34, %v6830_v2  ;;  %v7540_v17 = vadd.f32 %v7539_v0, %v7189_v8 }
 0x283   : > { %9801 = vst [vmem:[%s11137_s20 + $0x368] sm:$0xff] %v9361_v51   ;;  %v10692_v51 = vld [vmem:[%s11068_s8 + $0x520] sm:$0xff]  }
 0x284   : > { %v7541_v38 = vadd.f32 %v7540_v17, %v7190_v12  ;;  %v10222_v44 = vpop.f32.mrb[152].mxu0  ;;  %v6832_v46 = vadd.f32 %v10219_v52, %v6831_v14  ;;  %v9356_v52 = vpack.c.bf16 %v11467_v49, %v11462_v18  ;;  %v11477_v17 = vpop.f32.mrb[44].mxu1  ;;  %10396 = vmatprep.mubr.bf16.mxu1 %v10692_v51 }
 0x285   : > { %v3064_v50 = vpop.f32.mrb[153].mxu0  ;;  %12692 = vst [vmem:[#allocation18_spill] sm:$0xff] %v11477_v17  ;;  %v7194_v25 = vmul.f32 %v10222_v44, %v10222_v44 }
 0x286   : > { %v6833_v34 = vadd.f32 %v6832_v46, %v3064_v50  ;;  %v7192_v54 = vmul.f32 %v3064_v50, %v3064_v50  ;;  %v7542_v60 = vadd.f32 %v7541_v38, %v7191_v26  ;;  %v10223_v56 = vpop.f32.mrb[154].mxu0  ;;  %9800 = vst [vmem:[%s11137_s20 + $0x360] sm:$0xff] %v9356_v52   ;;  %v11480_v46 = vpop.f32.mrb[45].mxu1 }
 0x287   : > { %v9201_v0 = vpack.c.bf16 %v10223_v56, %v10222_v44  ;;  %v3067_v1 = vpop.f32.mrb[155].mxu0  ;;  %12693 = vst [vmem:[#allocation19_spill] sm:$0xff] %v11480_v46  ;;  %v11482_v40 = vpop.f32.mrb[46].mxu1  ;;  %v7195_v22 = vmul.f32 %v10223_v56, %v10223_v56 }
 0x288   : > { %v7543_v2 = vadd.f32 %v7542_v60, %v7192_v54  ;;  %v9196_v8 = vpack.c.bf16 %v3067_v1, %v3064_v50  ;;  %v6834_v12 = vadd.f32 %v6833_v34, %v3067_v1  ;;  %v7193_v14 = vmul.f32 %v3067_v1, %v3067_v1  ;;  %12694 = vst [vmem:[#allocation20_spill] sm:$0xff] %v11482_v40  ;;  %v11485_v60 = vpop.f32.mrb[47].mxu1 }
 0x289   : > { %9769 = vst [vmem:[%s11137_s20 + $0x268] sm:$0xff] %v9201_v0   ;;  %12695 = vst [vmem:[#allocation21_spill] sm:$0xff] %v11485_v60  ;;  %v10693_v0 = vld [vmem:[%s11068_s8 + $0x528] sm:$0xff]   ;;  %v9371_v52 = vpack.c.bf16 %v11482_v40, %v11477_v17  ;;  %v11495_v51 = vpop.f32.mrb[48].mxu1 }
 0x28a   : > { %9768 = vst [vmem:[%s11137_s20 + $0x260] sm:$0xff] %v9196_v8   ;;  %v6835_v26 = vadd.f32 %v10222_v44, %v6834_v12  ;;  %v7544_v38 = vadd.f32 %v7543_v2, %v7193_v14  ;;  %10397 = vmatmul.mubr.bf16.gmra.mrb[152].mxu1 %v10693_v0  ;;  %12696 = vst [vmem:[#allocation22_spill] sm:$0xff] %v11495_v51  ;;  %v11498_v0 = vpop.f32.mrb[49].mxu1 }
 0x28b   : > { %9803 = vst [vmem:[%s11137_s20 + $0x378] sm:$0xff] %v9371_v52   ;;  %12697 = vst [vmem:[#allocation23_spill] sm:$0xff] %v11498_v0  ;;  %v11500_v40 = vpop.f32.mrb[50].mxu1  ;;  %v10694_v52 = vld [vmem:[%s11068_s8 + $0x530] sm:$0xff]  }
 0x28c   : > { %v7545_v54 = vadd.f32 %v7544_v38, %v7194_v25  ;;  %v10226_v50 = vpop.f32.mrb[156].mxu0  ;;  %v6836_v34 = vadd.f32 %v10223_v56, %v6835_v26  ;;  %v9366_v56 = vpack.c.bf16 %v11485_v60, %v11480_v46  ;;  %12698 = vst [vmem:[#allocation24_spill] sm:$0xff] %v11500_v40  ;;  %10400 = vmatprep.mubr.bf16.mxu1 %v10694_v52 }
 0x28d   : > { %v3080_v1 = vpop.f32.mrb[157].mxu0 }
 0x28e   : > { %v6837_v44 = vadd.f32 %v6836_v34, %v3080_v1  ;;  %v7196_v2 = vmul.f32 %v3080_v1, %v3080_v1  ;;  %v7546_v8 = vadd.f32 %v7545_v54, %v7195_v22  ;;  %v10227_v12 = vpop.f32.mrb[158].mxu0  ;;  %9802 = vst [vmem:[%s11137_s20 + $0x370] sm:$0xff] %v9366_v56   ;;  %v7198_v34 = vmul.f32 %v10226_v50, %v10226_v50 }
 0x28f   : > { %v9211_v14 = vpack.c.bf16 %v10227_v12, %v10226_v50  ;;  %v3083_v25 = vpop.f32.mrb[159].mxu0  ;;  %v7199_v17 = vmul.f32 %v10227_v12, %v10227_v12  ;;  %v9381_v56 = vpack.c.bf16 %v11500_v40, %v11495_v51 }
 0x290   : > { %v7547_v26 = vadd.f32 %v7546_v8, %v7196_v2  ;;  %v9206_v38 = vpack.c.bf16 %v3083_v25, %v3080_v1  ;;  %v6838_v11 = vadd.f32 %v6837_v44, %v3083_v25  ;;  %v7197_v49 = vmul.f32 %v3083_v25, %v3083_v25  ;;  %v11503_v8 = vpop.f32.mrb[51].mxu1 }
 0x291   : > { %9771 = vst [vmem:[%s11137_s20 + $0x278] sm:$0xff] %v9211_v14   ;;  %12699 = vst [vmem:[#allocation25_spill] sm:$0xff] %v11503_v8  ;;  %v10695_v14 = vld [vmem:[%s11068_s8 + $0x538] sm:$0xff]   ;;  %v11513_v52 = vpop.f32.mrb[52].mxu1 }
 0x292   : > { %9770 = vst [vmem:[%s11137_s20 + $0x270] sm:$0xff] %v9206_v38   ;;  %v6839_v22 = vadd.f32 %v10226_v50, %v6838_v11  ;;  %v7548_v54 = vadd.f32 %v7547_v26, %v7197_v49  ;;  %10401 = vmatmul.mubr.bf16.gmra.mrb[156].mxu1 %v10695_v14  ;;  %9805 = vst [vmem:[%s11137_s20 + $0x388] sm:$0xff] %v9381_v56   ;;  %v11516_v14 = vpop.f32.mrb[53].mxu1  ;;  %v10696_v56 = vld [vmem:[%s11068_s8 + $0x540] sm:$0xff]  }
 0x293   : > { %12700 = vst [vmem:[#allocation26_spill] sm:$0xff] %v11513_v52  ;;  %12701 = vst [vmem:[#allocation27_spill] sm:$0xff] %v11516_v14  ;;  %v11518_v40 = vpop.f32.mrb[54].mxu1  ;;  %10404 = vmatprep.mubr.bf16.mxu1 %v10696_v56 }
 0x294   : > { %v7549_v2 = vadd.f32 %v7548_v54, %v7198_v34  ;;  %v10230_v1 = vpop.f32.mrb[160].mxu0  ;;  %v6840_v44 = vadd.f32 %v10227_v12, %v6839_v22  ;;  %v9376_v12 = vpack.c.bf16 %v11503_v8, %v11498_v0  ;;  %12702 = vst [vmem:[#allocation28_spill] sm:$0xff] %v11518_v40 }
 0x295   : > { %v3096_v25 = vpop.f32.mrb[161].mxu0 }
 0x296   : > { %v6841_v11 = vadd.f32 %v6840_v44, %v3096_v25  ;;  %v7200_v49 = vmul.f32 %v3096_v25, %v3096_v25  ;;  %v7550_v50 = vadd.f32 %v7549_v2, %v7199_v17  ;;  %v10231_v26 = vpop.f32.mrb[162].mxu0  ;;  %9804 = vst [vmem:[%s11137_s20 + $0x380] sm:$0xff] %v9376_v12   ;;  %v7202_v44 = vmul.f32 %v10230_v1, %v10230_v1 }
 0x297   : > { %v9221_v38 = vpack.c.bf16 %v10231_v26, %v10230_v1  ;;  %v3099_v34 = vpop.f32.mrb[163].mxu0  ;;  %v7203_v51 = vmul.f32 %v10231_v26, %v10231_v26  ;;  %v9391_v12 = vpack.c.bf16 %v11518_v40, %v11513_v52 }
 0x298   : > { %v7551_v22 = vadd.f32 %v7550_v50, %v7200_v49  ;;  %v9216_v54 = vpack.c.bf16 %v3099_v34, %v3096_v25  ;;  %v6842_v60 = vadd.f32 %v6841_v11, %v3099_v34  ;;  %v7201_v46 = vmul.f32 %v3099_v34, %v3099_v34  ;;  %v11521_v50 = vpop.f32.mrb[55].mxu1 }
 0x299   : > { %9773 = vst [vmem:[%s11137_s20 + $0x288] sm:$0xff] %v9221_v38   ;;  %12703 = vst [vmem:[#allocation29_spill] sm:$0xff] %v11521_v50  ;;  %v10697_v38 = vld [vmem:[%s11068_s8 + $0x548] sm:$0xff]   ;;  %v11531_v56 = vpop.f32.mrb[56].mxu1 }
 0x29a   : > { %9772 = vst [vmem:[%s11137_s20 + $0x280] sm:$0xff] %v9216_v54   ;;  %v6843_v17 = vadd.f32 %v10230_v1, %v6842_v60  ;;  %v7552_v2 = vadd.f32 %v7551_v22, %v7201_v46  ;;  %10405 = vmatmul.mubr.bf16.gmra.mrb[160].mxu1 %v10697_v38  ;;  %9807 = vst [vmem:[%s11137_s20 + $0x398] sm:$0xff] %v9391_v12   ;;  %v11534_v38 = vpop.f32.mrb[57].mxu1  ;;  %v10698_v12 = vld [vmem:[%s11068_s8 + $0x550] sm:$0xff]  }
 0x29b   : > { %12704 = vst [vmem:[#allocation30_spill] sm:$0xff] %v11531_v56  ;;  %12705 = vst [vmem:[#allocation31_spill] sm:$0xff] %v11534_v38  ;;  %v11536_v40 = vpop.f32.mrb[58].mxu1  ;;  %10408 = vmatprep.mubr.bf16.mxu1 %v10698_v12 }
 0x29c   : > { %v7553_v49 = vadd.f32 %v7552_v2, %v7202_v44  ;;  %v10234_v25 = vpop.f32.mrb[164].mxu0  ;;  %v6844_v11 = vadd.f32 %v10231_v26, %v6843_v17  ;;  %v9386_v26 = vpack.c.bf16 %v11521_v50, %v11516_v14  ;;  %12706 = vst [vmem:[#allocation32_spill] sm:$0xff] %v11536_v40 }
 0x29d   : > { %v3112_v34 = vpop.f32.mrb[165].mxu0 }
 0x29e   : > { %v6845_v46 = vadd.f32 %v6844_v11, %v3112_v34  ;;  %v7204_v60 = vmul.f32 %v3112_v34, %v3112_v34  ;;  %v7554_v1 = vadd.f32 %v7553_v49, %v7203_v51  ;;  %v10235_v22 = vpop.f32.mrb[166].mxu0  ;;  %9806 = vst [vmem:[%s11137_s20 + $0x390] sm:$0xff] %v9386_v26   ;;  %v7206_v11 = vmul.f32 %v10234_v25, %v10234_v25 }
 0x29f   : > { %v9231_v54 = vpack.c.bf16 %v10235_v22, %v10234_v25  ;;  %v3115_v44 = vpop.f32.mrb[167].mxu0  ;;  %v7207_v52 = vmul.f32 %v10235_v22, %v10235_v22  ;;  %v9401_v26 = vpack.c.bf16 %v11536_v40, %v11531_v56 }
 0x2a0   : > { %v7555_v17 = vadd.f32 %v7554_v1, %v7204_v60  ;;  %v9226_v2 = vpack.c.bf16 %v3115_v44, %v3112_v34  ;;  %v6846_v8 = vadd.f32 %v6845_v46, %v3115_v44  ;;  %v7205_v0 = vmul.f32 %v3115_v44, %v3115_v44  ;;  %v11539_v1 = vpop.f32.mrb[59].mxu1 }
 0x2a1   : > { %9775 = vst [vmem:[%s11137_s20 + $0x298] sm:$0xff] %v9231_v54   ;;  %12707 = vst [vmem:[#allocation33_spill] sm:$0xff] %v11539_v1  ;;  %v10699_v54 = vld [vmem:[%s11068_s8 + $0x558] sm:$0xff]   ;;  %v11549_v12 = vpop.f32.mrb[60].mxu1 }
 0x2a2   : > { %9774 = vst [vmem:[%s11137_s20 + $0x290] sm:$0xff] %v9226_v2   ;;  %v6847_v51 = vadd.f32 %v10234_v25, %v6846_v8  ;;  %v7556_v49 = vadd.f32 %v7555_v17, %v7205_v0  ;;  %10409 = vmatmul.mubr.bf16.gmra.mrb[164].mxu1 %v10699_v54  ;;  %9809 = vst [vmem:[%s11137_s20 + $0x3a8] sm:$0xff] %v9401_v26   ;;  %v11552_v54 = vpop.f32.mrb[61].mxu1  ;;  %v10700_v26 = vld [vmem:[%s11068_s8 + $0x560] sm:$0xff]  }
 0x2a3   : > { %12708 = vst [vmem:[#allocation34_spill] sm:$0xff] %v11549_v12  ;;  %v11554_v40 = vpop.f32.mrb[62].mxu1  ;;  %10412 = vmatprep.mubr.bf16.mxu1 %v10700_v26 }
 0x2a4   : > { %v7557_v60 = vadd.f32 %v7556_v49, %v7206_v11  ;;  %v10238_v34 = vpop.f32.mrb[168].mxu0  ;;  %v6848_v46 = vadd.f32 %v10235_v22, %v6847_v51  ;;  %v9396_v22 = vpack.c.bf16 %v11539_v1, %v11534_v38  ;;  %12709 = vst [vmem:[#allocation35_spill] sm:$0xff] %v11554_v40 }
 0x2a5   : > { %v3128_v44 = vpop.f32.mrb[169].mxu0 }
 0x2a6   : > { %v6849_v0 = vadd.f32 %v6848_v46, %v3128_v44  ;;  %v7208_v8 = vmul.f32 %v3128_v44, %v3128_v44  ;;  %v7558_v25 = vadd.f32 %v7557_v60, %v7207_v52  ;;  %v10239_v17 = vpop.f32.mrb[170].mxu0  ;;  %9808 = vst [vmem:[%s11137_s20 + $0x3a0] sm:$0xff] %v9396_v22   ;;  %v7210_v46 = vmul.f32 %v10238_v34, %v10238_v34 }
 0x2a7   : > { %v9241_v2 = vpack.c.bf16 %v10239_v17, %v10238_v34  ;;  %v3131_v11 = vpop.f32.mrb[171].mxu0  ;;  %v7211_v56 = vmul.f32 %v10239_v17, %v10239_v17  ;;  %v9411_v22 = vpack.c.bf16 %v11554_v40, %v11549_v12  ;;  %v10702_v40 = vld [vmem:[%s11068_s8 + $0x570] sm:$0xff]  }
 0x2a8   : > { %v7559_v51 = vadd.f32 %v7558_v25, %v7208_v8  ;;  %v9236_v49 = vpack.c.bf16 %v3131_v11, %v3128_v44  ;;  %v6850_v50 = vadd.f32 %v6849_v0, %v3131_v11  ;;  %v7209_v14 = vmul.f32 %v3131_v11, %v3131_v11  ;;  %v11557_v25 = vpop.f32.mrb[63].mxu1 }
 0x2a9   : > { %9777 = vst [vmem:[%s11137_s20 + $0x2a8] sm:$0xff] %v9241_v2   ;;  %v10701_v2 = vld [vmem:[%s11068_s8 + $0x568] sm:$0xff]   ;;  %9811 = vst [vmem:[%s11137_s20 + $0x3b8] sm:$0xff] %v9411_v22   ;;  %v11567_v26 = vpop.f32.mrb[64].mxu1 }
 0x2aa   : > { %9776 = vst [vmem:[%s11137_s20 + $0x2a0] sm:$0xff] %v9236_v49   ;;  %v6851_v52 = vadd.f32 %v10238_v34, %v6850_v50  ;;  %v7560_v60 = vadd.f32 %v7559_v51, %v7209_v14  ;;  %10413 = vmatmul.mubr.bf16.gmra.mrb[168].mxu1 %v10701_v2  ;;  %v11570_v2 = vpop.f32.mrb[65].mxu1 }
 0x2ab   : > { %v11572_v22 = vpop.f32.mrb[66].mxu1  ;;  %10416 = vmatprep.mubr.bf16.mxu1 %v10702_v40  ;;  %v7218_v40 = vmul.f32 %v11279_v5, %v11279_v5 }
 0x2ac   : > { %v7561_v8 = vadd.f32 %v7560_v60, %v7210_v46  ;;  %v10242_v44 = vpop.f32.mrb[172].mxu0  ;;  %v6852_v0 = vadd.f32 %v10239_v17, %v6851_v52  ;;  %v9406_v17 = vpack.c.bf16 %v11557_v25, %v11552_v54 }
 0x2ad   : > { %v3144_v11 = vpop.f32.mrb[173].mxu0 }
 0x2ae   : > { %v6853_v14 = vadd.f32 %v6852_v0, %v3144_v11  ;;  %v7212_v50 = vmul.f32 %v3144_v11, %v3144_v11  ;;  %v7562_v34 = vadd.f32 %v7561_v8, %v7211_v56  ;;  %v10243_v51 = vpop.f32.mrb[174].mxu0  ;;  %9810 = vst [vmem:[%s11137_s20 + $0x3b0] sm:$0xff] %v9406_v17   ;;  %v7214_v0 = vmul.f32 %v10242_v44, %v10242_v44 }
 0x2af   : > { %v9251_v49 = vpack.c.bf16 %v10243_v51, %v10242_v44  ;;  %v3147_v46 = vpop.f32.mrb[175].mxu0  ;;  %v7215_v12 = vmul.f32 %v10243_v51, %v10243_v51 }
 0x2b0   : > { %v7563_v52 = vadd.f32 %v7562_v34, %v7212_v50  ;;  %v9246_v60 = vpack.c.bf16 %v3147_v46, %v3144_v11  ;;  %v6854_v1 = vadd.f32 %v6853_v14, %v3147_v46  ;;  %v7213_v38 = vmul.f32 %v3147_v46, %v3147_v46  ;;  %v11577_v34 = vpop.f32.mrb[67].mxu1 }
 0x2b1   : > { %9779 = vst [vmem:[%s11137_s20 + $0x2b8] sm:$0xff] %v9251_v49   ;;  %v7216_v50 = vmul.f32 %v11282_v9, %v11282_v9  ;;  %v10703_v49 = vld [vmem:[%s11068_s8 + $0x578] sm:$0xff]   ;;  %v9416_v46 = vpack.c.bf16 %v11577_v34, %v11570_v2 }
 0x2b2   : > { %9778 = vst [vmem:[%s11137_s20 + $0x2b0] sm:$0xff] %v9246_v60   ;;  %v6855_v56 = vadd.f32 %v10242_v44, %v6854_v1  ;;  %v7564_v8 = vadd.f32 %v7563_v52, %v7213_v38  ;;  %v9421_v1 = vpack.c.bf16 %v11572_v22, %v11567_v26  ;;  %10417 = vmatmul.mubr.bf16.gmra.mrb[172].mxu1 %v10703_v49  ;;  %v11590_v60 = vpop.f32.mrb[68].mxu1 }
 0x2b3   : > { %v7217_v52 = vmul.f32 %v11287_v16, %v11287_v16  ;;  %9812 = vst [vmem:[%s11137_s20 + $0x3c0] sm:$0xff] %v9416_v46  }
 0x2b4   : > { %v6856_v11 = vadd.f32 %v10243_v51, %v6855_v56  ;;  %v7565_v14 = vadd.f32 %v7564_v8, %v7214_v0  ;;  %9813 = vst [vmem:[%s11137_s20 + $0x3c8] sm:$0xff] %v9421_v1   ;;  %v11595_v0 = vpop.f32.mrb[69].mxu1  ;;  %v7219_v8 = vmul.f32 %v11284_v10, %v11284_v10 }
 0x2b5   : > { %v11597_v56 = vpop.f32.mrb[70].mxu1 }
 0x2b6   : > { %v7566_v38 = vadd.f32 %v7565_v14, %v7215_v12  ;;  %v6857_v44 = vadd.f32 %v6856_v11, %v11282_v9  ;;  %v7220_v14 = vmul.f32 %v11300_v35, %v11300_v35 }
 0x2b8   : > { %v7567_v51 = vadd.f32 %v7566_v38, %v7216_v50  ;;  %v6858_v17 = vadd.f32 %v6857_v44, %v11287_v16  ;;  %v11604_v50 = vpop.f32.mrb[71].mxu1 }
 0x2b9   : > { %v9426_v38 = vpack.c.bf16 %v11604_v50, %v11595_v0 }
 0x2ba   : > { %v6859_v9 = vadd.f32 %v11279_v5, %v6858_v17  ;;  %v7568_v12 = vadd.f32 %v7567_v51, %v7217_v52  ;;  %v9431_v5 = vpack.c.bf16 %v11597_v56, %v11590_v60  ;;  %v11616_v51 = vpop.f32.mrb[72].mxu1  ;;  %v7222_v17 = vmul.f32 %v11297_v31, %v11297_v31 }
 0x2bb   : > { %9814 = vst [vmem:[%s11137_s20 + $0x3d0] sm:$0xff] %v9426_v38  }
 0x2bc   : > { %v6860_v16 = vadd.f32 %v11284_v10, %v6859_v9  ;;  %v7569_v11 = vadd.f32 %v7568_v12, %v7218_v40  ;;  %9815 = vst [vmem:[%s11137_s20 + $0x3d8] sm:$0xff] %v9431_v5   ;;  %v7221_v10 = vmul.f32 %v11305_v42, %v11305_v42  ;;  %v11621_v40 = vpop.f32.mrb[73].mxu1  ;;  %v7223_v12 = vmul.f32 %v11302_v36, %v11302_v36 }
 0x2bd   : > { %v11623_v9 = vpop.f32.mrb[74].mxu1 }
 0x2be   : > { %v7570_v49 = vadd.f32 %v7569_v11, %v7219_v8  ;;  %v6861_v1 = vadd.f32 %v6860_v16, %v11300_v35  ;;  %v7224_v16 = vmul.f32 %v11318_v61, %v11318_v61  ;;  %v11630_v11 = vpop.f32.mrb[75].mxu1 }
 0x2c0   : > { %v7571_v44 = vadd.f32 %v7570_v49, %v7220_v14  ;;  %v6862_v46 = vadd.f32 %v6861_v1, %v11305_v42  ;;  %v9436_v49 = vpack.c.bf16 %v11630_v11, %v11621_v40 }
 0x2c2   : > { %v6863_v52 = vadd.f32 %v11297_v31, %v6862_v46  ;;  %v7572_v35 = vadd.f32 %v7571_v44, %v7221_v10  ;;  %v9441_v31 = vpack.c.bf16 %v11623_v9, %v11616_v51  ;;  %9816 = vst [vmem:[%s11137_s20 + $0x3e0] sm:$0xff] %v9436_v49   ;;  %v11642_v44 = vpop.f32.mrb[76].mxu1  ;;  %v7226_v46 = vmul.f32 %v11315_v57, %v11315_v57 }
 0x2c4   : > { %v6864_v42 = vadd.f32 %v11302_v36, %v6863_v52  ;;  %v7573_v8 = vadd.f32 %v7572_v35, %v7222_v17  ;;  %9817 = vst [vmem:[%s11137_s20 + $0x3e8] sm:$0xff] %v9441_v31   ;;  %v7225_v36 = vmul.f32 %v11323_v4, %v11323_v4  ;;  %v11647_v17 = vpop.f32.mrb[77].mxu1  ;;  %v7227_v35 = vmul.f32 %v11320_v62, %v11320_v62 }
 0x2c5   : > { %v11649_v52 = vpop.f32.mrb[78].mxu1 }
 0x2c6   : > { %v7574_v14 = vadd.f32 %v7573_v8, %v7223_v12  ;;  %v6865_v5 = vadd.f32 %v6864_v42, %v11318_v61  ;;  %v7228_v42 = vmul.f32 %v11336_v27, %v11336_v27  ;;  %v11656_v8 = vpop.f32.mrb[79].mxu1 }
 0x2c8   : > { %v7575_v1 = vadd.f32 %v7574_v14, %v7224_v16  ;;  %v6866_v38 = vadd.f32 %v6865_v5, %v11323_v4  ;;  %v9446_v14 = vpack.c.bf16 %v11656_v8, %v11647_v17 }
 0x2ca   : > { %v6867_v10 = vadd.f32 %v11315_v57, %v6866_v38  ;;  %v7576_v61 = vadd.f32 %v7575_v1, %v7225_v36  ;;  %v9451_v57 = vpack.c.bf16 %v11649_v52, %v11642_v44  ;;  %9818 = vst [vmem:[%s11137_s20 + $0x3f0] sm:$0xff] %v9446_v14   ;;  %v11668_v1 = vpop.f32.mrb[80].mxu1  ;;  %v7230_v38 = vmul.f32 %v11333_v23, %v11333_v23 }
 0x2cc   : > { %v6868_v4 = vadd.f32 %v11320_v62, %v6867_v10  ;;  %v7577_v12 = vadd.f32 %v7576_v61, %v7226_v46  ;;  %9819 = vst [vmem:[%s11137_s20 + $0x3f8] sm:$0xff] %v9451_v57   ;;  %v7229_v62 = vmul.f32 %v11341_v37, %v11341_v37  ;;  %v11673_v46 = vpop.f32.mrb[81].mxu1  ;;  %v7231_v61 = vmul.f32 %v11338_v28, %v11338_v28 }
 0x2cd   : > { %v11675_v10 = vpop.f32.mrb[82].mxu1 }
 0x2ce   : > { %v7578_v16 = vadd.f32 %v7577_v12, %v7227_v35  ;;  %v6869_v31 = vadd.f32 %v6868_v4, %v11336_v27  ;;  %v7232_v4 = vmul.f32 %v11354_v58, %v11354_v58  ;;  %v11682_v12 = vpop.f32.mrb[83].mxu1 }
 0x2d0   : > { %v7579_v5 = vadd.f32 %v7578_v16, %v7228_v42  ;;  %v6870_v49 = vadd.f32 %v6869_v31, %v11341_v37  ;;  %v9456_v16 = vpack.c.bf16 %v11682_v12, %v11673_v46 }
 0x2d2   : > { %v6871_v36 = vadd.f32 %v11333_v23, %v6870_v49  ;;  %v7580_v27 = vadd.f32 %v7579_v5, %v7229_v62  ;;  %v9461_v23 = vpack.c.bf16 %v11675_v10, %v11668_v1  ;;  %9820 = vst [vmem:[%s11137_s20 + $0x400] sm:$0xff] %v9456_v16   ;;  %v11694_v5 = vpop.f32.mrb[84].mxu1  ;;  %v7234_v49 = vmul.f32 %v11351_v53, %v11351_v53 }
 0x2d4   : > { %v6872_v37 = vadd.f32 %v11338_v28, %v6871_v36  ;;  %v7581_v35 = vadd.f32 %v7580_v27, %v7230_v38  ;;  %9821 = vst [vmem:[%s11137_s20 + $0x408] sm:$0xff] %v9461_v23   ;;  %v7233_v28 = vmul.f32 %v11359_v3, %v11359_v3  ;;  %v11699_v38 = vpop.f32.mrb[85].mxu1  ;;  %v7235_v27 = vmul.f32 %v11356_v59, %v11356_v59 }
 0x2d5   : > { %v11701_v36 = vpop.f32.mrb[86].mxu1 }
 0x2d6   : > { %v7582_v42 = vadd.f32 %v7581_v35, %v7231_v61  ;;  %v6873_v57 = vadd.f32 %v6872_v37, %v11354_v58  ;;  %v7236_v37 = vmul.f32 %v11372_v30, %v11372_v30  ;;  %v11708_v35 = vpop.f32.mrb[87].mxu1 }
 0x2d8   : > { %v7583_v31 = vadd.f32 %v7582_v42, %v7232_v4  ;;  %v6874_v14 = vadd.f32 %v6873_v57, %v11359_v3  ;;  %v9466_v42 = vpack.c.bf16 %v11708_v35, %v11699_v38 }
 0x2da   : > { %v6875_v62 = vadd.f32 %v11351_v53, %v6874_v14  ;;  %v7584_v58 = vadd.f32 %v7583_v31, %v7233_v28  ;;  %v9471_v53 = vpack.c.bf16 %v11701_v36, %v11694_v5  ;;  %9822 = vst [vmem:[%s11137_s20 + $0x410] sm:$0xff] %v9466_v42   ;;  %v11720_v31 = vpop.f32.mrb[88].mxu1  ;;  %v7238_v14 = vmul.f32 %v11369_v24, %v11369_v24 }
 0x2dc   : > { %v6876_v3 = vadd.f32 %v11356_v59, %v6875_v62  ;;  %v7585_v61 = vadd.f32 %v7584_v58, %v7234_v49  ;;  %9823 = vst [vmem:[%s11137_s20 + $0x418] sm:$0xff] %v9471_v53   ;;  %v7237_v59 = vmul.f32 %v11377_v41, %v11377_v41  ;;  %v11725_v49 = vpop.f32.mrb[89].mxu1  ;;  %v7239_v58 = vmul.f32 %v11374_v32, %v11374_v32 }
 0x2dd   : > { %v11727_v62 = vpop.f32.mrb[90].mxu1 }
 0x2de   : > { %v7586_v4 = vadd.f32 %v7585_v61, %v7235_v27  ;;  %v6877_v23 = vadd.f32 %v6876_v3, %v11372_v30  ;;  %v7240_v3 = vmul.f32 %v11390_v6, %v11390_v6  ;;  %v11734_v61 = vpop.f32.mrb[91].mxu1 }
 0x2e0   : > { %v7587_v57 = vadd.f32 %v7586_v4, %v7236_v37  ;;  %v6878_v16 = vadd.f32 %v6877_v23, %v11377_v41  ;;  %v9476_v4 = vpack.c.bf16 %v11734_v61, %v11725_v49 }
 0x2e2   : > { %v6879_v28 = vadd.f32 %v11369_v24, %v6878_v16  ;;  %v7588_v30 = vadd.f32 %v7587_v57, %v7237_v59  ;;  %v9481_v24 = vpack.c.bf16 %v11727_v62, %v11720_v31  ;;  %9824 = vst [vmem:[%s11137_s20 + $0x420] sm:$0xff] %v9476_v4   ;;  %v11746_v57 = vpop.f32.mrb[92].mxu1  ;;  %v7242_v16 = vmul.f32 %v11387_v63, %v11387_v63 }
 0x2e4   : > { %v6880_v41 = vadd.f32 %v11374_v32, %v6879_v28  ;;  %v7589_v27 = vadd.f32 %v7588_v30, %v7238_v14  ;;  %9825 = vst [vmem:[%s11137_s20 + $0x428] sm:$0xff] %v9481_v24   ;;  %v7241_v32 = vmul.f32 %v11395_v15, %v11395_v15  ;;  %v11751_v14 = vpop.f32.mrb[93].mxu1  ;;  %v7243_v30 = vmul.f32 %v11392_v7, %v11392_v7 }
 0x2e5   : > { %v11753_v28 = vpop.f32.mrb[94].mxu1 }
 0x2e6   : > { %v7590_v37 = vadd.f32 %v7589_v27, %v7239_v58  ;;  %v6881_v53 = vadd.f32 %v6880_v41, %v11390_v6  ;;  %v7244_v41 = vmul.f32 %v11408_v47, %v11408_v47  ;;  %v11760_v27 = vpop.f32.mrb[95].mxu1 }
 0x2e8   : > { %v7591_v23 = vadd.f32 %v7590_v37, %v7240_v3  ;;  %v6882_v42 = vadd.f32 %v6881_v53, %v11395_v15  ;;  %v9486_v37 = vpack.c.bf16 %v11760_v27, %v11751_v14 }
 0x2ea   : > { %v6883_v59 = vadd.f32 %v11387_v63, %v6882_v42  ;;  %v7592_v6 = vadd.f32 %v7591_v23, %v7241_v32  ;;  %v9491_v63 = vpack.c.bf16 %v11753_v28, %v11746_v57  ;;  %9826 = vst [vmem:[%s11137_s20 + $0x430] sm:$0xff] %v9486_v37   ;;  %v11772_v23 = vpop.f32.mrb[96].mxu1  ;;  %v7246_v42 = vmul.f32 %v11405_v43, %v11405_v43 }
 0x2ec   : > { %v6884_v15 = vadd.f32 %v11392_v7, %v6883_v59  ;;  %v7593_v58 = vadd.f32 %v7592_v6, %v7242_v16  ;;  %9827 = vst [vmem:[%s11137_s20 + $0x438] sm:$0xff] %v9491_v63   ;;  %v7245_v7 = vmul.f32 %v11413_v55, %v11413_v55  ;;  %v11777_v16 = vpop.f32.mrb[97].mxu1  ;;  %v7247_v6 = vmul.f32 %v11410_v48, %v11410_v48 }
 0x2ed   : > { %v11779_v59 = vpop.f32.mrb[98].mxu1 }
 0x2ee   : > { %v7594_v3 = vadd.f32 %v7593_v58, %v7243_v30  ;;  %v6885_v24 = vadd.f32 %v6884_v15, %v11408_v47  ;;  %v7248_v15 = vmul.f32 %v11426_v29, %v11426_v29  ;;  %v11786_v58 = vpop.f32.mrb[99].mxu1 }
 0x2f0   : > { %v7595_v53 = vadd.f32 %v7594_v3, %v7244_v41  ;;  %v6886_v4 = vadd.f32 %v6885_v24, %v11413_v55  ;;  %v9496_v3 = vpack.c.bf16 %v11786_v58, %v11777_v16 }
 0x2f2   : > { %v6887_v32 = vadd.f32 %v11405_v43, %v6886_v4  ;;  %v7596_v47 = vadd.f32 %v7595_v53, %v7245_v7  ;;  %v9501_v43 = vpack.c.bf16 %v11779_v59, %v11772_v23  ;;  %9828 = vst [vmem:[%s11137_s20 + $0x440] sm:$0xff] %v9496_v3   ;;  %v11798_v53 = vpop.f32.mrb[100].mxu1  ;;  %v7250_v4 = vmul.f32 %v11423_v21, %v11423_v21 }
 0x2f4   : > { %v6888_v55 = vadd.f32 %v11410_v48, %v6887_v32  ;;  %v7597_v30 = vadd.f32 %v7596_v47, %v7246_v42  ;;  %9829 = vst [vmem:[%s11137_s20 + $0x448] sm:$0xff] %v9501_v43   ;;  %v7249_v48 = vmul.f32 %v11431_v45, %v11431_v45  ;;  %v11803_v42 = vpop.f32.mrb[101].mxu1  ;;  %v7251_v47 = vmul.f32 %v11428_v33, %v11428_v33 }
 0x2f5   : > { %v11805_v32 = vpop.f32.mrb[102].mxu1 }
 0x2f6   : > { %v7598_v41 = vadd.f32 %v7597_v30, %v7247_v6  ;;  %v6889_v63 = vadd.f32 %v6888_v55, %v11426_v29  ;;  %v7252_v55 = vmul.f32 %v11444_v19, %v11444_v19  ;;  %v11812_v30 = vpop.f32.mrb[103].mxu1 }
 0x2f8   : > { %v7599_v24 = vadd.f32 %v7598_v41, %v7248_v15  ;;  %v6890_v37 = vadd.f32 %v6889_v63, %v11431_v45  ;;  %v9506_v41 = vpack.c.bf16 %v11812_v30, %v11803_v42 }
 0x2fa   : > { %v6891_v7 = vadd.f32 %v11423_v21, %v6890_v37  ;;  %v7600_v29 = vadd.f32 %v7599_v24, %v7249_v48  ;;  %v9511_v21 = vpack.c.bf16 %v11805_v32, %v11798_v53  ;;  %9830 = vst [vmem:[%s11137_s20 + $0x450] sm:$0xff] %v9506_v41   ;;  %v11824_v24 = vpop.f32.mrb[104].mxu1  ;;  %v7254_v37 = vmul.f32 %v11441_v13, %v11441_v13  ;;  %v12712_v41 = vld [vmem:[#allocation17_spill] sm:$0xff] }
 0x2fb   : > { %12710 = vst [vmem:[#allocation36_spill] sm:$0xff] %v11824_v24 }
 0x2fc   : > { %v6892_v45 = vadd.f32 %v11428_v33, %v6891_v7  ;;  %v7601_v6 = vadd.f32 %v7600_v29, %v7250_v4  ;;  %9831 = vst [vmem:[%s11137_s20 + $0x458] sm:$0xff] %v9511_v21   ;;  %v7253_v33 = vmul.f32 %v11449_v39, %v11449_v39  ;;  %v11829_v4 = vpop.f32.mrb[105].mxu1  ;;  %v7255_v29 = vmul.f32 %v11446_v20, %v11446_v20 }
 0x2fd   : > { %v11831_v7 = vpop.f32.mrb[106].mxu1 }
 0x2fe   : > { %v7602_v15 = vadd.f32 %v7601_v6, %v7251_v47  ;;  %v6893_v43 = vadd.f32 %v6892_v45, %v11444_v19  ;;  %12711 = vst [vmem:[#allocation37_spill] sm:$0xff] %v11831_v7  ;;  %v7256_v45 = vmul.f32 %v11462_v18, %v11462_v18  ;;  %v11838_v6 = vpop.f32.mrb[107].mxu1 }
 0x300   : > { %v7603_v63 = vadd.f32 %v7602_v15, %v7252_v55  ;;  %v6894_v3 = vadd.f32 %v6893_v43, %v11449_v39  ;;  %v9516_v15 = vpack.c.bf16 %v11838_v6, %v11829_v4 }
 0x302   : > { %v6895_v48 = vadd.f32 %v11441_v13, %v6894_v3  ;;  %v7604_v19 = vadd.f32 %v7603_v63, %v7253_v33  ;;  %v9521_v13 = vpack.c.bf16 %v11831_v7, %v11824_v24  ;;  %9832 = vst [vmem:[%s11137_s20 + $0x460] sm:$0xff] %v9516_v15   ;;  %v11850_v3 = vpop.f32.mrb[108].mxu1  ;;  %v12714_v33 = vld [vmem:[#allocation15_spill] sm:$0xff]  ;;  %v12720_v7 = vld [vmem:[#allocation21_spill] sm:$0xff] }
 0x303   : > { %12713 = vst [vmem:[#allocation17_spill] sm:$0xff] %v11850_v3 }
 0x304   : > { %v6896_v39 = vadd.f32 %v11446_v20, %v6895_v48  ;;  %v7605_v47 = vadd.f32 %v7604_v19, %v7254_v37  ;;  %9833 = vst [vmem:[%s11137_s20 + $0x468] sm:$0xff] %v9521_v13   ;;  %v7257_v20 = vmul.f32 %v12712_v41, %v12712_v41  ;;  %v7258_v37 = vmul.f32 %v12714_v33, %v12714_v33  ;;  %v11855_v19 = vpop.f32.mrb[109].mxu1 }
 0x305   : > { %12715 = vst [vmem:[#allocation15_spill] sm:$0xff] %v11855_v19 }
 0x306   : > { %v7606_v55 = vadd.f32 %v7605_v47, %v7255_v29  ;;  %v6897_v21 = vadd.f32 %v6896_v39, %v11462_v18  ;;  %v11857_v29 = vpop.f32.mrb[110].mxu1  ;;  %v12717_v39 = vld [vmem:[#allocation16_spill] sm:$0xff] }
 0x307   : > { %12716 = vst [vmem:[#allocation38_spill] sm:$0xff] %v11857_v29  ;;  %v7259_v47 = vmul.f32 %v12717_v39, %v12717_v39  ;;  %v11864_v15 = vpop.f32.mrb[111].mxu1 }
 0x308   : > { %v7607_v43 = vadd.f32 %v7606_v55, %v7256_v45  ;;  %v6898_v63 = vadd.f32 %v6897_v21, %v12712_v41  ;;  %v12718_v55 = vld [vmem:[#allocation19_spill] sm:$0xff]  ;;  %12719 = vst [vmem:[#allocation16_spill] sm:$0xff] %v11864_v15  ;;  %v9531_v41 = vpack.c.bf16 %v11857_v29, %v11850_v3 }
 0x309   : > { %v7260_v21 = vmul.f32 %v12718_v55, %v12718_v55 }
 0x30a   : > { %v6899_v48 = vadd.f32 %v12714_v33, %v6898_v63  ;;  %v7608_v18 = vadd.f32 %v7607_v43, %v7257_v20  ;;  %v9526_v20 = vpack.c.bf16 %v11864_v15, %v11855_v19  ;;  %9835 = vst [vmem:[%s11137_s20 + $0x478] sm:$0xff] %v9531_v41   ;;  %v12727_v15 = vld [vmem:[#allocation25_spill] sm:$0xff] }
 0x30c   : > { %v6900_v45 = vadd.f32 %v12717_v39, %v6899_v48  ;;  %v7609_v13 = vadd.f32 %v7608_v18, %v7258_v37  ;;  %v7261_v37 = vmul.f32 %v12720_v7, %v12720_v7  ;;  %9834 = vst [vmem:[%s11137_s20 + $0x470] sm:$0xff] %v9526_v20   ;;  %v11876_v48 = vpop.f32.mrb[112].mxu1  ;;  %v12722_v18 = vld [vmem:[#allocation18_spill] sm:$0xff] }
 0x30d   : > { %12721 = vst [vmem:[#allocation19_spill] sm:$0xff] %v11876_v48  ;;  %v7262_v39 = vmul.f32 %v12722_v18, %v12722_v18 }
 0x30e   : > { %v7610_v43 = vadd.f32 %v7609_v13, %v7259_v47  ;;  %v6901_v63 = vadd.f32 %v6900_v45, %v12718_v55  ;;  %v11881_v13 = vpop.f32.mrb[113].mxu1 }
 0x30f   : > { %v11883_v55 = vpop.f32.mrb[114].mxu1 }
 0x310   : > { %v7611_v33 = vadd.f32 %v7610_v43, %v7260_v21  ;;  %v6902_v24 = vadd.f32 %v6901_v63, %v12720_v7  ;;  %12723 = vst [vmem:[#allocation21_spill] sm:$0xff] %v11883_v55  ;;  %v12724_v21 = vld [vmem:[#allocation20_spill] sm:$0xff]  ;;  %v12725_v63 = vld [vmem:[#allocation23_spill] sm:$0xff]  ;;  %v11890_v29 = vpop.f32.mrb[115].mxu1 }
 0x311   : > { %v7263_v41 = vmul.f32 %v12724_v21, %v12724_v21  ;;  %v7264_v20 = vmul.f32 %v12725_v63, %v12725_v63  ;;  %12726 = vst [vmem:[#allocation18_spill] sm:$0xff] %v11890_v29 }
 0x312   : > { %v6903_v47 = vadd.f32 %v12722_v18, %v6902_v24  ;;  %v7612_v45 = vadd.f32 %v7611_v33, %v7261_v37  ;;  %v9541_v24 = vpack.c.bf16 %v11883_v55, %v11876_v48  ;;  %v9536_v18 = vpack.c.bf16 %v11890_v29, %v11881_v13  ;;  %v12735_v29 = vld [vmem:[#allocation29_spill] sm:$0xff] }
 0x314   : > { %v6904_v7 = vadd.f32 %v12724_v21, %v6903_v47  ;;  %v7613_v43 = vadd.f32 %v7612_v45, %v7262_v39  ;;  %9837 = vst [vmem:[%s11137_s20 + $0x488] sm:$0xff] %v9541_v24   ;;  %v7265_v39 = vmul.f32 %v12727_v15, %v12727_v15  ;;  %9836 = vst [vmem:[%s11137_s20 + $0x480] sm:$0xff] %v9536_v18   ;;  %v11902_v47 = vpop.f32.mrb[116].mxu1  ;;  %v12729_v45 = vld [vmem:[#allocation22_spill] sm:$0xff] }
 0x315   : > { %12728 = vst [vmem:[#allocation20_spill] sm:$0xff] %v11902_v47  ;;  %v7266_v21 = vmul.f32 %v12729_v45, %v12729_v45 }
 0x316   : > { %v7614_v33 = vadd.f32 %v7613_v43, %v7263_v41  ;;  %v6905_v37 = vadd.f32 %v6904_v7, %v12725_v63  ;;  %v11907_v43 = vpop.f32.mrb[117].mxu1 }
 0x317   : > { %12730 = vst [vmem:[#allocation23_spill] sm:$0xff] %v11907_v43  ;;  %v11909_v63 = vpop.f32.mrb[118].mxu1 }
 0x318   : > { %v7615_v3 = vadd.f32 %v7614_v33, %v7264_v20  ;;  %v6906_v19 = vadd.f32 %v6905_v37, %v12727_v15  ;;  %12731 = vst [vmem:[#allocation25_spill] sm:$0xff] %v11909_v63  ;;  %v12732_v20 = vld [vmem:[#allocation24_spill] sm:$0xff]  ;;  %v12733_v37 = vld [vmem:[#allocation27_spill] sm:$0xff]  ;;  %v11916_v55 = vpop.f32.mrb[119].mxu1  ;;  %v9551_v48 = vpack.c.bf16 %v11909_v63, %v11902_v47 }
 0x319   : > { %v7267_v24 = vmul.f32 %v12732_v20, %v12732_v20  ;;  %v7268_v18 = vmul.f32 %v12733_v37, %v12733_v37  ;;  %12734 = vst [vmem:[#allocation22_spill] sm:$0xff] %v11916_v55 }
 0x31a   : > { %v6907_v41 = vadd.f32 %v12729_v45, %v6906_v19  ;;  %v7616_v7 = vadd.f32 %v7615_v3, %v7265_v39  ;;  %v9546_v3 = vpack.c.bf16 %v11916_v55, %v11907_v43  ;;  %9839 = vst [vmem:[%s11137_s20 + $0x498] sm:$0xff] %v9551_v48   ;;  %v12741_v43 = vld [vmem:[#allocation33_spill] sm:$0xff] }
 0x31c   : > { %v6908_v15 = vadd.f32 %v12732_v20, %v6907_v41  ;;  %v7617_v33 = vadd.f32 %v7616_v7, %v7266_v21  ;;  %9838 = vst [vmem:[%s11137_s20 + $0x490] sm:$0xff] %v9546_v3   ;;  %v7269_v21 = vmul.f32 %v12735_v29, %v12735_v29  ;;  %v11928_v7 = vpop.f32.mrb[120].mxu1  ;;  %v12737_v20 = vld [vmem:[#allocation26_spill] sm:$0xff]  ;;  %v12740_v3 = vld [vmem:[#allocation31_spill] sm:$0xff] }
 0x31d   : > { %12736 = vst [vmem:[#allocation24_spill] sm:$0xff] %v11928_v7  ;;  %v7270_v63 = vmul.f32 %v12737_v20, %v12737_v20 }
 0x31e   : > { %v7618_v19 = vadd.f32 %v7617_v33, %v7267_v24  ;;  %v6909_v39 = vadd.f32 %v6908_v15, %v12733_v37  ;;  %v11933_v33 = vpop.f32.mrb[121].mxu1  ;;  %v12739_v15 = vld [vmem:[#allocation28_spill] sm:$0xff] }
 0x31f   : > { %v11935_v48 = vpop.f32.mrb[122].mxu1  ;;  %v7271_v37 = vmul.f32 %v12739_v15, %v12739_v15 }
 0x320   : > { %v7619_v45 = vadd.f32 %v7618_v19, %v7268_v18  ;;  %v6910_v41 = vadd.f32 %v6909_v39, %v12735_v29  ;;  %12738 = vst [vmem:[#allocation27_spill] sm:$0xff] %v11935_v48  ;;  %v7272_v19 = vmul.f32 %v12740_v3, %v12740_v3  ;;  %v11942_v39 = vpop.f32.mrb[123].mxu1  ;;  %v9561_v55 = vpack.c.bf16 %v11935_v48, %v11928_v7 }
 0x322   : > { %v6911_v47 = vadd.f32 %v12737_v20, %v6910_v41  ;;  %v7620_v24 = vadd.f32 %v7619_v45, %v7269_v21  ;;  %v9556_v45 = vpack.c.bf16 %v11942_v39, %v11933_v33  ;;  %9841 = vst [vmem:[%s11137_s20 + $0x4a8] sm:$0xff] %v9561_v55  }
 0x324   : > { %v6912_v18 = vadd.f32 %v12739_v15, %v6911_v47  ;;  %v7621_v29 = vadd.f32 %v7620_v24, %v7270_v63  ;;  %9840 = vst [vmem:[%s11137_s20 + $0x4a0] sm:$0xff] %v9556_v45   ;;  %v7273_v63 = vmul.f32 %v12741_v43, %v12741_v43  ;;  %v11954_v24 = vpop.f32.mrb[124].mxu1  ;;  %v12743_v15 = vld [vmem:[#allocation30_spill] sm:$0xff]  ;;  %v7276_v45 = vmul.f32 %v11552_v54, %v11552_v54 }
 0x325   : > { %12742 = vst [vmem:[#allocation29_spill] sm:$0xff] %v11954_v24  ;;  %v7274_v48 = vmul.f32 %v12743_v15, %v12743_v15 }
 0x326   : > { %v7622_v41 = vadd.f32 %v7621_v29, %v7271_v37  ;;  %v6913_v21 = vadd.f32 %v6912_v18, %v12740_v3  ;;  %v11959_v29 = vpop.f32.mrb[125].mxu1  ;;  %v12745_v18 = vld [vmem:[#allocation32_spill] sm:$0xff] }
 0x327   : > { %v11961_v55 = vpop.f32.mrb[126].mxu1  ;;  %v7275_v3 = vmul.f32 %v12745_v18, %v12745_v18 }
 0x328   : > { %v7623_v20 = vadd.f32 %v7622_v41, %v7272_v19  ;;  %v6914_v47 = vadd.f32 %v6913_v21, %v12741_v43  ;;  %12744 = vst [vmem:[#allocation26_spill] sm:$0xff] %v11961_v55  ;;  %v11968_v41 = vpop.f32.mrb[127].mxu1  ;;  %v9571_v21 = vpack.c.bf16 %v11961_v55, %v11954_v24 }
 0x32a   : > { %v6915_v7 = vadd.f32 %v12743_v15, %v6914_v47  ;;  %v7624_v37 = vadd.f32 %v7623_v20, %v7273_v63  ;;  %v9566_v20 = vpack.c.bf16 %v11968_v41, %v11959_v29  ;;  %9843 = vst [vmem:[%s11137_s20 + $0x4b8] sm:$0xff] %v9571_v21  }
 0x32c   : > { %v6916_v19 = vadd.f32 %v12745_v18, %v6915_v7  ;;  %v7625_v43 = vadd.f32 %v7624_v37, %v7274_v48  ;;  %9842 = vst [vmem:[%s11137_s20 + $0x4b0] sm:$0xff] %v9566_v20   ;;  %v7277_v48 = vmul.f32 %v11557_v25, %v11557_v25  ;;  %v11980_v37 = vpop.f32.mrb[128].mxu1  ;;  %v12746_v18 = vld [vmem:[#allocation34_spill] sm:$0xff]  ;;  %v7280_v20 = vmul.f32 %v11570_v2, %v11570_v2 }
 0x32d   : > { %v7278_v55 = vmul.f32 %v12746_v18, %v12746_v18 }
 0x32e   : > { %v7626_v47 = vadd.f32 %v7625_v43, %v7275_v3  ;;  %v6917_v63 = vadd.f32 %v6916_v19, %v11552_v54  ;;  %v11985_v43 = vpop.f32.mrb[129].mxu1  ;;  %v12748_v19 = vld [vmem:[#allocation35_spill] sm:$0xff] }
 0x32f   : > { %v11987_v54 = vpop.f32.mrb[130].mxu1 }
 0x330   : > { %v7627_v15 = vadd.f32 %v7626_v47, %v7276_v45  ;;  %v6918_v7 = vadd.f32 %v6917_v63, %v11557_v25  ;;  %12747 = vst [vmem:[#allocation28_spill] sm:$0xff] %v11987_v54  ;;  %v7279_v45 = vmul.f32 %v12748_v19, %v12748_v19  ;;  %v11994_v47 = vpop.f32.mrb[131].mxu1  ;;  %v9581_v63 = vpack.c.bf16 %v11987_v54, %v11980_v37 }
 0x332   : > { %v6919_v24 = vadd.f32 %v12746_v18, %v6918_v7  ;;  %v7628_v3 = vadd.f32 %v7627_v15, %v7277_v48  ;;  %v9576_v15 = vpack.c.bf16 %v11994_v47, %v11985_v43  ;;  %9845 = vst [vmem:[%s11137_s20 + $0x4c8] sm:$0xff] %v9581_v63   ;;  %v7284_v63 = vmul.f32 %v11595_v0, %v11595_v0 }
 0x334   : > { %v6920_v21 = vadd.f32 %v12748_v19, %v6919_v24  ;;  %v7629_v25 = vadd.f32 %v7628_v3, %v7278_v55  ;;  %9844 = vst [vmem:[%s11137_s20 + $0x4c0] sm:$0xff] %v9576_v15   ;;  %v7281_v55 = vmul.f32 %v11577_v34, %v11577_v34  ;;  %v12006_v3 = vpop.f32.mrb[132].mxu1  ;;  %v7282_v19 = vmul.f32 %v11567_v26, %v11567_v26 }
 0x336   : > { %v7630_v7 = vadd.f32 %v7629_v25, %v7279_v45  ;;  %v6921_v48 = vadd.f32 %v6920_v21, %v11570_v2  ;;  %v12011_v25 = vpop.f32.mrb[133].mxu1  ;;  %v7283_v21 = vmul.f32 %v11572_v22, %v11572_v22 }
 0x337   : > { %v12013_v2 = vpop.f32.mrb[134].mxu1 }
 0x338   : > { %v7631_v18 = vadd.f32 %v7630_v7, %v7280_v20  ;;  %v6922_v24 = vadd.f32 %v6921_v48, %v11577_v34  ;;  %v12020_v15 = vpop.f32.mrb[135].mxu1  ;;  %v9591_v7 = vpack.c.bf16 %v12013_v2, %v12006_v3 }
 0x33a   : > { %v6923_v54 = vadd.f32 %v11567_v26, %v6922_v24  ;;  %v7632_v45 = vadd.f32 %v7631_v18, %v7281_v55  ;;  %v9586_v26 = vpack.c.bf16 %v12020_v15, %v12011_v25  ;;  %9847 = vst [vmem:[%s11137_s20 + $0x4d8] sm:$0xff] %v9591_v7   ;;  %v12032_v55 = vpop.f32.mrb[136].mxu1  ;;  %v7288_v7 = vmul.f32 %v11621_v40, %v11621_v40 }
 0x33c   : > { %v6924_v20 = vadd.f32 %v11572_v22, %v6923_v54  ;;  %v7633_v34 = vadd.f32 %v7632_v45, %v7282_v19  ;;  %9846 = vst [vmem:[%s11137_s20 + $0x4d0] sm:$0xff] %v9586_v26   ;;  %v7285_v54 = vmul.f32 %v11604_v50, %v11604_v50  ;;  %v7286_v19 = vmul.f32 %v11590_v60, %v11590_v60 }
 0x33e   : > { %v7634_v48 = vadd.f32 %v7633_v34, %v7283_v21  ;;  %v6925_v18 = vadd.f32 %v6924_v20, %v11595_v0  ;;  %v12037_v34 = vpop.f32.mrb[137].mxu1  ;;  %v7287_v20 = vmul.f32 %v11597_v56, %v11597_v56 }
 0x33f   : > { %v12039_v0 = vpop.f32.mrb[138].mxu1 }
 0x340   : > { %v7635_v24 = vadd.f32 %v7634_v48, %v7284_v63  ;;  %v6926_v22 = vadd.f32 %v6925_v18, %v11604_v50  ;;  %v12046_v26 = vpop.f32.mrb[139].mxu1  ;;  %v9601_v48 = vpack.c.bf16 %v12039_v0, %v12032_v55 }
 0x342   : > { %v6927_v45 = vadd.f32 %v11590_v60, %v6926_v22  ;;  %v7636_v21 = vadd.f32 %v7635_v24, %v7285_v54  ;;  %v9596_v60 = vpack.c.bf16 %v12046_v26, %v12037_v34  ;;  %9849 = vst [vmem:[%s11137_s20 + $0x4e8] sm:$0xff] %v9601_v48   ;;  %v7289_v54 = vmul.f32 %v11630_v11, %v11630_v11 }
 0x343   : > { %v7292_v48 = vmul.f32 %v11647_v17, %v11647_v17 }
 0x344   : > { %v6928_v63 = vadd.f32 %v11597_v56, %v6927_v45  ;;  %v7637_v50 = vadd.f32 %v7636_v21, %v7286_v19  ;;  %9848 = vst [vmem:[%s11137_s20 + $0x4e0] sm:$0xff] %v9596_v60   ;;  %v12058_v19 = vpop.f32.mrb[140].mxu1  ;;  %v7290_v45 = vmul.f32 %v11616_v51, %v11616_v51 }
 0x346   : > { %v7638_v18 = vadd.f32 %v7637_v50, %v7287_v20  ;;  %v6929_v24 = vadd.f32 %v6928_v63, %v11621_v40  ;;  %v12063_v50 = vpop.f32.mrb[141].mxu1  ;;  %v7291_v63 = vmul.f32 %v11623_v9, %v11623_v9 }
 0x347   : > { %v12065_v40 = vpop.f32.mrb[142].mxu1 }
 0x348   : > { %v7639_v22 = vadd.f32 %v7638_v18, %v7288_v7  ;;  %v6930_v56 = vadd.f32 %v6929_v24, %v11630_v11  ;;  %v12072_v60 = vpop.f32.mrb[143].mxu1  ;;  %v9611_v18 = vpack.c.bf16 %v12065_v40, %v12058_v19 }
 0x34a   : > { %v6931_v21 = vadd.f32 %v11616_v51, %v6930_v56  ;;  %v7640_v20 = vadd.f32 %v7639_v22, %v7289_v54  ;;  %v9606_v51 = vpack.c.bf16 %v12072_v60, %v12063_v50  ;;  %9851 = vst [vmem:[%s11137_s20 + $0x4f8] sm:$0xff] %v9611_v18   ;;  %v7293_v54 = vmul.f32 %v11656_v8, %v11656_v8 }
 0x34b   : > { %v7296_v18 = vmul.f32 %v11673_v46, %v11673_v46 }
 0x34c   : > { %v6932_v7 = vadd.f32 %v11623_v9, %v6931_v21  ;;  %v7641_v11 = vadd.f32 %v7640_v20, %v7290_v45  ;;  %9850 = vst [vmem:[%s11137_s20 + $0x4f0] sm:$0xff] %v9606_v51   ;;  %v12084_v45 = vpop.f32.mrb[144].mxu1  ;;  %v7294_v21 = vmul.f32 %v11642_v44, %v11642_v44 }
 0x34e   : > { %v7642_v24 = vadd.f32 %v7641_v11, %v7291_v63  ;;  %v6933_v22 = vadd.f32 %v6932_v7, %v11647_v17  ;;  %v12089_v11 = vpop.f32.mrb[145].mxu1  ;;  %v7295_v7 = vmul.f32 %v11649_v52, %v11649_v52 }
 0x34f   : > { %v12091_v17 = vpop.f32.mrb[146].mxu1 }
 0x350   : > { %v7643_v56 = vadd.f32 %v7642_v24, %v7292_v48  ;;  %v6934_v9 = vadd.f32 %v6933_v22, %v11656_v8  ;;  %v12098_v51 = vpop.f32.mrb[147].mxu1  ;;  %v9621_v24 = vpack.c.bf16 %v12091_v17, %v12084_v45 }
 0x352   : > { %v6935_v20 = vadd.f32 %v11642_v44, %v6934_v9  ;;  %v7644_v63 = vadd.f32 %v7643_v56, %v7293_v54  ;;  %v9616_v44 = vpack.c.bf16 %v12098_v51, %v12089_v11  ;;  %9853 = vst [vmem:[%s11137_s20 + $0x508] sm:$0xff] %v9621_v24   ;;  %v7297_v54 = vmul.f32 %v11682_v12, %v11682_v12 }
 0x353   : > { %v7300_v24 = vmul.f32 %v11699_v38, %v11699_v38 }
 0x354   : > { %v6936_v48 = vadd.f32 %v11649_v52, %v6935_v20  ;;  %v7645_v8 = vadd.f32 %v7644_v63, %v7294_v21  ;;  %9852 = vst [vmem:[%s11137_s20 + $0x500] sm:$0xff] %v9616_v44   ;;  %v12110_v21 = vpop.f32.mrb[148].mxu1  ;;  %v7298_v20 = vmul.f32 %v11668_v1, %v11668_v1 }
 0x356   : > { %v7646_v22 = vadd.f32 %v7645_v8, %v7295_v7  ;;  %v6937_v56 = vadd.f32 %v6936_v48, %v11673_v46  ;;  %v12115_v8 = vpop.f32.mrb[149].mxu1  ;;  %v7299_v48 = vmul.f32 %v11675_v10, %v11675_v10 }
 0x357   : > { %v12117_v46 = vpop.f32.mrb[150].mxu1 }
 0x358   : > { %v7647_v9 = vadd.f32 %v7646_v22, %v7296_v18  ;;  %v6938_v52 = vadd.f32 %v6937_v56, %v11682_v12  ;;  %v12124_v44 = vpop.f32.mrb[151].mxu1  ;;  %v9631_v22 = vpack.c.bf16 %v12117_v46, %v12110_v21 }
 0x35a   : > { %v6939_v63 = vadd.f32 %v11668_v1, %v6938_v52  ;;  %v7648_v7 = vadd.f32 %v7647_v9, %v7297_v54  ;;  %v9626_v1 = vpack.c.bf16 %v12124_v44, %v12115_v8  ;;  %9855 = vst [vmem:[%s11137_s20 + $0x518] sm:$0xff] %v9631_v22   ;;  %v7301_v54 = vmul.f32 %v11708_v35, %v11708_v35 }
 0x35b   : > { %v7304_v22 = vmul.f32 %v11725_v49, %v11725_v49 }
 0x35c   : > { %v6940_v18 = vadd.f32 %v11675_v10, %v6939_v63  ;;  %v7649_v12 = vadd.f32 %v7648_v7, %v7298_v20  ;;  %9854 = vst [vmem:[%s11137_s20 + $0x510] sm:$0xff] %v9626_v1   ;;  %v7302_v63 = vmul.f32 %v11694_v5, %v11694_v5 }
 0x35d   : > { %v12136_v20 = vpop.f32.mrb[152].mxu1 }
 0x35e   : > { %v7650_v56 = vadd.f32 %v7649_v12, %v7299_v48  ;;  %v6941_v9 = vadd.f32 %v6940_v18, %v11699_v38  ;;  %v12141_v12 = vpop.f32.mrb[153].mxu1  ;;  %v7303_v18 = vmul.f32 %v11701_v36, %v11701_v36 }
 0x35f   : > { %v12143_v38 = vpop.f32.mrb[154].mxu1 }
 0x360   : > { %v7651_v52 = vadd.f32 %v7650_v56, %v7300_v24  ;;  %v6942_v10 = vadd.f32 %v6941_v9, %v11708_v35  ;;  %v12150_v1 = vpop.f32.mrb[155].mxu1  ;;  %v9641_v56 = vpack.c.bf16 %v12143_v38, %v12136_v20 }
 0x362   : > { %v6943_v7 = vadd.f32 %v11694_v5, %v6942_v10  ;;  %v7652_v48 = vadd.f32 %v7651_v52, %v7301_v54  ;;  %v9636_v5 = vpack.c.bf16 %v12150_v1, %v12141_v12  ;;  %9857 = vst [vmem:[%s11137_s20 + $0x528] sm:$0xff] %v9641_v56   ;;  %v7305_v54 = vmul.f32 %v11734_v61, %v11734_v61 }
 0x363   : > { %v7308_v56 = vmul.f32 %v11751_v14, %v11751_v14 }
 0x364   : > { %v6944_v24 = vadd.f32 %v11701_v36, %v6943_v7  ;;  %v7653_v35 = vadd.f32 %v7652_v48, %v7302_v63  ;;  %9856 = vst [vmem:[%s11137_s20 + $0x520] sm:$0xff] %v9636_v5   ;;  %v7306_v7 = vmul.f32 %v11720_v31, %v11720_v31 }
 0x365   : > { %v12162_v63 = vpop.f32.mrb[156].mxu1 }
 0x366   : > { %v7654_v9 = vadd.f32 %v7653_v35, %v7303_v18  ;;  %v6945_v52 = vadd.f32 %v6944_v24, %v11725_v49  ;;  %v12167_v35 = vpop.f32.mrb[157].mxu1  ;;  %v7307_v24 = vmul.f32 %v11727_v62, %v11727_v62 }
 0x367   : > { %v12169_v49 = vpop.f32.mrb[158].mxu1 }
 0x368   : > { %v7655_v10 = vadd.f32 %v7654_v9, %v7304_v22  ;;  %v6946_v36 = vadd.f32 %v6945_v52, %v11734_v61  ;;  %v12176_v5 = vpop.f32.mrb[159].mxu1  ;;  %v9651_v9 = vpack.c.bf16 %v12169_v49, %v12162_v63 }
 0x36a   : > { %v6947_v48 = vadd.f32 %v11720_v31, %v6946_v36  ;;  %v7656_v18 = vadd.f32 %v7655_v10, %v7305_v54  ;;  %v9646_v31 = vpack.c.bf16 %v12176_v5, %v12167_v35  ;;  %9859 = vst [vmem:[%s11137_s20 + $0x538] sm:$0xff] %v9651_v9   ;;  %v7309_v54 = vmul.f32 %v11760_v27, %v11760_v27 }
 0x36b   : > { %v7312_v9 = vmul.f32 %v11777_v16, %v11777_v16 }
 0x36c   : > { %v6948_v22 = vadd.f32 %v11727_v62, %v6947_v48  ;;  %v7657_v61 = vadd.f32 %v7656_v18, %v7306_v7  ;;  %9858 = vst [vmem:[%s11137_s20 + $0x530] sm:$0xff] %v9646_v31   ;;  %v7310_v48 = vmul.f32 %v11746_v57, %v11746_v57 }
 0x36d   : > { %v12188_v7 = vpop.f32.mrb[160].mxu1 }
 0x36e   : > { %v7658_v52 = vadd.f32 %v7657_v61, %v7307_v24  ;;  %v6949_v10 = vadd.f32 %v6948_v22, %v11751_v14  ;;  %v12193_v61 = vpop.f32.mrb[161].mxu1  ;;  %v7311_v22 = vmul.f32 %v11753_v28, %v11753_v28 }
 0x36f   : > { %v12195_v14 = vpop.f32.mrb[162].mxu1 }
 0x370   : > { %v7659_v36 = vadd.f32 %v7658_v52, %v7308_v56  ;;  %v6950_v62 = vadd.f32 %v6949_v10, %v11760_v27  ;;  %v12202_v31 = vpop.f32.mrb[163].mxu1  ;;  %v9661_v52 = vpack.c.bf16 %v12195_v14, %v12188_v7 }
 0x372   : > { %v6951_v18 = vadd.f32 %v11746_v57, %v6950_v62  ;;  %v7660_v24 = vadd.f32 %v7659_v36, %v7309_v54  ;;  %v9656_v57 = vpack.c.bf16 %v12202_v31, %v12193_v61  ;;  %9861 = vst [vmem:[%s11137_s20 + $0x548] sm:$0xff] %v9661_v52   ;;  %v7313_v54 = vmul.f32 %v11786_v58, %v11786_v58 }
 0x373   : > { %v7316_v52 = vmul.f32 %v11803_v42, %v11803_v42 }
 0x374   : > { %v6952_v56 = vadd.f32 %v11753_v28, %v6951_v18  ;;  %v7661_v27 = vadd.f32 %v7660_v24, %v7310_v48  ;;  %9860 = vst [vmem:[%s11137_s20 + $0x540] sm:$0xff] %v9656_v57   ;;  %v7314_v18 = vmul.f32 %v11772_v23, %v11772_v23 }
 0x375   : > { %v12214_v48 = vpop.f32.mrb[164].mxu1 }
 0x376   : > { %v7662_v10 = vadd.f32 %v7661_v27, %v7311_v22  ;;  %v6953_v36 = vadd.f32 %v6952_v56, %v11777_v16  ;;  %v12219_v27 = vpop.f32.mrb[165].mxu1  ;;  %v7315_v56 = vmul.f32 %v11779_v59, %v11779_v59 }
 0x377   : > { %v12221_v16 = vpop.f32.mrb[166].mxu1 }
 0x378   : > { %v7663_v62 = vadd.f32 %v7662_v10, %v7312_v9  ;;  %v6954_v28 = vadd.f32 %v6953_v36, %v11786_v58  ;;  %v12228_v57 = vpop.f32.mrb[167].mxu1  ;;  %v9671_v10 = vpack.c.bf16 %v12221_v16, %v12214_v48 }
 0x37a   : > { %v6955_v24 = vadd.f32 %v11772_v23, %v6954_v28  ;;  %v7664_v22 = vadd.f32 %v7663_v62, %v7313_v54  ;;  %v9666_v23 = vpack.c.bf16 %v12228_v57, %v12219_v27  ;;  %9863 = vst [vmem:[%s11137_s20 + $0x558] sm:$0xff] %v9671_v10   ;;  %v7317_v54 = vmul.f32 %v11812_v30, %v11812_v30 }
 0x37b   : > { %v7320_v10 = vmul.f32 %v11829_v4, %v11829_v4 }
 0x37c   : > { %v6956_v9 = vadd.f32 %v11779_v59, %v6955_v24  ;;  %v7665_v58 = vadd.f32 %v7664_v22, %v7314_v18  ;;  %9862 = vst [vmem:[%s11137_s20 + $0x550] sm:$0xff] %v9666_v23   ;;  %v7318_v24 = vmul.f32 %v11798_v53, %v11798_v53 }
 0x37d   : > { %v12240_v18 = vpop.f32.mrb[168].mxu1 }
 0x37e   : > { %v7666_v36 = vadd.f32 %v7665_v58, %v7315_v56  ;;  %v6957_v62 = vadd.f32 %v6956_v9, %v11803_v42  ;;  %12749 = vst [vmem:[#allocation31_spill] sm:$0xff] %v12240_v18  ;;  %v12245_v58 = vpop.f32.mrb[169].mxu1  ;;  %v7319_v9 = vmul.f32 %v11805_v32, %v11805_v32 }
 0x37f   : > { %12750 = vst [vmem:[#allocation33_spill] sm:$0xff] %v12245_v58  ;;  %v12247_v42 = vpop.f32.mrb[170].mxu1 }
 0x380   : > { %v7667_v28 = vadd.f32 %v7666_v36, %v7316_v52  ;;  %v6958_v59 = vadd.f32 %v6957_v62, %v11812_v30  ;;  %12751 = vst [vmem:[#allocation30_spill] sm:$0xff] %v12247_v42  ;;  %v12254_v23 = vpop.f32.mrb[171].mxu1  ;;  %v9681_v36 = vpack.c.bf16 %v12247_v42, %v12240_v18 }
 0x381   : > { %12752 = vst [vmem:[#allocation32_spill] sm:$0xff] %v12254_v23 }
 0x382   : > { %v6959_v22 = vadd.f32 %v11798_v53, %v6958_v59  ;;  %v7668_v56 = vadd.f32 %v7667_v28, %v7317_v54  ;;  %v9676_v53 = vpack.c.bf16 %v12254_v23, %v12245_v58  ;;  %9865 = vst [vmem:[%s11137_s20 + $0x568] sm:$0xff] %v9681_v36   ;;  %v7321_v54 = vmul.f32 %v11838_v6, %v11838_v6  ;;  %v12759_v23 = vld [vmem:[#allocation16_spill] sm:$0xff] }
 0x384   : > { %v6960_v52 = vadd.f32 %v11805_v32, %v6959_v22  ;;  %v7669_v30 = vadd.f32 %v7668_v56, %v7318_v24  ;;  %9864 = vst [vmem:[%s11137_s20 + $0x560] sm:$0xff] %v9676_v53   ;;  %v12754_v22 = vld [vmem:[#allocation36_spill] sm:$0xff]  ;;  %v12757_v53 = vld [vmem:[#allocation15_spill] sm:$0xff] }
 0x385   : > { %v12266_v24 = vpop.f32.mrb[172].mxu1  ;;  %v7322_v56 = vmul.f32 %v12754_v22, %v12754_v22 }
 0x386   : > { %v7670_v62 = vadd.f32 %v7669_v30, %v7319_v9  ;;  %v6961_v28 = vadd.f32 %v6960_v52, %v11829_v4  ;;  %12753 = vst [vmem:[#allocation34_spill] sm:$0xff] %v12266_v24  ;;  %v12271_v30 = vpop.f32.mrb[173].mxu1  ;;  %v12756_v52 = vld [vmem:[#allocation37_spill] sm:$0xff] }
 0x387   : > { %v12273_v4 = vpop.f32.mrb[174].mxu1 }
 0x388   : > { %v7671_v59 = vadd.f32 %v7670_v62, %v7320_v10  ;;  %v6962_v32 = vadd.f32 %v6961_v28, %v11838_v6  ;;  %12755 = vst [vmem:[#allocation35_spill] sm:$0xff] %v12273_v4  ;;  %v7323_v10 = vmul.f32 %v12756_v52, %v12756_v52  ;;  %v7324_v62 = vmul.f32 %v12757_v53, %v12757_v53  ;;  %v12280_v28 = vpop.f32.mrb[175].mxu1 }
 0x389   : > { %12758 = vst [vmem:[#allocation36_spill] sm:$0xff] %v12280_v28  ;;  %v9691_v18 = vpack.c.bf16 %v12273_v4, %v12266_v24  ;;  %v12761_v24 = vld [vmem:[#allocation38_spill] sm:$0xff] }
 0x38a   : > { %v6963_v42 = vadd.f32 %v12754_v22, %v6962_v32  ;;  %v7672_v9 = vadd.f32 %v7671_v59, %v7321_v54  ;;  %v9686_v59 = vpack.c.bf16 %v12280_v28, %v12271_v30  ;;  %v7327_v28 = vmul.f32 %v12761_v24, %v12761_v24 }
 0x38b   : > { %9867 = vst [vmem:[%s11137_s20 + $0x578] sm:$0xff] %v9691_v18   ;;  %v7328_v18 = vmul.f32 %v11881_v13, %v11881_v13 }
 0x38c   : > { %v6964_v36 = vadd.f32 %v12756_v52, %v6963_v42  ;;  %v7673_v6 = vadd.f32 %v7672_v9, %v7322_v56  ;;  %9866 = vst [vmem:[%s11137_s20 + $0x570] sm:$0xff] %v9686_v59   ;;  %v7325_v56 = vmul.f32 %v12759_v23, %v12759_v23  ;;  %v12760_v9 = vld [vmem:[#allocation17_spill] sm:$0xff] }
 0x38d   : > { %v7326_v52 = vmul.f32 %v12760_v9, %v12760_v9 }
 0x38e   : > { %v7674_v32 = vadd.f32 %v7673_v6, %v7323_v10  ;;  %v6965_v54 = vadd.f32 %v6964_v36, %v12757_v53 }
 0x390   : > { %v7675_v22 = vadd.f32 %v7674_v32, %v7324_v62  ;;  %v6966_v42 = vadd.f32 %v6965_v54, %v12759_v23  ;;  %v12762_v62 = vld [vmem:[#allocation18_spill] sm:$0xff]  ;;  %v12763_v54 = vld [vmem:[#allocation19_spill] sm:$0xff] }
 0x391   : > { %v7329_v32 = vmul.f32 %v12762_v62, %v12762_v62 }
 0x392   : > { %v6967_v58 = vadd.f32 %v12760_v9, %v6966_v42  ;;  %v7676_v4 = vadd.f32 %v7675_v22, %v7325_v56  ;;  %v7330_v22 = vmul.f32 %v12763_v54, %v12763_v54  ;;  %v12765_v56 = vld [vmem:[#allocation23_spill] sm:$0xff] }
 0x393   : > { %v7332_v9 = vmul.f32 %v12765_v56, %v12765_v56 }
 0x394   : > { %v6968_v10 = vadd.f32 %v12761_v24, %v6967_v58  ;;  %v7677_v36 = vadd.f32 %v7676_v4, %v7326_v52  ;;  %v12764_v4 = vld [vmem:[#allocation21_spill] sm:$0xff] }
 0x395   : > { %v7331_v42 = vmul.f32 %v12764_v4, %v12764_v4 }
 0x396   : > { %v7678_v6 = vadd.f32 %v7677_v36, %v7327_v28  ;;  %v6969_v53 = vadd.f32 %v6968_v10, %v11881_v13 }
 0x398   : > { %v7679_v23 = vadd.f32 %v7678_v6, %v7328_v18  ;;  %v6970_v59 = vadd.f32 %v6969_v53, %v12762_v62  ;;  %v12766_v18 = vld [vmem:[#allocation22_spill] sm:$0xff] }
 0x399   : > { %v7333_v53 = vmul.f32 %v12766_v18, %v12766_v18 }
 0x39a   : > { %v6971_v58 = vadd.f32 %v12763_v54, %v6970_v59  ;;  %v7680_v24 = vadd.f32 %v7679_v23, %v7329_v32  ;;  %v12767_v23 = vld [vmem:[#allocation20_spill] sm:$0xff]  ;;  %v12768_v54 = vld [vmem:[#allocation25_spill] sm:$0xff] }
 0x39b   : > { %v7334_v62 = vmul.f32 %v12767_v23, %v12767_v23 }
 0x39c   : > { %v7681_v28 = vadd.f32 %v7680_v24, %v7330_v22  ;;  %v6972_v13 = vadd.f32 %v12764_v4, %v6971_v58  ;;  %v7335_v22 = vmul.f32 %v12768_v54, %v12768_v54  ;;  %v7336_v4 = vmul.f32 %v11933_v33, %v11933_v33 }
 0x39e   : > { %v6973_v52 = vadd.f32 %v6972_v13, %v12765_v56  ;;  %v7682_v10 = vadd.f32 %v7681_v28, %v7331_v42 }
 0x3a0   : > { %v7683_v36 = vadd.f32 %v7682_v10, %v7332_v9  ;;  %v6974_v6 = vadd.f32 %v6973_v52, %v12766_v18 }
 0x3a2   : > { %v6975_v59 = vadd.f32 %v12767_v23, %v6974_v6  ;;  %v7684_v32 = vadd.f32 %v7683_v36, %v7333_v53 }
 0x3a4   : > { %v7685_v58 = vadd.f32 %v7684_v32, %v7334_v62  ;;  %v6976_v24 = vadd.f32 %v12768_v54, %v6975_v59 }
 0x3a5   : > { %10775 = shalt.err (!%p10772_p5)
}
 0x3a6   : > { %s10776_s27 = scalar_lea.hbm %s12324_s7, 22528  ;;  %s10780_s6 = scalar_lea.hbm %s12579_s2, 45056 }
 0x3a7   : > { %p10777_p9 = scmp.ne.s32.totalorder %s12324_s7, %s10776_s27  ;;  %p10781_p3 = scmp.lt.u32.totalorder %s12324_s7, %s12579_s2 }
 0x3a8   : > { %p10782_p7 = scmp.lt.u32.totalorder %s10780_s6, %s10776_s27  ;;  %p10784_p4 = scmp.lt.u32.totalorder %s10776_s27, %s12324_s7 }
 0x3a9   : > { %p10778_p1 = pnand %p10777_p9, %p11005_p10 }
 0x3aa   : > { %p10783_p11 = por %p10782_p7, %p10781_p3 }
 0x3ab   : > { %p10779_p2 = pneg %p10778_p1 }
 0x3ac   : > { %p10785_p6 = por %p10784_p4, %p10783_p11 }
 0x3ae   : > { %p10786_p8 = pnand %p10785_p6, %p10779_p2 }
 0x3b0   : > { %10789 = shalt.err (!%p10786_p8)
}
 0x3b1   : > { %s10887_s22 = smov 64   ;;  %s10888_s10 = smov 4   ;;  %v6977_v42 = vadd.f32 %v6976_v24, %v11933_v33  ;;  %v7686_v28 = vadd.f32 %v7685_v58, %v7335_v22  ;;  %v7337_v9 = vmul.f32 %v11942_v39, %v11942_v39  ;;  %v12769_v52 = vld [vmem:[#allocation24_spill] sm:$0xff]  ;;  %v12770_v6 = vld [vmem:[#allocation27_spill] sm:$0xff]  ;;  %v7340_v33 = vmul.f32 %v11959_v29, %v11959_v29  ;;  %v12771_v58 = vld [vmem:[#allocation29_spill] sm:$0xff] }
 0x3b2   : > { %10444 = dma.vmem_to_hbm [thread:$0]  (%p11005_p10), %s12326_s24, 22528, %s12324_s7, %s7751_s18, %s10887_s22, %s10887_s22, %s10888_s10   ;;  %v7338_v10 = vmul.f32 %v12769_v52, %v12769_v52  ;;  %v7339_v53 = vmul.f32 %v12770_v6, %v12770_v6  ;;  %v7341_v22 = vmul.f32 %v11968_v41, %v11968_v41  ;;  %v7342_v24 = vmul.f32 %v12771_v58, %v12771_v58 }
 0x3b3   : > { %v7687_v13 = vadd.f32 %v7686_v28, %v7336_v4  ;;  %v6978_v56 = vadd.f32 %v6977_v42, %v11942_v39  ;;  %v12772_v28 = vld [vmem:[#allocation26_spill] sm:$0xff]  ;;  %s7917_s24 = sshll.u32 %s11062_s25, 3  ;;  %s8456_s11 = sshll.u32 %s10872_s15, 7 }
 0x3b4   : > { %s237_s7 = scalar_lea.vmem [#allocation9], %s7917_s24  ;;  %s12528_s30 = scalar_lea.hbm %s12580_s3, %s8456_s11 }
 0x3b5   : > { %v6979_v36 = vadd.f32 %v12769_v52, %v6978_v56  ;;  %v7688_v18 = vadd.f32 %v7687_v13, %v7337_v9  ;;  %v7343_v13 = vmul.f32 %v12772_v28, %v12772_v28  ;;  %s7785_s18 = sshll.u32 %s237_s7, 4  ;;  %s7756_s21 = scalar_lea.sflag [#allocation10], %s11062_s25  ;;  %s12530_s18 = int_to_ptr.vmem [resolvable:$true] %s7785_s18 }
 0x3b6   : > { %s10790_s27 = scalar_lea.vmem %s12530_s18, 128  ;;  %s10889_s15 = smov [#allocation9]  }
 0x3b7   : > { %v7689_v23 = vadd.f32 %v7688_v18, %v7338_v10  ;;  %v6980_v62 = vadd.f32 %v12770_v6, %v6979_v36  ;;  %v7345_v18 = vmul.f32 %v11994_v47, %v11994_v47  ;;  %v7346_v6 = vmul.f32 %v11980_v37, %v11980_v37  ;;  %p10791_p12 = scmp.ne.s32.totalorder %s12530_s18, %s10790_s27  ;;  %s10794_s4 = sshll.u32 %s10889_s15, 4  ;;  %s10795_s4 = int_to_ptr.vmem [resolvable:$false] %s10794_s4 }
 0x3b8   : > { %s10796_s26 = scalar_lea.vmem %s10795_s4, 256  ;;  %p10797_p5 = scmp.lt.s32.totalorder %s12530_s18, %s10795_s4 }
 0x3b9   : > { %v6981_v59 = vadd.f32 %v6980_v62, %v11959_v29  ;;  %v7690_v32 = vadd.f32 %v7689_v23, %v7339_v53  ;;  %v7344_v29 = vmul.f32 %v11985_v43, %v11985_v43  ;;  %v12773_v62 = vld [vmem:[#allocation28_spill] sm:$0xff]  ;;  %p10792_p13 = pnand %p10791_p12, %p11005_p10  ;;  %p10798_p9 = scmp.lt.s32.totalorder %s10796_s26, %s10790_s27 }
 0x3bb   : > { %v7691_v54 = vadd.f32 %v7690_v32, %v7340_v33  ;;  %v6982_v39 = vadd.f32 %v6981_v59, %v11968_v41  ;;  %v7347_v33 = vmul.f32 %v12773_v62, %v12773_v62  ;;  %p10793_p0 = pneg %p10792_p13  ;;  %p10799_p1 = por %p10798_p9, %p10797_p5 }
 0x3bd   : > { %v6983_v4 = vadd.f32 %v12771_v58, %v6982_v39  ;;  %v7692_v42 = vadd.f32 %v7691_v54, %v7341_v22  ;;  %v7349_v58 = vmul.f32 %v12020_v15, %v12020_v15  ;;  %p10800_p2 = pnand %p10799_p1, %p10793_p0 }
 0x3bf   : > { %v7693_v56 = vadd.f32 %v7692_v42, %v7342_v24  ;;  %v6984_v9 = vadd.f32 %v12772_v28, %v6983_v4  ;;  %v7351_v42 = vmul.f32 %v12013_v2, %v12013_v2 }
 0x3c1   : > { %v6985_v52 = vadd.f32 %v6984_v9, %v11985_v43  ;;  %v7694_v10 = vadd.f32 %v7693_v56, %v7343_v13  ;;  %v7348_v43 = vmul.f32 %v12011_v25, %v12011_v25 }
 0x3c3   : > { %v7695_v36 = vadd.f32 %v7694_v10, %v7344_v29  ;;  %v6986_v41 = vadd.f32 %v6985_v52, %v11994_v47  ;;  %v7353_v52 = vmul.f32 %v12046_v26, %v12046_v26 }
 0x3c5   : > { %v6987_v53 = vadd.f32 %v11980_v37, %v6986_v41  ;;  %v7696_v23 = vadd.f32 %v7695_v36, %v7345_v18  ;;  %v7350_v37 = vmul.f32 %v12006_v3, %v12006_v3 }
 0x3c7   : > { %v7697_v59 = vadd.f32 %v7696_v23, %v7346_v6  ;;  %v6988_v32 = vadd.f32 %v12773_v62, %v6987_v53  ;;  %v7357_v62 = vmul.f32 %v12072_v60, %v12072_v60 }
 0x3c9   : > { %v6989_v54 = vadd.f32 %v6988_v32, %v12011_v25  ;;  %v7698_v39 = vadd.f32 %v7697_v59, %v7347_v33  ;;  %v7352_v25 = vmul.f32 %v12037_v34, %v12037_v34 }
 0x3cb   : > { %v7699_v22 = vadd.f32 %v7698_v39, %v7348_v43  ;;  %v6990_v47 = vadd.f32 %v6989_v54, %v12020_v15 }
 0x3cd   : > { %v6991_v24 = vadd.f32 %v12006_v3, %v6990_v47  ;;  %v7700_v4 = vadd.f32 %v7699_v22, %v7349_v58  ;;  %v7354_v3 = vmul.f32 %v12032_v55, %v12032_v55  ;;  %v7361_v47 = vmul.f32 %v12098_v51, %v12098_v51 }
 0x3cf   : > { %v7701_v28 = vadd.f32 %v7700_v4, %v7350_v37  ;;  %v6992_v13 = vadd.f32 %v12013_v2, %v6991_v24  ;;  %v7355_v2 = vmul.f32 %v12039_v0, %v12039_v0 }
 0x3d1   : > { %v6993_v56 = vadd.f32 %v6992_v13, %v12037_v34  ;;  %v7702_v9 = vadd.f32 %v7701_v28, %v7351_v42  ;;  %v7356_v34 = vmul.f32 %v12063_v50, %v12063_v50 }
 0x3d3   : > { %v7703_v29 = vadd.f32 %v7702_v9, %v7352_v25  ;;  %v6994_v15 = vadd.f32 %v6993_v56, %v12046_v26  ;;  %v7365_v25 = vmul.f32 %v12124_v44, %v12124_v44 }
 0x3d5   : > { %v6995_v10 = vadd.f32 %v12032_v55, %v6994_v15  ;;  %v7704_v36 = vadd.f32 %v7703_v29, %v7353_v52  ;;  %v7358_v55 = vmul.f32 %v12058_v19, %v12058_v19 }
 0x3d7   : > { %v7705_v41 = vadd.f32 %v7704_v36, %v7354_v3  ;;  %v6996_v18 = vadd.f32 %v12039_v0, %v6995_v10  ;;  %v7359_v0 = vmul.f32 %v12065_v40, %v12065_v40  ;;  %v7369_v36 = vmul.f32 %v12150_v1, %v12150_v1 }
 0x3d9   : > { %v6997_v6 = vadd.f32 %v6996_v18, %v12063_v50  ;;  %v7706_v53 = vadd.f32 %v7705_v41, %v7355_v2  ;;  %v7360_v50 = vmul.f32 %v12089_v11, %v12089_v11 }
 0x3db   : > { %v7707_v23 = vadd.f32 %v7706_v53, %v7356_v34  ;;  %v6998_v26 = vadd.f32 %v6997_v6, %v12072_v60 }
 0x3dd   : > { %v6999_v33 = vadd.f32 %v12058_v19, %v6998_v26  ;;  %v7708_v59 = vadd.f32 %v7707_v23, %v7357_v62  ;;  %v7362_v19 = vmul.f32 %v12084_v45, %v12084_v45  ;;  %v7373_v26 = vmul.f32 %v12176_v5, %v12176_v5 }
 0x3df   : > { %v7709_v32 = vadd.f32 %v7708_v59, %v7358_v55  ;;  %v7000_v43 = vadd.f32 %v12065_v40, %v6999_v33  ;;  %v7363_v40 = vmul.f32 %v12091_v17, %v12091_v17 }
 0x3e1   : > { %v7001_v54 = vadd.f32 %v7000_v43, %v12089_v11  ;;  %v7710_v39 = vadd.f32 %v7709_v32, %v7359_v0  ;;  %v7364_v11 = vmul.f32 %v12115_v8, %v12115_v8 }
 0x3e3   : > { %v7711_v22 = vadd.f32 %v7710_v39, %v7360_v50  ;;  %v7002_v60 = vadd.f32 %v7001_v54, %v12098_v51  ;;  %v7377_v50 = vmul.f32 %v12202_v31, %v12202_v31 }
 0x3e5   : > { %v7003_v58 = vadd.f32 %v12084_v45, %v7002_v60  ;;  %v7712_v37 = vadd.f32 %v7711_v22, %v7361_v47  ;;  %v7366_v45 = vmul.f32 %v12110_v21, %v12110_v21 }
 0x3e7   : > { %v7713_v24 = vadd.f32 %v7712_v37, %v7362_v19  ;;  %v7004_v4 = vadd.f32 %v12091_v17, %v7003_v58  ;;  %v7367_v17 = vmul.f32 %v12117_v46, %v12117_v46  ;;  %v7381_v37 = vmul.f32 %v12228_v57, %v12228_v57 }
 0x3e9   : > { %v7005_v42 = vadd.f32 %v7004_v4, %v12115_v8  ;;  %v7714_v28 = vadd.f32 %v7713_v24, %v7363_v40  ;;  %v7368_v8 = vmul.f32 %v12141_v12, %v12141_v12 }
 0x3eb   : > { %v7715_v13 = vadd.f32 %v7714_v28, %v7364_v11  ;;  %v7006_v51 = vadd.f32 %v7005_v42, %v12124_v44 }
 0x3ed   : > { %v7007_v56 = vadd.f32 %v12110_v21, %v7006_v51  ;;  %v7716_v9 = vadd.f32 %v7715_v13, %v7365_v25  ;;  %v7370_v21 = vmul.f32 %v12136_v20, %v12136_v20 }
 0x3ef   : > { %v7717_v29 = vadd.f32 %v7716_v9, %v7366_v45  ;;  %v7008_v15 = vadd.f32 %v12117_v46, %v7007_v56  ;;  %v7371_v46 = vmul.f32 %v12143_v38, %v12143_v38 }
 0x3f1   : > { %v7009_v52 = vadd.f32 %v7008_v15, %v12141_v12  ;;  %v7718_v3 = vadd.f32 %v7717_v29, %v7367_v17  ;;  %v7372_v12 = vmul.f32 %v12167_v35, %v12167_v35  ;;  %v12777_v29 = vld [vmem:[#allocation30_spill] sm:$0xff] }
 0x3f3   : > { %v7719_v10 = vadd.f32 %v7718_v3, %v7368_v8  ;;  %v7010_v44 = vadd.f32 %v7009_v52, %v12150_v1  ;;  %v7388_v52 = vmul.f32 %v12271_v30, %v12271_v30 }
 0x3f5   : > { %v7011_v2 = vadd.f32 %v12136_v20, %v7010_v44  ;;  %v7720_v41 = vadd.f32 %v7719_v10, %v7369_v36  ;;  %v7374_v20 = vmul.f32 %v12162_v63, %v12162_v63  ;;  %v12778_v36 = vld [vmem:[#allocation36_spill] sm:$0xff] }
 0x3f7   : > { %v7721_v18 = vadd.f32 %v7720_v41, %v7370_v21  ;;  %v7012_v34 = vadd.f32 %v12143_v38, %v7011_v2  ;;  %v7375_v38 = vmul.f32 %v12169_v49, %v12169_v49  ;;  %v7389_v2 = vmul.f32 %v12778_v36, %v12778_v36  ;;  %v12779_v41 = vld [vmem:[#allocation34_spill] sm:$0xff] }
 0x3f9   : > { %v7013_v6 = vadd.f32 %v7012_v34, %v12167_v35  ;;  %v7722_v53 = vadd.f32 %v7721_v18, %v7371_v46  ;;  %v7376_v35 = vmul.f32 %v12193_v61, %v12193_v61  ;;  %v7390_v46 = vmul.f32 %v12779_v41, %v12779_v41 }
 0x3fb   : > { %v7723_v23 = vadd.f32 %v7722_v53, %v7372_v12  ;;  %v7014_v1 = vadd.f32 %v7013_v6, %v12176_v5  ;;  %v12780_v12 = vld [vmem:[#allocation35_spill] sm:$0xff] }
 0x3fc   : > { %v7391_v6 = vmul.f32 %v12780_v12, %v12780_v12 }
 0x3fd   : > { %v7015_v62 = vadd.f32 %v12162_v63, %v7014_v1  ;;  %v7724_v55 = vadd.f32 %v7723_v23, %v7373_v26  ;;  %v7378_v63 = vmul.f32 %v12188_v7, %v12188_v7 }
 0x3ff   : > { %v7725_v33 = vadd.f32 %v7724_v55, %v7374_v20  ;;  %v7016_v59 = vadd.f32 %v12169_v49, %v7015_v62  ;;  %v7379_v49 = vmul.f32 %v12195_v14, %v12195_v14 }
 0x401   : > { %v7017_v0 = vadd.f32 %v7016_v59, %v12193_v61  ;;  %v7726_v32 = vadd.f32 %v7725_v33, %v7375_v38  ;;  %v7380_v61 = vmul.f32 %v12219_v27, %v12219_v27 }
 0x403   : > { %v7727_v43 = vadd.f32 %v7726_v32, %v7376_v35  ;;  %v7018_v5 = vadd.f32 %v7017_v0, %v12202_v31 }
 0x405   : > { %v7019_v54 = vadd.f32 %v12188_v7, %v7018_v5  ;;  %v7728_v39 = vadd.f32 %v7727_v43, %v7377_v50  ;;  %v7382_v7 = vmul.f32 %v12214_v48, %v12214_v48 }
 0x407   : > { %v7729_v22 = vadd.f32 %v7728_v39, %v7378_v63  ;;  %v7020_v60 = vadd.f32 %v12195_v14, %v7019_v54  ;;  %v7383_v14 = vmul.f32 %v12221_v16, %v12221_v16 }
 0x409   : > { %v7021_v47 = vadd.f32 %v7020_v60, %v12219_v27  ;;  %v7730_v19 = vadd.f32 %v7729_v22, %v7379_v49  ;;  %v12774_v27 = vld [vmem:[#allocation33_spill] sm:$0xff] }
 0x40a   : > { %v7384_v42 = vmul.f32 %v12774_v27, %v12774_v27 }
 0x40b   : > { %v7731_v58 = vadd.f32 %v7730_v19, %v7380_v61  ;;  %v7022_v31 = vadd.f32 %v7021_v47, %v12228_v57  ;;  %v12775_v57 = vld [vmem:[#allocation32_spill] sm:$0xff] }
 0x40c   : > { %v7385_v45 = vmul.f32 %v12775_v57, %v12775_v57 }
 0x40d   : > { %v7023_v40 = vadd.f32 %v12214_v48, %v7022_v31  ;;  %v7732_v24 = vadd.f32 %v7731_v58, %v7381_v37  ;;  %v12776_v48 = vld [vmem:[#allocation31_spill] sm:$0xff] }
 0x40e   : > { %v7386_v56 = vmul.f32 %v12776_v48, %v12776_v48 }
 0x40f   : > { %v7733_v4 = vadd.f32 %v7732_v24, %v7382_v7  ;;  %v7024_v11 = vadd.f32 %v12221_v16, %v7023_v40  ;;  %v7387_v16 = vmul.f32 %v12777_v29, %v12777_v29 }
 0x411   : > { %v7025_v28 = vadd.f32 %v7024_v11, %v12774_v27  ;;  %v7734_v13 = vadd.f32 %v7733_v4, %v7383_v14 }
 0x413   : > { %v7735_v51 = vadd.f32 %v7734_v13, %v7384_v42  ;;  %v7026_v25 = vadd.f32 %v7025_v28, %v12775_v57 }
 0x415   : > { %v7027_v9 = vadd.f32 %v12776_v48, %v7026_v25  ;;  %v7736_v17 = vadd.f32 %v7735_v51, %v7385_v45 }
 0x417   : > { %v7737_v15 = vadd.f32 %v7736_v17, %v7386_v56  ;;  %v7028_v8 = vadd.f32 %v12777_v29, %v7027_v9 }
 0x419   : > { %v7029_v3 = vadd.f32 %v7028_v8, %v12271_v30  ;;  %v7738_v10 = vadd.f32 %v7737_v15, %v7387_v16 }
 0x41b   : > { %v7739_v44 = vadd.f32 %v7738_v10, %v7388_v52  ;;  %v7030_v21 = vadd.f32 %v7029_v3, %v12778_v36 }
 0x41d   : > { %v7031_v18 = vadd.f32 %v12779_v41, %v7030_v21  ;;  %v7740_v34 = vadd.f32 %v7739_v44, %v7389_v2 }
 0x41f   : > { %v7032_v53 = vadd.f32 %v12780_v12, %v7031_v18  ;;  %v7741_v30 = vadd.f32 %v7740_v34, %v7390_v46 }
 0x421   : > { %v7033_v23 = vrot.slane %v7032_v53, 4  ;;  %v7742_v1 = vadd.f32 %v7741_v30, %v7391_v6 }
 0x423   : > { %v7034_v26 = vadd.f32 %v7033_v23, %v7032_v53  ;;  %v7743_v20 = vrot.slane %v7742_v1, 4 }
 0x425   : > { %v7035_v62 = vrot.slane %v7034_v26, 2  ;;  %v7744_v55 = vadd.f32 %v7743_v20, %v7742_v1 }
 0x427   : > { %v7036_v38 = vadd.f32 %v7035_v62, %v7034_v26  ;;  %v7745_v33 = vrot.slane %v7744_v55, 2 }
 0x429   : > { %v7037_v59 = vrot.slane %v7036_v38, 1  ;;  %v7746_v35 = vadd.f32 %v7745_v33, %v7744_v55 }
 0x42b   : > { %v7038_v0 = vadd.f32 %v7037_v59, %v7036_v38  ;;  %v7747_v32 = vrot.slane %v7746_v35, 1 }
 0x42d   : > { %7039 = vst [vmem:[%s237_s7] sm:$0x1] %v7038_v0  ;;  %v7748_v43 = vadd.f32 %v7747_v32, %v7746_v35 }
 0x42f   : > { %7749 = vst [vmem:[%s237_s7 + $0x1] sm:$0x1] %v7748_v43 }
 0x430   : > { %10803 = shalt.err (!%p10800_p2)
}
 0x431   : > { %s10804_s25 = scalar_lea.hbm %s12528_s30, 128  ;;  %s10808_s20 = scalar_lea.hbm %s12580_s3, 256 }
 0x432   : > { %p10805_p3 = scmp.ne.s32.totalorder %s12528_s30, %s10804_s25  ;;  %p10809_p4 = scmp.lt.u32.totalorder %s12528_s30, %s12580_s3 }
 0x433   : > { %p10810_p6 = scmp.lt.u32.totalorder %s10808_s20, %s10804_s25  ;;  %p10812_p12 = scmp.lt.u32.totalorder %s10804_s25, %s12528_s30 }
 0x434   : > { %p10806_p7 = pnand %p10805_p3, %p11005_p10 }
 0x435   : > { %p10811_p8 = por %p10810_p6, %p10809_p4 }
 0x436   : > { %p10807_p11 = pneg %p10806_p7 }
 0x437   : > { %p10813_p13 = por %p10812_p12, %p10811_p8 }
 0x439   : > { %p10814_p0 = pnand %p10813_p13, %p10807_p11 }
 0x43b   : > { %10817 = shalt.err (!%p10814_p0)
}
 0x43c   : > { %10445 = dma.vmem_to_hbm [thread:$0]  (%p11005_p10), %s12530_s18, 128, %s12528_s30, %s7756_s21  }
 0x43d PF: > { %s7797_s24 = sand.u32 1, %s10860_s12   ;;  %p12781_p5 = scmp.ne.s32.totalorder %s12680_s23, 0 }
 0x43e   : > { %p12782_p9 = scmp.ge.s32.totalorder %s10880_s17, 2  ;;  %s7798_s11 = scalar_lea.sflag [#allocation5], %s7797_s24 }
 0x440   : > { %p10457_p1 = pnand %p12782_p9, %p12781_p5 }
 0x442   : > { %10851 = dma.done.wait (!%p10457_p1), %s7798_s11, 22528  }
 0x443   : > { %10853 = vsyncadd (!%p10457_p1), %s7798_s11, 4294944768  ;;  %s7807_s7 = scalar_lea.sflag [#allocation10], %s7797_s24 }
 0x444   : > { %10855 = dma.done.wait (!%p10457_p1), %s7807_s7, 128  }
 0x445   : > { %10857 = vsyncadd (!%p10457_p1), %s7807_s7, 4294967168  ;;  %s24_s17 = sadd.s32 1, %s10880_s17   ;;  %s12783_s12 = smov %s10864_s13 }
 0x446   : > { %p21_p2 = scmp.ge.s32.totalorder %s24_s17, 4   ;;  %s12784_s13 = smov %s10868_s14 }
 0x447   : > { %s12785_s14 = smov %s11014_s5  ;;  %s12786_s15 = smov %s10876_s16 }
 0x448   : > { %s12787_s16 = smov %s12789_s28  ;;  %23 = sbr.rel (!%p21_p2) target bundleno = 9 (0x9), region = 103 }
 0x44f   :  { %7812 = vsyncpa [#allocation4], 1 }
 0x450   :  { %7814 = vsyncpa [#allocation4 + $0x1], 1 }
 0x451   :  { %7815 = vsyncpa [#allocation7], 1 }
 0x452   :  { %7816 = vsyncpa [#allocation5], 1 }
 0x453   :  { %7818 = vsyncpa [#allocation5 + $0x1], 1 }
 0x454   :  { %7819 = vsyncpa [#allocation10], 1 }
 0x455   :  { %7821 = vsyncpa [#allocation10 + $0x1], 1 }

</bundles_post_ra>
